<compile_context>
chip_gen: v5e
topology: v5e:2x2
jax: 0.10.0
libtpu: 0.0.40
codegen_flags: <defaults>
</compile_context>

<pallas_src>
import functools

import numpy as np
import jax
import jax.numpy as jnp
from jax import lax
from jax.experimental import pallas as pl
from jax.experimental.pallas import tpu as pltpu

TILE = 128  # time/frequency tile; L must be a multiple of this.


# -----------------------------------------------------------------------------
# Deterministic parameter initialization (mirrors S4Base.__init__)
# -----------------------------------------------------------------------------
def init_dplr_hippo(signal_dim: int, state_dim: int):
    A = np.zeros((state_dim, state_dim), dtype=np.float64)
    for k in range(state_dim):
        for n in range(k, state_dim):
            if n > k:
                A[n, k] = ((2 * n + 1) ** 0.5) * ((2 * k + 1) ** 0.5)
            else:
                A[n, k] = n + 1
    B = np.sqrt(np.arange(state_dim) * 2.0 + 1.0)[:, None]
    B = np.tile(B, (1, signal_dim))
    A = -A
    P = np.sqrt(np.arange(state_dim) + 0.5)
    SI = A + P[:, None] * P[None, :]
    diag = np.diagonal(SI)
    S = SI - np.diag(diag)
    # TODO(synk): eigh has no Pallas equivalent; it is init-time-only so done in NumPy.
    eigvals, V = np.linalg.eigh(S * -1j)
    Lam = diag + 1j * eigvals
    Vc = V.conj().T
    Pc = Vc @ P.astype(np.complex128)
    Bc = Vc @ B.astype(np.complex128)
    return (Lam.astype(np.complex64), Pc.astype(np.complex64),
            Bc.astype(np.complex64))


def make_params(signal_dim: int, state_dim: int, key):
    Lam, P, B = init_dplr_hippo(signal_dim, state_dim)
    k1, k2, k3, k4 = jax.random.split(key, 4)
    C = (jax.random.normal(k1, (1, state_dim)) +
         1j * jax.random.normal(k2, (1, state_dim))) / jnp.sqrt(2.0)
    return dict(
        Lambda=jnp.asarray(Lam),
        P=jnp.asarray(P),
        B=jnp.asarray(B),
        C=C.astype(jnp.complex64),
        D=jax.random.normal(k3, (signal_dim,), dtype=jnp.float32),
        log_step=jnp.log(
            jax.random.uniform(k4, (1,), minval=0.001, maxval=0.1)
        ).astype(jnp.float32),
    )


# -----------------------------------------------------------------------------
# Kernel 1: Cauchy reductions + DPLR generating function + tiled inverse DFT
# grid = (L/TILE [time tile, parallel], L/TILE [freq tile, reduction])
# -----------------------------------------------------------------------------
def _s4_spectrum_kernel(g_re_ref, g_im_ref, om_re_ref, om_im_ref,
                        lam_re_ref, lam_im_ref, w_re_ref, w_im_ref,
                        k_ref, *, sig_dim, seq_len, tile):
    ti = pl.program_id(0)
    fi = pl.program_id(1)
    nf = pl.num_programs(1)

    # ---- Cauchy reductions over the state dim (one stacked complex matmul) ----
    den_re = g_re_ref[...] - lam_re_ref[...]          # (N, TF)
    den_im = g_im_ref[...] - lam_im_ref[...]
    inv_mag = pl.reciprocal(den_re * den_re + den_im * den_im, approx=True)
    inv_re = den_re * inv_mag                         # Re 1/(g - Lambda)
    inv_im = -(den_im * inv_mag)                      # Im 1/(g - Lambda)

    w_re = w_re_ref[...]                              # (2D+2, N)
    w_im = w_im_ref[...]
    kr = (jnp.dot(w_re, inv_re, preferred_element_type=jnp.float32)
          - jnp.dot(w_im, inv_im, preferred_element_type=jnp.float32))
    ki = (jnp.dot(w_re, inv_im, preferred_element_type=jnp.float32)
          + jnp.dot(w_im, inv_re, preferred_element_type=jnp.float32))

    d = sig_dim
    k00r, k00i = kr[0:d], ki[0:d]                     # (D, TF)
    k10r, k10i = kr[d:2 * d], ki[d:2 * d]             # (D, TF)
    k01r, k01i = kr[2 * d:2 * d + 1], ki[2 * d:2 * d + 1]   # (1, TF)
    k11r, k11i = kr[2 * d + 1:], ki[2 * d + 1:]       # (1, TF)

    # 1 / (1 + k11)
    dr = 1.0 + k11r
    di = k11i
    r11 = pl.reciprocal(dr * dr + di * di, approx=True)
    cr = dr * r11
    ci = -(di * r11)
    # k01 * (1/(1+k11)) * k10
    t1r = k01r * cr - k01i * ci
    t1i = k01r * ci + k01i * cr
    tr = t1r * k10r - t1i * k10i
    tq = t1r * k10i + t1i * k10r
    er = k00r - tr                                    # (D, TF)
    ei = k00i - tq

    # factor 2 / (1 + Omega)
    fdr = 1.0 + om_re_ref[...]
    fdi = om_im_ref[...]
    rf = pl.reciprocal(fdr * fdr + fdi * fdi, approx=True)
    fr = 2.0 * fdr * rf
    fi_ = -(2.0 * fdi * rf)
    ev_re = er * fr - ei * fi_                        # (D, TF)
    ev_im = er * fi_ + ei * fr

    # ---- inverse-DFT tile: cos/sin generated in-kernel (EUP), no HBM matrices ----
    f_loc = lax.broadcasted_iota(jnp.int32, (tile, tile), 0).astype(jnp.float32)
    t_loc = lax.broadcasted_iota(jnp.int32, (tile, tile), 1).astype(jnp.float32)
    fg = f_loc + (fi * tile).astype(jnp.float32)      # global frequency index
    tg = t_loc + (ti * tile).astype(jnp.float32)      # global time index
    # (fg * tg) mod L in f32 — exact for L <= 4096 (product < 2^24).
    # TODO(synk): very long sequences (L > 4096) would need an exact int path.
    prod = fg * tg
    lf = jnp.float32(seq_len)
    m = prod - jnp.floor(prod * jnp.float32(1.0 / seq_len)) * lf
    ang = m * jnp.float32(2.0 * np.pi / seq_len)
    cos_t = jnp.cos(ang)
    sin_t = jnp.sin(ang)

    contrib = (jnp.dot(ev_re, cos_t, preferred_element_type=jnp.float32)
               - jnp.dot(ev_im, sin_t, preferred_element_type=jnp.float32))

    @pl.when(fi == 0)
    def _():
        k_ref[...] = jnp.zeros_like(k_ref)

    k_ref[...] += contrib                             # resident across freq axis

    @pl.when(fi == nf - 1)
    def _():
        k_ref[...] = k_ref[...] * jnp.float32(1.0 / seq_len)


# -----------------------------------------------------------------------------
# Kernel 2: causal convolution (Toeplitz built on the fly) + D*u skip
# grid = (D [parallel], L/TILE out-time [parallel], L/TILE in-time [reduction])
# -----------------------------------------------------------------------------
def _s4_conv_kernel(kwin_ref, u_ref, dcoef_ref, o_ref, acc_ref, *, tile):
    i = pl.program_id(1)          # output time tile
    j = pl.program_id(2)          # input time tile (reduction)

    @pl.when(j == 0)
    def _():
        acc_ref[...] = jnp.zeros_like(acc_ref)

    @pl.when(j <= i)              # causal: tiles with j > i contribute nothing
    def _():
        # Build the (TS, TT) slice of the causal Toeplitz operator for this
        # channel from a 2*tile window w of the zero-front-padded kernel K:
        #   toepT[s, t] = w[t + tile - s] = K[(i-j)*tile + t - s]   (0 if t_g < s_g)
        # Row s needs w rolled by (tile + s)  ->  one strided lane-roll.
        w = kwin_ref[0, 0]                                   # (1, 2*tile)
        wb = jnp.broadcast_to(w, (tile, 2 * tile))
        rolled = pltpu.roll(wb, tile, 1, stride=1, stride_axis=0)
        toep_t = rolled[:, :tile]                            # (TS, TT)
        u_blk = u_ref[0]                                     # (B, TS)
        acc_ref[...] += jnp.dot(u_blk.astype(jnp.bfloat16),
                                toep_t.astype(jnp.bfloat16),
                                preferred_element_type=jnp.float32)

    @pl.when(j == i)
    def _():
        # At j == i the u block is exactly the output time-tile -> fuse D*u skip.
        o_ref[0] = acc_ref[...] + dcoef_ref[0, 0, 0] * u_ref[0]


# -----------------------------------------------------------------------------
# Wrapper = S4Base.convolutional_forward
# -----------------------------------------------------------------------------
def s4_convolutional_forward(u, params, L):
    assert u.shape[-2] == L, "sequence length mismatch"
    # TODO(synk): general L would need zero-padding of K/u up to a tile multiple.
    assert L % TILE == 0, "this Pallas S4 implementation requires L % 128 == 0"

    Lam, P, B, C = params["Lambda"], params["P"], params["B"], params["C"]
    Dp = params["D"]
    step = jnp.exp(params["log_step"])[0]

    N = Lam.shape[0]
    Dsig = B.shape[1]
    Bsz = u.shape[0]
    nT = L // TILE

    # --- glue: tiny complex parameter algebra (outside the kernels) ---
    Omega = jnp.exp(-2j * jnp.pi * (jnp.arange(L) / L)).astype(jnp.complex64)
    g = (2.0 / step) * (1.0 - Omega) / (1.0 + Omega)       # (L,)
    Cc = jnp.conj(C)                                       # (1, N)
    Pc = jnp.conj(P)                                       # (N,)
    w00 = Cc * B.T                                         # (D, N)  C* . B
    w10 = Pc[None, :] * B.T                                # (D, N)  P* . B
    w01 = Cc * P[None, :]                                  # (1, N)  C* . P
    w11 = (Pc * P)[None, :]                                # (1, N)  P* . P
    W = jnp.concatenate([w00, w10, w01, w11], axis=0)      # (2D+2, N)

    f32 = lambda z: jnp.asarray(z, jnp.float32)
    g_re, g_im = f32(g.real)[None, :], f32(g.imag)[None, :]
    om_re, om_im = f32(Omega.real)[None, :], f32(Omega.imag)[None, :]
    lam_re, lam_im = f32(Lam.real)[:, None], f32(Lam.imag)[:, None]
    w_re, w_im = f32(W.real), f32(W.imag)

    freq_spec = pl.BlockSpec((1, TILE), lambda ti, fi: (0, fi))
    k_dl = pl.pallas_call(
        functools.partial(_s4_spectrum_kernel, sig_dim=Dsig, seq_len=L, tile=TILE),
        out_shape=jax.ShapeDtypeStruct((Dsig, L), jnp.float32),
        grid=(nT, nT),
        in_specs=[
            freq_spec, freq_spec, freq_spec, freq_spec,
            pl.BlockSpec((N, 1), lambda ti, fi: (0, 0)),
            pl.BlockSpec((N, 1), lambda ti, fi: (0, 0)),
            pl.BlockSpec((2 * Dsig + 2, N), lambda ti, fi: (0, 0)),
            pl.BlockSpec((2 * Dsig + 2, N), lambda ti, fi: (0, 0)),
        ],
        out_specs=pl.BlockSpec((Dsig, TILE), lambda ti, fi: (0, ti)),
        compiler_params=pltpu.CompilerParams(
            dimension_semantics=("parallel", "arbitrary"),
            vmem_limit_bytes=32 * 1024 * 1024),
    )(g_re, g_im, om_re, om_im, lam_re, lam_im, w_re, w_im)      # (D, L)

    # --- K windows for the conv kernel: front-pad with 2*TILE zeros (handles
    #     causal masking for diagonal tiles), then overlapping 2*TILE windows.
    kpad = jnp.concatenate(
        [jnp.zeros((Dsig, 2 * TILE), jnp.float32), k_dl], axis=1)   # (D, L+2T)
    kblk = kpad.reshape(Dsig, nT + 2, TILE)
    kwin = jnp.concatenate([kblk[:, :-1, :], kblk[:, 1:, :]], axis=2)
    kwin = kwin.reshape(Dsig, nT + 1, 1, 2 * TILE)                  # (D, nT+1, 1, 2T)

    u_dbl = jnp.transpose(u.astype(jnp.float32), (2, 0, 1))         # (D, B, L)
    dcoef = jnp.broadcast_to(
        Dp.astype(jnp.float32).reshape(Dsig, 1, 1), (Dsig, 1, TILE))

    y_dbl = pl.pallas_call(
        functools.partial(_s4_conv_kernel, tile=TILE),
        out_shape=jax.ShapeDtypeStruct((Dsig, Bsz, L), jnp.float32),
        grid=(Dsig, nT, nT),
        in_specs=[
            pl.BlockSpec((1, 1, 1, 2 * TILE),
                         lambda d, i, j: (d, jnp.maximum(i - j + 1, 0), 0, 0)),
            pl.BlockSpec((1, Bsz, TILE), lambda d, i, j: (d, 0, j)),
            pl.BlockSpec((1, 1, TILE), lambda d, i, j: (d, 0, 0)),
        ],
        out_specs=pl.BlockSpec((1, Bsz, TILE), lambda d, i, j: (d, 0, i)),
        scratch_shapes=[pltpu.VMEM((Bsz, TILE), jnp.float32)],
        compiler_params=pltpu.CompilerParams(
            dimension_semantics=("parallel", "parallel", "arbitrary"),
            vmem_limit_bytes=32 * 1024 * 1024),
    )(kwin, u_dbl, dcoef)

    return jnp.transpose(y_dbl, (1, 2, 0))                          # (B, L, D)


# -----------------------------------------------------------------------------
# Pure-JAX reference (mirrors the PyTorch math, with FFTs) for a sanity check
# -----------------------------------------------------------------------------
def s4_reference(u, params, L):
    Lam, P, B, C = params["Lambda"], params["P"], params["B"], params["C"]
    Dp = params["D"]
    step = jnp.exp(params["log_step"])[0]
    Omega = jnp.exp(-2j * jnp.pi * (jnp.arange(L) / L)).astype(jnp.complex64)
    g = (2.0 / step) * (1.0 - Omega) / (1.0 + Omega)
    a0 = jnp.conj(C)                       # (1, N)
    a1 = jnp.conj(P)[None, :]              # (1, N)
    b0 = B.T                               # (D, N)
    b1 = P[None, :]                        # (1, N)
    denom = g[None, None, :] - Lam[None, :, None]      # (1, N, L)
    cauchy = lambda ab: (ab[:, :, None] / denom).sum(axis=1)   # (X, L)
    k00 = cauchy(a0 * b0)
    k01 = cauchy(a0 * b1)
    k10 = cauchy(a1 * b0)
    k11 = cauchy(a1 * b1)
    atR = (2.0 / (1.0 + Omega)) * (k00 - k01 * (1.0 / (1.0 + k11)) * k10)
    K = jnp.fft.ifft(atR, axis=-1).real                # (D, L)
    u_t = jnp.moveaxis(u, -2, -1)                      # (B, D, L)
    ud = jnp.fft.rfft(jnp.pad(u_t, ((0, 0), (0, 0), (0, L))), axis=-1)
    Kd = jnp.fft.rfft(jnp.pad(K, ((0, 0), (0, L))), axis=-1)
    y = jnp.fft.irfft(ud * Kd[None], axis=-1)[..., :L]
    y = jnp.moveaxis(y, -1, -2)                        # (B, L, D)
    return y + Dp * u


if __name__ == "__main__":
    signal_dim, state_dim, seq_len, batch = 4, 8, 256, 2
    key = jax.random.PRNGKey(0)
    pkey, ukey = jax.random.split(key)
    params = make_params(signal_dim, state_dim, pkey)
    u = jax.random.normal(ukey, (batch, seq_len, signal_dim), dtype=jnp.float32)

    fwd = jax.jit(functools.partial(s4_convolutional_forward, L=seq_len))
    y = jax.block_until_ready(fwd(u, params))
    assert y.shape == (batch, seq_len, signal_dim)
    assert y.dtype == jnp.float32

    y_ref = jax.block_until_ready(s4_reference(u, params, seq_len))
    err = float(jnp.linalg.norm(y - y_ref))
    ref = float(jnp.linalg.norm(y_ref)) + 1e-6
    assert np.isfinite(err) and err <= 3e-2 * ref, (err, ref)

    print("KERNEL_OK")
</pallas_src>

<mosaic_0001>
module attributes {stable_mosaic.version = 11 : i64} {
  func.func @_s4_spectrum_kernel(%arg0: i32, %arg1: i32, %arg2: memref<1x128xf32, #tpu.memory_space<vmem>>, %arg3: memref<1x128xf32, #tpu.memory_space<vmem>>, %arg4: memref<1x128xf32, #tpu.memory_space<vmem>>, %arg5: memref<1x128xf32, #tpu.memory_space<vmem>>, %arg6: memref<8x1xf32, #tpu.memory_space<vmem>>, %arg7: memref<8x1xf32, #tpu.memory_space<vmem>>, %arg8: memref<10x8xf32, #tpu.memory_space<vmem>>, %arg9: memref<10x8xf32, #tpu.memory_space<vmem>>, %arg10: memref<4x128xf32, #tpu.memory_space<vmem>>) attributes {dimension_semantics = [#tpu.dimension_semantics<parallel>, #tpu.dimension_semantics<arbitrary>], iteration_bounds = array<i64: 2, 2>, scalar_prefetch = 0 : i64, scratch_operands = 0 : i64, tpu.core_type = #tpu.core_type<tc>, window_params = [{transform_indices = @transform_0, window_bounds = array<i64: 1, 128>}, {transform_indices = @transform_1, window_bounds = array<i64: 1, 128>}, {transform_indices = @transform_2, window_bounds = array<i64: 1, 128>}, {transform_indices = @transform_3, window_bounds = array<i64: 1, 128>}, {pipeline_mode = #tpu.pipeline_mode<synchronous>, transform_indices = @transform_4, window_bounds = array<i64: 8, 1>}, {pipeline_mode = #tpu.pipeline_mode<synchronous>, transform_indices = @transform_5, window_bounds = array<i64: 8, 1>}, {pipeline_mode = #tpu.pipeline_mode<synchronous>, transform_indices = @transform_6, window_bounds = array<i64: 10, 8>}, {pipeline_mode = #tpu.pipeline_mode<synchronous>, transform_indices = @transform_7, window_bounds = array<i64: 10, 8>}, {transform_indices = @transform_8, window_bounds = array<i64: 4, 128>}]} {
    %c0 = arith.constant 0 : index
    %c0_0 = arith.constant 0 : index
    %0 = vector.load %arg2[%c0, %c0_0] : memref<1x128xf32, #tpu.memory_space<vmem>>, vector<1x128xf32>
    %c0_1 = arith.constant 0 : index
    %c0_2 = arith.constant 0 : index
    %1 = vector.load %arg6[%c0_1, %c0_2] : memref<8x1xf32, #tpu.memory_space<vmem>>, vector<8x1xf32>
    %2 = vector.broadcast %0 : vector<1x128xf32> to vector<8x128xf32>
    %3 = vector.broadcast %1 : vector<8x1xf32> to vector<8x128xf32>
    %4 = arith.subf %2, %3 : vector<8x128xf32>
    %c0_3 = arith.constant 0 : index
    %c0_4 = arith.constant 0 : index
    %5 = vector.load %arg3[%c0_3, %c0_4] : memref<1x128xf32, #tpu.memory_space<vmem>>, vector<1x128xf32>
    %c0_5 = arith.constant 0 : index
    %c0_6 = arith.constant 0 : index
    %6 = vector.load %arg7[%c0_5, %c0_6] : memref<8x1xf32, #tpu.memory_space<vmem>>, vector<8x1xf32>
    %7 = vector.broadcast %5 : vector<1x128xf32> to vector<8x128xf32>
    %8 = vector.broadcast %6 : vector<8x1xf32> to vector<8x128xf32>
    %9 = arith.subf %7, %8 : vector<8x128xf32>
    %10 = arith.mulf %4, %4 : vector<8x128xf32>
    %11 = arith.mulf %9, %9 : vector<8x128xf32>
    %12 = arith.addf %10, %11 : vector<8x128xf32>
    %13 = tpu.reciprocal %12 {approx = true} : vector<8x128xf32> -> vector<8x128xf32>
    %14 = arith.mulf %4, %13 : vector<8x128xf32>
    %15 = arith.mulf %9, %13 : vector<8x128xf32>
    %cst = arith.constant 0.000000e+00 : f32
    %16 = vector.broadcast %cst : f32 to vector<8x128xf32>
    %17 = arith.subf %16, %15 : vector<8x128xf32>
    %c0_7 = arith.constant 0 : index
    %c0_8 = arith.constant 0 : index
    %18 = vector.load %arg8[%c0_7, %c0_8] : memref<10x8xf32, #tpu.memory_space<vmem>>, vector<10x8xf32>
    %c0_9 = arith.constant 0 : index
    %c0_10 = arith.constant 0 : index
    %19 = vector.load %arg9[%c0_9, %c0_10] : memref<10x8xf32, #tpu.memory_space<vmem>>, vector<10x8xf32>
    %cst_11 = arith.constant dense<0.000000e+00> : vector<10x128xf32>
    %20 = tpu.matmul %18, %14, %cst_11 {dimension_numbers = #tpu.dot_dimension_numbers<[1], [0], [0], [1], [0, 0, 1, 1], [], []>} : vector<10x8xf32>, vector<8x128xf32>, vector<10x128xf32> -> vector<10x128xf32>
    %cst_12 = arith.constant dense<0.000000e+00> : vector<10x128xf32>
    %21 = tpu.matmul %19, %17, %cst_12 {dimension_numbers = #tpu.dot_dimension_numbers<[1], [0], [0], [1], [0, 0, 1, 1], [], []>} : vector<10x8xf32>, vector<8x128xf32>, vector<10x128xf32> -> vector<10x128xf32>
    %22 = arith.subf %20, %21 : vector<10x128xf32>
    %cst_13 = arith.constant dense<0.000000e+00> : vector<10x128xf32>
    %23 = tpu.matmul %18, %17, %cst_13 {dimension_numbers = #tpu.dot_dimension_numbers<[1], [0], [0], [1], [0, 0, 1, 1], [], []>} : vector<10x8xf32>, vector<8x128xf32>, vector<10x128xf32> -> vector<10x128xf32>
    %cst_14 = arith.constant dense<0.000000e+00> : vector<10x128xf32>
    %24 = tpu.matmul %19, %14, %cst_14 {dimension_numbers = #tpu.dot_dimension_numbers<[1], [0], [0], [1], [0, 0, 1, 1], [], []>} : vector<10x8xf32>, vector<8x128xf32>, vector<10x128xf32> -> vector<10x128xf32>
    %25 = arith.addf %23, %24 : vector<10x128xf32>
    %26 = vector.extract_strided_slice %22 {offsets = [0, 0], sizes = [4, 128], strides = [1, 1]} : vector<10x128xf32> to vector<4x128xf32>
    %27 = vector.extract_strided_slice %25 {offsets = [0, 0], sizes = [4, 128], strides = [1, 1]} : vector<10x128xf32> to vector<4x128xf32>
    %28 = vector.extract_strided_slice %22 {offsets = [4, 0], sizes = [4, 128], strides = [1, 1]} : vector<10x128xf32> to vector<4x128xf32>
    %29 = vector.extract_strided_slice %25 {offsets = [4, 0], sizes = [4, 128], strides = [1, 1]} : vector<10x128xf32> to vector<4x128xf32>
    %30 = vector.extract_strided_slice %22 {offsets = [8, 0], sizes = [1, 128], strides = [1, 1]} : vector<10x128xf32> to vector<1x128xf32>
    %31 = vector.extract_strided_slice %25 {offsets = [8, 0], sizes = [1, 128], strides = [1, 1]} : vector<10x128xf32> to vector<1x128xf32>
    %32 = vector.extract_strided_slice %22 {offsets = [9, 0], sizes = [1, 128], strides = [1, 1]} : vector<10x128xf32> to vector<1x128xf32>
    %33 = vector.extract_strided_slice %25 {offsets = [9, 0], sizes = [1, 128], strides = [1, 1]} : vector<10x128xf32> to vector<1x128xf32>
    %cst_15 = arith.constant 1.000000e+00 : f32
    %34 = vector.broadcast %cst_15 : f32 to vector<1x128xf32>
    %35 = arith.addf %34, %32 : vector<1x128xf32>
    %36 = arith.mulf %35, %35 : vector<1x128xf32>
    %37 = arith.mulf %33, %33 : vector<1x128xf32>
    %38 = arith.addf %36, %37 : vector<1x128xf32>
    %39 = tpu.reciprocal %38 {approx = true} : vector<1x128xf32> -> vector<1x128xf32>
    %40 = arith.mulf %35, %39 : vector<1x128xf32>
    %41 = arith.mulf %33, %39 : vector<1x128xf32>
    %cst_16 = arith.constant 0.000000e+00 : f32
    %42 = vector.broadcast %cst_16 : f32 to vector<1x128xf32>
    %43 = arith.subf %42, %41 : vector<1x128xf32>
    %44 = arith.mulf %30, %40 : vector<1x128xf32>
    %45 = arith.mulf %31, %43 : vector<1x128xf32>
    %46 = arith.subf %44, %45 : vector<1x128xf32>
    %47 = arith.mulf %30, %43 : vector<1x128xf32>
    %48 = arith.mulf %31, %40 : vector<1x128xf32>
    %49 = arith.addf %47, %48 : vector<1x128xf32>
    %50 = vector.broadcast %46 : vector<1x128xf32> to vector<4x128xf32>
    %51 = arith.mulf %50, %28 : vector<4x128xf32>
    %52 = vector.broadcast %49 : vector<1x128xf32> to vector<4x128xf32>
    %53 = arith.mulf %52, %29 : vector<4x128xf32>
    %54 = arith.subf %51, %53 : vector<4x128xf32>
    %55 = vector.broadcast %46 : vector<1x128xf32> to vector<4x128xf32>
    %56 = arith.mulf %55, %29 : vector<4x128xf32>
    %57 = vector.broadcast %49 : vector<1x128xf32> to vector<4x128xf32>
    %58 = arith.mulf %57, %28 : vector<4x128xf32>
    %59 = arith.addf %56, %58 : vector<4x128xf32>
    %60 = arith.subf %26, %54 : vector<4x128xf32>
    %61 = arith.subf %27, %59 : vector<4x128xf32>
    %c0_17 = arith.constant 0 : index
    %c0_18 = arith.constant 0 : index
    %62 = vector.load %arg4[%c0_17, %c0_18] : memref<1x128xf32, #tpu.memory_space<vmem>>, vector<1x128xf32>
    %cst_19 = arith.constant 1.000000e+00 : f32
    %63 = vector.broadcast %cst_19 : f32 to vector<1x128xf32>
    %64 = arith.addf %63, %62 : vector<1x128xf32>
    %c0_20 = arith.constant 0 : index
    %c0_21 = arith.constant 0 : index
    %65 = vector.load %arg5[%c0_20, %c0_21] : memref<1x128xf32, #tpu.memory_space<vmem>>, vector<1x128xf32>
    %66 = arith.mulf %64, %64 : vector<1x128xf32>
    %67 = arith.mulf %65, %65 : vector<1x128xf32>
    %68 = arith.addf %66, %67 : vector<1x128xf32>
    %69 = tpu.reciprocal %68 {approx = true} : vector<1x128xf32> -> vector<1x128xf32>
    %cst_22 = arith.constant 2.000000e+00 : f32
    %70 = vector.broadcast %cst_22 : f32 to vector<1x128xf32>
    %71 = arith.mulf %70, %64 : vector<1x128xf32>
    %72 = arith.mulf %71, %69 : vector<1x128xf32>
    %cst_23 = arith.constant 2.000000e+00 : f32
    %73 = vector.broadcast %cst_23 : f32 to vector<1x128xf32>
    %74 = arith.mulf %73, %65 : vector<1x128xf32>
    %75 = arith.mulf %74, %69 : vector<1x128xf32>
    %cst_24 = arith.constant 0.000000e+00 : f32
    %76 = vector.broadcast %cst_24 : f32 to vector<1x128xf32>
    %77 = arith.subf %76, %75 : vector<1x128xf32>
    %78 = vector.broadcast %72 : vector<1x128xf32> to vector<4x128xf32>
    %79 = arith.mulf %60, %78 : vector<4x128xf32>
    %80 = vector.broadcast %77 : vector<1x128xf32> to vector<4x128xf32>
    %81 = arith.mulf %61, %80 : vector<4x128xf32>
    %82 = arith.subf %79, %81 : vector<4x128xf32>
    %83 = vector.broadcast %77 : vector<1x128xf32> to vector<4x128xf32>
    %84 = arith.mulf %60, %83 : vector<4x128xf32>
    %85 = vector.broadcast %72 : vector<1x128xf32> to vector<4x128xf32>
    %86 = arith.mulf %61, %85 : vector<4x128xf32>
    %87 = arith.addf %84, %86 : vector<4x128xf32>
    %88 = tpu.iota {dimensions = array<i32: 0>} : vector<128x128xi32>
    %89 = arith.sitofp %88 : vector<128x128xi32> to vector<128x128xf32>
    %90 = tpu.iota {dimensions = array<i32: 1>} : vector<128x128xi32>
    %91 = arith.sitofp %90 : vector<128x128xi32> to vector<128x128xf32>
    %c128_i32 = arith.constant 128 : i32
    %92 = arith.muli %arg1, %c128_i32 : i32
    %93 = arith.sitofp %92 : i32 to f32
    %94 = vector.broadcast %93 : f32 to vector<128x128xf32>
    %95 = arith.addf %89, %94 : vector<128x128xf32>
    %c128_i32_25 = arith.constant 128 : i32
    %96 = arith.muli %arg0, %c128_i32_25 : i32
    %97 = arith.sitofp %96 : i32 to f32
    %98 = vector.broadcast %97 : f32 to vector<128x128xf32>
    %99 = arith.addf %91, %98 : vector<128x128xf32>
    %100 = arith.mulf %95, %99 : vector<128x128xf32>
    %cst_26 = arith.constant 3.906250e-03 : f32
    %101 = vector.broadcast %cst_26 : f32 to vector<128x128xf32>
    %102 = arith.mulf %100, %101 : vector<128x128xf32>
    %103 = math.floor %102 : vector<128x128xf32>
    %cst_27 = arith.constant 2.560000e+02 : f32
    %104 = vector.broadcast %cst_27 : f32 to vector<128x128xf32>
    %105 = arith.mulf %103, %104 : vector<128x128xf32>
    %106 = arith.subf %100, %105 : vector<128x128xf32>
    %cst_28 = arith.constant 0.0245436933 : f32
    %107 = vector.broadcast %cst_28 : f32 to vector<128x128xf32>
    %108 = arith.mulf %106, %107 : vector<128x128xf32>
    %109 = math.cos %108 : vector<128x128xf32>
    %110 = math.sin %108 : vector<128x128xf32>
    %cst_29 = arith.constant dense<0.000000e+00> : vector<4x128xf32>
    %111 = tpu.matmul %82, %109, %cst_29 {dimension_numbers = #tpu.dot_dimension_numbers<[1], [0], [0], [1], [0, 0, 1, 1], [], []>} : vector<4x128xf32>, vector<128x128xf32>, vector<4x128xf32> -> vector<4x128xf32>
    %cst_30 = arith.constant dense<0.000000e+00> : vector<4x128xf32>
    %112 = tpu.matmul %87, %110, %cst_30 {dimension_numbers = #tpu.dot_dimension_numbers<[1], [0], [0], [1], [0, 0, 1, 1], [], []>} : vector<4x128xf32>, vector<128x128xf32>, vector<4x128xf32> -> vector<4x128xf32>
    %113 = arith.subf %111, %112 : vector<4x128xf32>
    %c0_i32 = arith.constant 0 : i32
    %114 = arith.cmpi eq, %arg1, %c0_i32 : i32
    %115 = arith.extui %114 : i1 to i32
    %c0_i32_31 = arith.constant 0 : i32
    %116 = arith.cmpi ne, %115, %c0_i32_31 : i32
    scf.if %116 {
      %cst_37 = arith.constant 0.000000e+00 : f32
      %123 = vector.broadcast %cst_37 : f32 to vector<4x128xf32>
      %c0_38 = arith.constant 0 : index
      %c0_39 = arith.constant 0 : index
      %124 = vector.load %arg10[%c0_38, %c0_39] : memref<4x128xf32, #tpu.memory_space<vmem>>, vector<4x128xf32>
      tpu.vector_store %arg10[%c0_38, %c0_39], %123 {strides = array<i32>} : memref<4x128xf32, #tpu.memory_space<vmem>>, vector<4x128xf32>,
    } else {
    }
    %c0_32 = arith.constant 0 : index
    %c0_33 = arith.constant 0 : index
    %117 = vector.load %arg10[%c0_32, %c0_33] : memref<4x128xf32, #tpu.memory_space<vmem>>, vector<4x128xf32>
    %118 = arith.addf %117, %113 : vector<4x128xf32>
    %c0_34 = arith.constant 0 : index
    %c0_35 = arith.constant 0 : index
    %119 = vector.load %arg10[%c0_34, %c0_35] : memref<4x128xf32, #tpu.memory_space<vmem>>, vector<4x128xf32>
    tpu.vector_store %arg10[%c0_34, %c0_35], %118 {strides = array<i32>} : memref<4x128xf32, #tpu.memory_space<vmem>>, vector<4x128xf32>,
    %c1_i32 = arith.constant 1 : i32
    %120 = arith.cmpi eq, %arg1, %c1_i32 : i32
    %121 = arith.extui %120 : i1 to i32
    %c0_i32_36 = arith.constant 0 : i32
    %122 = arith.cmpi ne, %121, %c0_i32_36 : i32
    scf.if %122 {
      %c0_37 = arith.constant 0 : index
      %c0_38 = arith.constant 0 : index
      %123 = vector.load %arg10[%c0_37, %c0_38] : memref<4x128xf32, #tpu.memory_space<vmem>>, vector<4x128xf32>
      %cst_39 = arith.constant 3.906250e-03 : f32
      %124 = vector.broadcast %cst_39 : f32 to vector<4x128xf32>
      %125 = arith.mulf %123, %124 : vector<4x128xf32>
      %c0_40 = arith.constant 0 : index
      %c0_41 = arith.constant 0 : index
      %126 = vector.load %arg10[%c0_40, %c0_41] : memref<4x128xf32, #tpu.memory_space<vmem>>, vector<4x128xf32>
      tpu.vector_store %arg10[%c0_40, %c0_41], %125 {strides = array<i32>} : memref<4x128xf32, #tpu.memory_space<vmem>>, vector<4x128xf32>,
    } else {
    }
    return
  }
  func.func @transform_0(%arg0: i32, %arg1: i32) -> (i32, i32) {
    %c0_i32 = arith.constant 0 : i32
    %c0_i32_0 = arith.constant 0 : i32
    return %c0_i32, %arg1 : i32, i32
  }
  func.func @transform_1(%arg0: i32, %arg1: i32) -> (i32, i32) {
    %c0_i32 = arith.constant 0 : i32
    %c0_i32_0 = arith.constant 0 : i32
    return %c0_i32, %arg1 : i32, i32
  }
  func.func @transform_2(%arg0: i32, %arg1: i32) -> (i32, i32) {
    %c0_i32 = arith.constant 0 : i32
    %c0_i32_0 = arith.constant 0 : i32
    return %c0_i32, %arg1 : i32, i32
  }
  func.func @transform_3(%arg0: i32, %arg1: i32) -> (i32, i32) {
    %c0_i32 = arith.constant 0 : i32
    %c0_i32_0 = arith.constant 0 : i32
    return %c0_i32, %arg1 : i32, i32
  }
  func.func @transform_4(%arg0: i32, %arg1: i32) -> (i32, i32) {
    %c0_i32 = arith.constant 0 : i32
    %c0_i32_0 = arith.constant 0 : i32
    %c0_i32_1 = arith.constant 0 : i32
    return %c0_i32, %c0_i32_0 : i32, i32
  }
  func.func @transform_5(%arg0: i32, %arg1: i32) -> (i32, i32) {
    %c0_i32 = arith.constant 0 : i32
    %c0_i32_0 = arith.constant 0 : i32
    %c0_i32_1 = arith.constant 0 : i32
    return %c0_i32, %c0_i32_0 : i32, i32
  }
  func.func @transform_6(%arg0: i32, %arg1: i32) -> (i32, i32) {
    %c0_i32 = arith.constant 0 : i32
    %c0_i32_0 = arith.constant 0 : i32
    %c0_i32_1 = arith.constant 0 : i32
    return %c0_i32, %c0_i32_0 : i32, i32
  }
  func.func @transform_7(%arg0: i32, %arg1: i32) -> (i32, i32) {
    %c0_i32 = arith.constant 0 : i32
    %c0_i32_0 = arith.constant 0 : i32
    %c0_i32_1 = arith.constant 0 : i32
    return %c0_i32, %c0_i32_0 : i32, i32
  }
  func.func @transform_8(%arg0: i32, %arg1: i32) -> (i32, i32) {
    %c0_i32 = arith.constant 0 : i32
    %c0_i32_0 = arith.constant 0 : i32
    return %c0_i32, %arg0 : i32, i32
  }
}

module attributes {stable_mosaic.version = 11 : i64} {
  func.func @_s4_conv_kernel(%arg0: i32, %arg1: i32, %arg2: i32, %arg3: memref<1x1x1x256xf32, #tpu.memory_space<vmem>>, %arg4: memref<1x2x128xf32, #tpu.memory_space<vmem>>, %arg5: memref<1x1x128xf32, #tpu.memory_space<vmem>>, %arg6: memref<1x2x128xf32, #tpu.memory_space<vmem>>, %arg7: memref<2x128xf32, #tpu.memory_space<vmem>>) attributes {dimension_semantics = [#tpu.dimension_semantics<parallel>, #tpu.dimension_semantics<parallel>, #tpu.dimension_semantics<arbitrary>], iteration_bounds = array<i64: 4, 2, 2>, scalar_prefetch = 0 : i64, scratch_operands = 1 : i64, tpu.core_type = #tpu.core_type<tc>, window_params = [{transform_indices = @transform_0, window_bounds = array<i64: 1, 1, 1, 256>}, {transform_indices = @transform_1, window_bounds = array<i64: 1, 2, 128>}, {transform_indices = @transform_2, window_bounds = array<i64: 1, 1, 128>}, {transform_indices = @transform_3, window_bounds = array<i64: 1, 2, 128>}]} {
    %c0_i32 = arith.constant 0 : i32
    %0 = arith.cmpi eq, %arg2, %c0_i32 : i32
    %1 = arith.extui %0 : i1 to i32
    %c0_i32_0 = arith.constant 0 : i32
    %2 = arith.cmpi ne, %1, %c0_i32_0 : i32
    scf.if %2 {
      %cst = arith.constant 0.000000e+00 : f32
      %9 = vector.broadcast %cst : f32 to vector<2x128xf32>
      %c0 = arith.constant 0 : index
      %c0_3 = arith.constant 0 : index
      %10 = vector.load %arg7[%c0, %c0_3] : memref<2x128xf32, #tpu.memory_space<vmem>>, vector<2x128xf32>
      tpu.vector_store %arg7[%c0, %c0_3], %9 {strides = array<i32>} : memref<2x128xf32, #tpu.memory_space<vmem>>, vector<2x128xf32>,
    } else {
    }
    %3 = arith.cmpi sle, %arg2, %arg1 : i32
    %4 = arith.extui %3 : i1 to i32
    %c0_i32_1 = arith.constant 0 : i32
    %5 = arith.cmpi ne, %4, %c0_i32_1 : i32
    scf.if %5 {
      %c0 = arith.constant 0 : index
      %c0_3 = arith.constant 0 : index
      %c0_4 = arith.constant 0 : index
      %c0_5 = arith.constant 0 : index
      %9 = vector.load %arg3[%c0, %c0_3, %c0_4, %c0_5] : memref<1x1x1x256xf32, #tpu.memory_space<vmem>>, vector<1x1x1x256xf32>
      %10 = vector.shape_cast %9 : vector<1x1x1x256xf32> to vector<1x256xf32>
      %11 = vector.shape_cast %10 : vector<1x256xf32> to vector<1x256xf32>
      %12 = vector.broadcast %11 : vector<1x256xf32> to vector<128x256xf32>
      %c128_i32 = arith.constant 128 : i32
      %13 = tpu.dynamic_rotate %12 by %c128_i32 dim 1 {stride = 1 : si32, stride_dimension = 0 : si32} : vector<128x256xf32>, i32 -> vector<128x256xf32>
      %14 = vector.extract_strided_slice %13 {offsets = [0, 0], sizes = [128, 128], strides = [1, 1]} : vector<128x256xf32> to vector<128x128xf32>
      %c0_6 = arith.constant 0 : index
      %c0_7 = arith.constant 0 : index
      %c0_8 = arith.constant 0 : index
      %15 = vector.load %arg4[%c0_6, %c0_7, %c0_8] : memref<1x2x128xf32, #tpu.memory_space<vmem>>, vector<1x2x128xf32>
      %16 = vector.shape_cast %15 : vector<1x2x128xf32> to vector<2x128xf32>
      %c0_9 = arith.constant 0 : index
      %c0_10 = arith.constant 0 : index
      %17 = vector.load %arg7[%c0_9, %c0_10] : memref<2x128xf32, #tpu.memory_space<vmem>>, vector<2x128xf32>
      %18 = arith.truncf %16 : vector<2x128xf32> to vector<2x128xbf16>
      %19 = arith.truncf %14 : vector<128x128xf32> to vector<128x128xbf16>
      %cst = arith.constant dense<0.000000e+00> : vector<2x128xf32>
      %20 = tpu.matmul %18, %19, %cst {dimension_numbers = #tpu.dot_dimension_numbers<[1], [0], [0], [1], [0, 0, 1, 1], [], []>} : vector<2x128xbf16>, vector<128x128xbf16>, vector<2x128xf32> -> vector<2x128xf32>
      %21 = arith.addf %17, %20 : vector<2x128xf32>
      %c0_11 = arith.constant 0 : index
      %c0_12 = arith.constant 0 : index
      %22 = vector.load %arg7[%c0_11, %c0_12] : memref<2x128xf32, #tpu.memory_space<vmem>>, vector<2x128xf32>
      tpu.vector_store %arg7[%c0_11, %c0_12], %21 {strides = array<i32>} : memref<2x128xf32, #tpu.memory_space<vmem>>, vector<2x128xf32>,
    } else {
    }
    %6 = arith.cmpi eq, %arg2, %arg1 : i32
    %7 = arith.extui %6 : i1 to i32
    %c0_i32_2 = arith.constant 0 : i32
    %8 = arith.cmpi ne, %7, %c0_i32_2 : i32
    scf.if %8 {
      %c0 = arith.constant 0 : index
      %c0_3 = arith.constant 0 : index
      %9 = vector.load %arg7[%c0, %c0_3] : memref<2x128xf32, #tpu.memory_space<vmem>>, vector<2x128xf32>
      %c0_4 = arith.constant 0 : index
      %c0_5 = arith.constant 0 : index
      %c0_6 = arith.constant 0 : index
      %10 = vector.load %arg5[%c0_4, %c0_5, %c0_6] : memref<1x1x128xf32, #tpu.memory_space<vmem>>, vector<1x1x1xf32>
      %11 = vector.extract %10[0, 0, 0] : f32 from vector<1x1x1xf32>
      %c0_7 = arith.constant 0 : index
      %c0_8 = arith.constant 0 : index
      %c0_9 = arith.constant 0 : index
      %12 = vector.load %arg4[%c0_7, %c0_8, %c0_9] : memref<1x2x128xf32, #tpu.memory_space<vmem>>, vector<1x2x128xf32>
      %13 = vector.shape_cast %12 : vector<1x2x128xf32> to vector<2x128xf32>
      %14 = vector.broadcast %11 : f32 to vector<2x128xf32>
      %15 = arith.mulf %14, %13 : vector<2x128xf32>
      %16 = arith.addf %9, %15 : vector<2x128xf32>
      %c0_10 = arith.constant 0 : index
      %c0_11 = arith.constant 0 : index
      %c0_12 = arith.constant 0 : index
      %17 = vector.load %arg6[%c0_10, %c0_11, %c0_12] : memref<1x2x128xf32, #tpu.memory_space<vmem>>, vector<1x2x128xf32>
      %18 = vector.shape_cast %17 : vector<1x2x128xf32> to vector<2x128xf32>
      %19 = vector.shape_cast %16 : vector<2x128xf32> to vector<1x2x128xf32>
      tpu.vector_store %arg6[%c0_10, %c0_11, %c0_12], %19 {strides = array<i32>} : memref<1x2x128xf32, #tpu.memory_space<vmem>>, vector<1x2x128xf32>,
    } else {
    }
    return
  }
  func.func @transform_0(%arg0: i32, %arg1: i32, %arg2: i32) -> (i32, i32, i32, i32) {
    %0 = arith.subi %arg1, %arg2 : i32
    %c1_i32 = arith.constant 1 : i32
    %1 = arith.addi %0, %c1_i32 : i32
    %c0_i32 = arith.constant 0 : i32
    %2 = arith.maxsi %1, %c0_i32 : i32
    %c0_i32_0 = arith.constant 0 : i32
    %c0_i32_1 = arith.constant 0 : i32
    %c0_i32_2 = arith.constant 0 : i32
    return %arg0, %2, %c0_i32_0, %c0_i32_1 : i32, i32, i32, i32
  }
  func.func @transform_1(%arg0: i32, %arg1: i32, %arg2: i32) -> (i32, i32, i32) {
    %c0_i32 = arith.constant 0 : i32
    %c0_i32_0 = arith.constant 0 : i32
    return %arg0, %c0_i32, %arg2 : i32, i32, i32
  }
  func.func @transform_2(%arg0: i32, %arg1: i32, %arg2: i32) -> (i32, i32, i32) {
    %c0_i32 = arith.constant 0 : i32
    %c0_i32_0 = arith.constant 0 : i32
    %c0_i32_1 = arith.constant 0 : i32
    return %arg0, %c0_i32, %c0_i32_0 : i32, i32, i32
  }
  func.func @transform_3(%arg0: i32, %arg1: i32, %arg2: i32) -> (i32, i32, i32) {
    %c0_i32 = arith.constant 0 : i32
    %c0_i32_0 = arith.constant 0 : i32
    return %arg0, %c0_i32, %arg1 : i32, i32, i32
  }
}

</mosaic_0001>

<bundles_post_ra>
// kernel: custom-call.6
= control target key start
LH: loop header
LB: loop body
LE: loop exit
PB: predicated region body
PF: predicated region fallthrough
CT: control target
= control target key end

     0   :  { %2 = vsyncpa [#allocation0], 0  ;;  %s55_s0 = inlined_call_operand.hbm [shape: c64[8], index: 0, kind: input, shape index: {}]   ;;  %s56_s1 = inlined_call_operand.vmem [shape: f32[8], index: 1, kind: output, shape index: {}]  }
   0x1   :  { %s4_s8 = sshll.u32 %s55_s0, 4  ;;  %s6_s11 = sshll.u32 %s56_s1, 4  ;;  %s5_s8 = int_to_ptr.hbm [resolvable:$true] %s4_s8  ;;  %s7_s11 = int_to_ptr.vmem [resolvable:$true] %s6_s11 }
   0x2   :  { %9 = dma.hbm_to_vmem [thread:$0]  %s5_s8, 16, %s7_s11, [#allocation0] }
   0x3   :  { %37 = dma.done.wait [#allocation0], 16  }
   0x4   :  { %38 = vsyncadd [#allocation0], 4294967280 }
   0x5   :  { %12 = vsyncpa [#allocation0], 1 }

// kernel: custom-call.3
= control target key start
LH: loop header
LB: loop body
LE: loop exit
PB: predicated region body
PF: predicated region fallthrough
CT: control target
= control target key end

     0   :  { %s56_s0 = inlined_call_operand.hbm [shape: c64[1,8], index: 0, kind: input, shape index: {}]   ;;  %s57_s1 = inlined_call_operand.vmem [shape: f32[1,8], index: 1, kind: output, shape index: {}]  }
   0x1   :  { %s2_s8 = scalar_lea.hbm %s56_s0, 1 }
   0x2   :  { %3 = vsyncpa [#allocation0], 0  ;;  %s5_s9 = sshll.u32 %s2_s8, 4  ;;  %s7_s12 = sshll.u32 %s57_s1, 4  ;;  %s6_s9 = int_to_ptr.hbm [resolvable:$true] %s5_s9  ;;  %s8_s12 = int_to_ptr.vmem [resolvable:$true] %s7_s12 }
   0x3   :  { %10 = dma.hbm_to_vmem [thread:$0]  %s6_s9, 16, %s8_s12, [#allocation0] }
   0x4   :  { %38 = dma.done.wait [#allocation0], 16  }
   0x5   :  { %39 = vsyncadd [#allocation0], 4294967280 }
   0x6   :  { %13 = vsyncpa [#allocation0], 1 }

// kernel: custom-call.7
= control target key start
LH: loop header
LB: loop body
LE: loop exit
PB: predicated region body
PF: predicated region fallthrough
CT: control target
= control target key end

     0   :  { %s56_s0 = inlined_call_operand.hbm [shape: c64[8], index: 0, kind: input, shape index: {}]   ;;  %s57_s1 = inlined_call_operand.vmem [shape: f32[8], index: 1, kind: output, shape index: {}]  }
   0x1   :  { %s2_s8 = scalar_lea.hbm %s56_s0, 1 }
   0x2   :  { %3 = vsyncpa [#allocation0], 0  ;;  %s5_s9 = sshll.u32 %s2_s8, 4  ;;  %s7_s12 = sshll.u32 %s57_s1, 4  ;;  %s6_s9 = int_to_ptr.hbm [resolvable:$true] %s5_s9  ;;  %s8_s12 = int_to_ptr.vmem [resolvable:$true] %s7_s12 }
   0x3   :  { %10 = dma.hbm_to_vmem [thread:$0]  %s6_s9, 16, %s8_s12, [#allocation0] }
   0x4   :  { %38 = dma.done.wait [#allocation0], 16  }
   0x5   :  { %39 = vsyncadd [#allocation0], 4294967280 }
   0x6   :  { %13 = vsyncpa [#allocation0], 1 }

// kernel: custom-call.2
= control target key start
LH: loop header
LB: loop body
LE: loop exit
PB: predicated region body
PF: predicated region fallthrough
CT: control target
= control target key end

     0   :  { %2 = vsyncpa [#allocation0], 0  ;;  %s55_s0 = inlined_call_operand.hbm [shape: c64[1,8], index: 0, kind: input, shape index: {}]   ;;  %s56_s1 = inlined_call_operand.vmem [shape: f32[1,8], index: 1, kind: output, shape index: {}]  }
   0x1   :  { %s4_s8 = sshll.u32 %s55_s0, 4  ;;  %s6_s11 = sshll.u32 %s56_s1, 4  ;;  %s5_s8 = int_to_ptr.hbm [resolvable:$true] %s4_s8  ;;  %s7_s11 = int_to_ptr.vmem [resolvable:$true] %s6_s11 }
   0x2   :  { %9 = dma.hbm_to_vmem [thread:$0]  %s5_s8, 16, %s7_s11, [#allocation0] }
   0x3   :  { %37 = dma.done.wait [#allocation0], 16  }
   0x4   :  { %38 = vsyncadd [#allocation0], 4294967280 }
   0x5   :  { %12 = vsyncpa [#allocation0], 1 }

// kernel: custom-call.4
= control target key start
LH: loop header
LB: loop body
LE: loop exit
PB: predicated region body
PF: predicated region fallthrough
CT: control target
= control target key end

     0   :  { %2 = vsyncpa [#allocation0], 0  ;;  %s55_s0 = inlined_call_operand.hbm [shape: c64[8,4], index: 0, kind: input, shape index: {}]   ;;  %s56_s1 = inlined_call_operand.vmem [shape: f32[8,4], index: 1, kind: output, shape index: {}]  }
   0x1   :  { %s4_s8 = sshll.u32 %s55_s0, 4  ;;  %s6_s11 = sshll.u32 %s56_s1, 4  ;;  %s5_s8 = int_to_ptr.hbm [resolvable:$true] %s4_s8  ;;  %s7_s11 = int_to_ptr.vmem [resolvable:$true] %s6_s11 }
   0x2   :  { %9 = dma.hbm_to_vmem [thread:$0]  %s5_s8, 64, %s7_s11, [#allocation0] }
   0x3   :  { %37 = dma.done.wait [#allocation0], 64  }
   0x4   :  { %38 = vsyncadd [#allocation0], 4294967232 }
   0x5   :  { %12 = vsyncpa [#allocation0], 1 }

// kernel: custom-call.5
= control target key start
LH: loop header
LB: loop body
LE: loop exit
PB: predicated region body
PF: predicated region fallthrough
CT: control target
= control target key end

     0   :  { %s56_s0 = inlined_call_operand.hbm [shape: c64[8,4], index: 0, kind: input, shape index: {}]   ;;  %s57_s1 = inlined_call_operand.vmem [shape: f32[8,4], index: 1, kind: output, shape index: {}]  }
   0x1   :  { %s2_s8 = scalar_lea.hbm %s56_s0, 4 }
   0x2   :  { %3 = vsyncpa [#allocation0], 0  ;;  %s5_s9 = sshll.u32 %s2_s8, 4  ;;  %s7_s12 = sshll.u32 %s57_s1, 4  ;;  %s6_s9 = int_to_ptr.hbm [resolvable:$true] %s5_s9  ;;  %s8_s12 = int_to_ptr.vmem [resolvable:$true] %s7_s12 }
   0x3   :  { %10 = dma.hbm_to_vmem [thread:$0]  %s6_s9, 64, %s8_s12, [#allocation0] }
   0x4   :  { %38 = dma.done.wait [#allocation0], 64  }
   0x5   :  { %39 = vsyncadd [#allocation0], 4294967232 }
   0x6   :  { %13 = vsyncpa [#allocation0], 1 }

// kernel: s4_convolutional_forward.3
= control target key start
LH: loop header
LB: loop body
LE: loop exit
PB: predicated region body
PF: predicated region fallthrough
CT: control target
= control target key end

     0   :  { %s902_s12 = smov 0   ;;  %s904_s13 = smov 0   ;;  %s1047_s0 = inlined_call_operand.vmem [shape: f32[4,3,1,256], index: 0, kind: input, shape index: {}]   ;;  %s1048_s1 = inlined_call_operand.vmem [shape: f32[4,2,256], index: 1, kind: input, shape index: {}]   ;;  %s1049_s2 = inlined_call_operand.vmem [shape: f32[4,1,128], index: 2, kind: input, shape index: {}]   ;;  %s1050_s3 = inlined_call_operand.vmem [shape: f32[4,2,256], index: 3, kind: output, shape index: {}]  }
   0x1   :  { %s906_s14 = smov 0   ;;  %s908_s15 = smov 0  }
   0x2   :  { %s910_s16 = smov 0   ;;  %s912_s17 = smov 0  }
   0x3   :  { %s914_s18 = smov 0  }
   0x4 LB: > { %1052 = sst [smem:[#allocation3_spill]] %s859_s17  ;;  %s25_s19 = sadd.s32 1, %s851_s15  ;;  %s863_s18 = sphi %s914_s18, %s13_s18   ;;  %s859_s17 = sphi %s912_s17, %s1064_s17   ;;  %s855_s16 = sphi %s910_s16, %s1063_s16   ;;  %s851_s15 = sphi %s908_s15, %s1062_s15   ;;  %s847_s14 = sphi %s906_s14, %s1056_s14   ;;  %s843_s13 = sphi %s904_s13, %s1061_s13   ;;  %s839_s12 = sphi %s902_s12, %s1060_s12  }
   0x5   : > { %p26_p0 = scmp.ge.s32.totalorder %s25_s19, 2  ;;  %s28_s20 = sadd.s32 1, %s855_s16 }
   0x6   : > { %p635_p1 = scmp.ge.s32.totalorder %s863_s18, 1  ;;  %p202_p2 = scmp.lt.s32.totalorder %s863_s18, 17 }
   0x7   : > { %s1066_s19 = smov (%p26_p0, %s25_s19), 0  ;;  %s1068_s20 = smov (!%p26_p0, %s28_s20), %s855_s16 }
   0x8   : > { %1053 = sst [smem:[#allocation4_spill]] %s1066_s19  ;;  %p203_p3 = pnand %p635_p1, %p202_p2 }
   0x9   : > { %p30_p4 = scmp.ge.s32.totalorder %s1068_s20, 2  ;;  %s32_s21 = sadd.s32 1, %s859_s17 }
   0xa   : > { %s247_s22 = ssub.s32 (!%p203_p3), %s843_s13, %s839_s12  ;;  %p251_p6 = scmp.lt.s32.totalorder (!%p203_p3), %s847_s14, 3 }
   0xb   : > { %s1070_s20 = smov (%p30_p4, %s1068_s20), 0  ;;  %s1072_s21 = smov (!%p30_p4, %s32_s21), %s859_s17 }
   0xc   : > { %1054 = sst [smem:[#allocation5_spill]] %s1070_s20  ;;  %p34_p5 = scmp.ge.s32.totalorder %s1072_s21, 4 }
   0xd   : > { %206 = sbr.rel (%p203_p3) target bundleno = 407 (0x197), region = 32  ;;  %s248_s23 = sadd.s32 (!%p203_p3), 1, %s247_s22 }
   0xe   : > { %s1074_s21 = smov (%p34_p5, %s1072_s21), 0  ;;  %p265_p7 = scmp.lt.s32.totalorder (!%p203_p3), %s839_s12, 1 }
   0xf   : > { %1055 = sst [smem:[#allocation6_spill]] %s1074_s21  ;;  %p249_p8 = scmp.gt.s32.totalorder (!%p203_p3), %s248_s23, 0 }
  0x10   : > { %p636_p9 = scmp.lt.s32.totalorder (!%p203_p3), %s248_s23, 2  ;;  %p276_p10 = scmp.lt.s32.totalorder (!%p203_p3), %s843_s13, 1 }
  0x11   : > { %p646_p11 = scmp.ne.s32.totalorder (!%p203_p3), %s839_s12, 0 }
  0x12   : > { %s1076_s14 = smov (!%p251_p6, %s847_s14), 3  ;;  %s1078_s23 = smov (!%p249_p8, %s248_s23), 0 }
  0x13   : > { %s653_s24 = smul.u32 6, %s1076_s14  ;;  %s642_s25 = sshll.u32 %s1076_s14, 1 }
  0x14   : > { %s1080_s23 = smov (!%p636_p9, %s1078_s23), 2  ;;  %s273_s30 = scalar_lea.vmem %s1049_s2, %s1076_s14 }
  0x15   : > { %s266_s26 = scalar_select %p265_p7, %s839_s12, 1 }
  0x16   : > { %s641_s27 = sshll.u32 %s1080_s23, 1 }
  0x17   : > { %s257_s4 = sadd.s32 %s653_s24, %s641_s27  ;;  %s268_s5 = sadd.s32 %s642_s25, %s266_s26 }
  0x18   : > { %s258_s8 = scalar_lea.vmem %s1047_s0, %s257_s4  ;;  %s643_s9 = sshll.u32 %s268_s5, 1 }
  0x19   : > { %s966_s22 = scalar_lea.vmem %s1048_s1, %s643_s9 }
  0x1a   : > { %s277_s21 = scalar_select %p276_p10, %s843_s13, 1 }
  0x1b   : > { %285 = sbr.rel (%p646_p11) target bundleno = 34 (0x22), region = 36 }
  0x1c   : > { %s279_s20 = sadd.s32 %s642_s25, %s277_s21 }
  0x1d   : > { %s645_s23 = sshll.u32 %s279_s20, 1 }
  0x1e   : > { %s973_s28 = scalar_lea.vmem %s1050_s3, %s645_s23 }
  0x20   : > { %v865_v0 = vmov 0.0  }
  0x21   : > { %286 = vst [vmem:[#allocation2] sm:$0x3] %v865_v0 }
  0x22 PF: > { %p647_p12 = scmp.gt.s32.totalorder %s839_s12, %s843_s13 }
  0x23   : > { %s866_s20 = smov (!%p647_p12), 352   ;;  %s867_s21 = smov (!%p647_p12), 368  }
  0x24   : > { %290 = sbr.rel (%p647_p12) target bundleno = 343 (0x157), region = 40  ;;  %s868_s17 = smov (!%p647_p12), 336  }
  0x25   : > { %s869_s19 = smov (!%p647_p12), 360   ;;  %s870_s24 = smov (!%p647_p12), 376  }
  0x26   : > { %s871_s25 = smov (!%p647_p12), 344   ;;  %s872_s26 = smov (!%p647_p12), 328  }
  0x27   : > { %s873_s27 = smov (!%p647_p12), 320   ;;  %s874_s29 = smov (!%p647_p12), 304  }
  0x28   : > { %s875_s4 = smov (!%p647_p12), 288   ;;  %s876_s5 = smov (!%p647_p12), 312  }
  0x29   : > { %v291_v1 = vld [vmem:[%s258_s8] sm:$0x3]  ;;  %s877_s6 = smov 296   ;;  %s878_s7 = smov 280   ;;  %v303_v6 = vlaneseq }
  0x2a   : > { %v293_v2 = vperm.slane %v291_v1, 0  ;;  %v294_v3 = vperm.slane %v291_v1, 1  ;;  %s879_s8 = smov 272   ;;  %s880_s9 = smov 256  }
  0x2b   : > { %s881_s10 = smov 264   ;;  %v978_v9 = vshrl.u32 %v303_v6, 7  ;;  %v980_v11 = vand.u32 127, %v303_v6 }
  0x2c   : > { %v739_v4 = vpack.i.bf16 %v294_v3, %v293_v2 }
  0x2d   : > { %v460_v12 = vadd.s32 112, %v978_v9  ;;  %v471_v13 = vadd.s32 120, %v978_v9  ;;  %v438_v14 = vadd.s32 96, %v978_v9  ;;  %v449_v15 = vadd.s32 104, %v978_v9 }
  0x2e   : > { %740 = vrot.lane.b32.xlu1 %v739_v4, %s866_s20  ;;  %730 = vrot.lane.b32.xlu0 %v739_v4, %s867_s21  ;;  %v416_v20 = vadd.s32 80, %v978_v9  ;;  %v427_v21 = vadd.s32 88, %v978_v9  ;;  %v394_v37 = vadd.s32 64, %v978_v9  ;;  %v405_v38 = vadd.s32 72, %v978_v9 }
  0x2f   : > { %750 = vrot.lane.b32.xlu2 %v739_v4, %s868_s17  ;;  %vm461_vm0 = vcmp.lt.s32.totalorder %v980_v11, %v460_v12  ;;  %vm472_vm1 = vcmp.lt.s32.totalorder %v980_v11, %v471_v13  ;;  %vm439_vm2 = vcmp.lt.s32.totalorder %v980_v11, %v438_v14  ;;  %vm450_vm3 = vcmp.lt.s32.totalorder %v980_v11, %v449_v15 }
  0x30   : > { %vm417_vm4 = vcmp.lt.s32.totalorder %v980_v11, %v416_v20  ;;  %vm428_vm5 = vcmp.lt.s32.totalorder %v980_v11, %v427_v21  ;;  %v372_v45 = vadd.s32 48, %v978_v9  ;;  %vm395_vm6 = vcmp.lt.s32.totalorder %v980_v11, %v394_v37 }
  0x31   : > { %vm406_vm7 = vcmp.lt.s32.totalorder %v980_v11, %v405_v38  ;;  %v383_v51 = vadd.s32 56, %v978_v9  ;;  %v350_v55 = vadd.s32 32, %v978_v9  ;;  %v361_v56 = vadd.s32 40, %v978_v9 }
  0x32   : > { %vm373_vm8 = vcmp.lt.s32.totalorder %v980_v11, %v372_v45  ;;  %v339_v12 = vadd.s32 24, %v978_v9  ;;  %vm307_vm14 = vcmp.lt.s32.totalorder %v980_v11, %v978_v9 }
  0x33   : > { %vm384_vm9 = vcmp.lt.s32.totalorder %v980_v11, %v383_v51  ;;  %vm351_vm10 = vcmp.lt.s32.totalorder %v980_v11, %v350_v55  ;;  %vm362_vm11 = vcmp.lt.s32.totalorder %v980_v11, %v361_v56 }
  0x34   : > { %vm340_vm13 = vcmp.lt.s32.totalorder %v980_v11, %v339_v12 }
  0x36   : > { %745 = vrot.lane.b32.xlu1 %v739_v4, %s869_s19  ;;  %735 = vrot.lane.b32.xlu0 %v739_v4, %s870_s24 }
  0x37   : > { %755 = vrot.lane.b32.xlu2 %v739_v4, %s871_s25 }
  0x3e   : > { %765 = vrot.lane.b32.xlu1 %v739_v4, %s872_s26  ;;  %760 = vrot.lane.b32.xlu0 %v739_v4, %s873_s27 }
  0x3f   : > { %770 = vrot.lane.b32.xlu2 %v739_v4, %s874_s29 }
  0x46   : > { %780 = vrot.lane.b32.xlu1 %v739_v4, %s875_s4  ;;  %775 = vrot.lane.b32.xlu0 %v739_v4, %s876_s5 }
  0x47   : > { %785 = vrot.lane.b32.xlu2 %v739_v4, %s877_s6 }
  0x4e   : > { %795 = vrot.lane.b32.xlu1 %v739_v4, %s878_s7  ;;  %790 = vrot.lane.b32.xlu0 %v739_v4, %s879_s8 }
  0x4f   : > { %800 = vrot.lane.b32.xlu2 %v739_v4, %s880_s9 }
  0x56   : > { %805 = vrot.lane.b32.xlu0 %v739_v4, %s881_s10 }
  0x89   : > { %v751_v5 = vpop.permute.xlu2 %750 }
  0x8a   : > { %v753_v26 = vunpack.i.h.bf16 %v751_v5  ;;  %v752_v32 = vunpack.i.l.bf16 %v751_v5 }
  0x8c   : > { %v418_v43 = vsel %vm417_vm4, %v752_v32, %v753_v26 }
  0x91   : > { %v756_v10 = vpop.permute.xlu2 %755 }
  0x92   : > { %v758_v33 = vunpack.i.h.bf16 %v756_v10  ;;  %v757_v34 = vunpack.i.l.bf16 %v756_v10  ;;  %v328_v10 = vadd.s32 16, %v978_v9 }
  0x94   : > { %v429_v44 = vsel %vm428_vm5, %v757_v34, %v758_v33  ;;  %vm329_vm12 = vcmp.lt.s32.totalorder %v980_v11, %v328_v10 }
  0x95   : > { %v482_v50 = vpack.c.bf16 %v429_v44, %v418_v43 }
  0x99   : > { %v771_v27 = vpop.permute.xlu2 %770 }
  0x9a   : > { %v773_v52 = vunpack.i.h.bf16 %v771_v27  ;;  %v772_v53 = vunpack.i.l.bf16 %v771_v27 }
  0x9c   : > { %v374_v0 = vsel %vm373_vm8, %v772_v53, %v773_v52 }
  0xa0   : > { %v741_v7 = vpop.permute.xlu1 %740  ;;  %v731_v8 = vpop.permute.xlu0 %730 }
  0xa1   : > { %v733_v16 = vunpack.i.h.bf16 %v731_v8  ;;  %v732_v17 = vunpack.i.l.bf16 %v731_v8  ;;  %v743_v28 = vunpack.i.h.bf16 %v741_v7  ;;  %v742_v29 = vunpack.i.l.bf16 %v741_v7  ;;  %v786_v54 = vpop.permute.xlu2 %785 }
  0xa2   : > { %v788_v59 = vunpack.i.h.bf16 %v786_v54  ;;  %v787_v60 = vunpack.i.l.bf16 %v786_v54 }
  0xa3   : > { %v462_v30 = vsel %vm461_vm0, %v732_v17, %v733_v16  ;;  %v440_v39 = vsel %vm439_vm2, %v742_v29, %v743_v28 }
  0xa4   : > { %v363_v7 = vsel %vm362_vm11, %v787_v60, %v788_v59 }
  0xa8   : > { %v746_v18 = vpop.permute.xlu1 %745  ;;  %v736_v19 = vpop.permute.xlu0 %735 }
  0xa9   : > { %v748_v22 = vunpack.i.h.bf16 %v746_v18  ;;  %v747_v23 = vunpack.i.l.bf16 %v746_v18  ;;  %v738_v24 = vunpack.i.h.bf16 %v736_v19  ;;  %v737_v25 = vunpack.i.l.bf16 %v736_v19  ;;  %v801_v20 = vpop.permute.xlu2 %800 }
  0xaa   : > { %v802_v26 = vunpack.i.l.bf16 %v801_v20 }
  0xab   : > { %v473_v31 = vsel %vm472_vm1, %v737_v25, %v738_v24  ;;  %v451_v36 = vsel %vm450_vm3, %v747_v23, %v748_v22  ;;  %v317_v24 = vadd.s32 8, %v978_v9  ;;  %v803_v25 = vunpack.i.h.bf16 %v801_v20 }
  0xac   : > { %v484_v35 = vpack.c.bf16 %v473_v31, %v462_v30  ;;  %v483_v42 = vpack.c.bf16 %v451_v36, %v440_v39  ;;  %v474_v31 = vld [vmem:[%s966_s22] sm:$0x3] }
  0xad   : > { %vm318_vm15 = vcmp.lt.s32.totalorder %v980_v11, %v317_v24  ;;  %v308_v30 = vsel %vm307_vm14, %v802_v26, %v803_v25  ;;  %v476_v34 = vpack.c.bf16 %v474_v31, %v474_v31 }
  0xae   : > { %485 = vmatpush.bf16.msra.mxu0 %v484_v35  ;;  %v475_v35 = vld [vmem:[#allocation2] sm:$0x3] }
  0xb0   : > { %v766_v40 = vpop.permute.xlu1 %765  ;;  %v761_v41 = vpop.permute.xlu0 %760 }
  0xb1   : > { %v768_v46 = vunpack.i.h.bf16 %v766_v40  ;;  %v767_v47 = vunpack.i.l.bf16 %v766_v40  ;;  %v763_v48 = vunpack.i.h.bf16 %v761_v41  ;;  %v762_v49 = vunpack.i.l.bf16 %v761_v41 }
  0xb2   : > { %486 = vmatpush.bf16.msra.mxu0 %v483_v42 }
  0xb3   : > { %v396_v57 = vsel %vm395_vm6, %v762_v49, %v763_v48  ;;  %v407_v58 = vsel %vm406_vm7, %v767_v47, %v768_v46 }
  0xb4   : > { %v481_v63 = vpack.c.bf16 %v407_v58, %v396_v57 }
  0xb6   : > { %487 = vmatpush.bf16.msra.mxu0 %v482_v50 }
  0xb8   : > { %v781_v61 = vpop.permute.xlu1 %780  ;;  %v776_v62 = vpop.permute.xlu0 %775 }
  0xb9   : > { %v783_v1 = vunpack.i.h.bf16 %v781_v61  ;;  %v782_v2 = vunpack.i.l.bf16 %v781_v61  ;;  %v778_v3 = vunpack.i.h.bf16 %v776_v62  ;;  %v777_v4 = vunpack.i.l.bf16 %v776_v62 }
  0xba   : > { %488 = vmatpush.bf16.msra.mxu0 %v481_v63 }
  0xbb   : > { %v385_v5 = vsel %vm384_vm9, %v777_v4, %v778_v3  ;;  %v352_v6 = vsel %vm351_vm10, %v782_v2, %v783_v1 }
  0xbc   : > { %v480_v8 = vpack.c.bf16 %v385_v5, %v374_v0  ;;  %v479_v13 = vpack.c.bf16 %v363_v7, %v352_v6 }
  0xbe   : > { %489 = vmatpush.bf16.msra.mxu0 %v480_v8 }
  0xc0   : > { %v796_v14 = vpop.permute.xlu1 %795  ;;  %v791_v15 = vpop.permute.xlu0 %790 }
  0xc1   : > { %v798_v16 = vunpack.i.h.bf16 %v796_v14  ;;  %v797_v17 = vunpack.i.l.bf16 %v796_v14  ;;  %v793_v18 = vunpack.i.h.bf16 %v791_v15  ;;  %v792_v19 = vunpack.i.l.bf16 %v791_v15 }
  0xc2   : > { %490 = vmatpush.bf16.msra.mxu0 %v479_v13 }
  0xc3   : > { %v330_v21 = vsel %vm329_vm12, %v792_v19, %v793_v18  ;;  %v341_v22 = vsel %vm340_vm13, %v797_v17, %v798_v16 }
  0xc4   : > { %v478_v23 = vpack.c.bf16 %v341_v22, %v330_v21 }
  0xc6   : > { %491 = vmatpush.bf16.msra.mxu0 %v478_v23 }
  0xc8   : > { %v806_v27 = vpop.permute.xlu0 %805 }
  0xc9   : > { %v808_v28 = vunpack.i.h.bf16 %v806_v27  ;;  %v807_v29 = vunpack.i.l.bf16 %v806_v27 }
  0xcb   : > { %v319_v32 = vsel %vm318_vm15, %v807_v29, %v808_v28 }
  0xcc   : > { %v477_v33 = vpack.c.bf16 %v319_v32, %v308_v30 }
  0xce   : > { %492 = vmatpush.bf16.msra.mxu0 %v477_v33 }
  0xd1   : > { %493 = vmatmul.bf16.vlgmr.msra.gmra.mxu0 %v476_v34 }
 0x14e   : > { %v494_v36 = vpop.f32.mrf.mxu0 }
 0x14f   : > { %v498_v37 = vadd.f32 %v494_v36, %v475_v35 }
 0x151   : > { %499 = vst [vmem:[#allocation2] sm:$0x3] %v498_v37 }
 0x156   : > { %v496_v38 = vpop.f32.mrf.mxu0 }
 0x157 PF: > { %p648_p13 = scmp.ne.s32.totalorder %s839_s12, %s843_s13 }
 0x159   : > { %503 = sbr.rel (%p648_p13) target bundleno = 407 (0x197), region = 44 }
 0x15e   : > { %v505_v9 = vld [vmem:[%s273_s30] sm:$0x1] }
 0x15f   : > { %654 = vpush %v505_v9  ;;  %v507_v11 = vld [vmem:[%s966_s22] sm:$0x3] }
 0x160   : > { %v504_v39 = vld [vmem:[#allocation2] sm:$0x3] }
 0x190   : > { %s655_s20 = spop %654 }
 0x191   : > { %v508_v40 = vstv %s655_s20 }
 0x192   : > { %v509_v41 = vmul.f32 %v508_v40, %v507_v11 }
 0x194   : > { %v510_v42 = vadd.f32 %v509_v41, %v504_v39 }
 0x196   : > { %511 = vst [vmem:[%s973_s28] sm:$0x3] %v510_v42 }
 0x197 PF: > { %s13_s18 = sadd.s32 1, %s863_s18   ;;  %s1056_s14 = sld [smem:[#allocation3_spill]] }
 0x198   : > { %p10_p0 = scmp.ge.s32.totalorder %s13_s18, 18   ;;  %s1057_s21 = sld [smem:[#allocation4_spill]] }
 0x199   : > { %s1058_s17 = sld [smem:[#allocation5_spill]]  ;;  %s1060_s12 = smov %s851_s15 }
 0x19a   : > { %s1059_s19 = sld [smem:[#allocation6_spill]]  ;;  %s1061_s13 = smov %s855_s16 }
 0x19c   :  { %12 = sbr.rel (!%p10_p0) target bundleno = 4 (0x4), region = 80 }
 0x19e   : > { %s1062_s15 = smov %s1057_s21 }
 0x19f   : > { %s1063_s16 = smov %s1058_s17 }
 0x1a0   : > { %s1064_s17 = smov %s1059_s19 }

// kernel: s4_convolutional_forward.2
= control target key start
LH: loop header
LB: loop body
LE: loop exit
PB: predicated region body
PF: predicated region fallthrough
CT: control target
= control target key end

     0   :  { %s6061_s27 = smov 0   ;;  %s6063_s28 = smov 0   ;;  %s8133_s0 = inlined_call_operand.vmem [shape: f32[1,256], index: 0, kind: input, shape index: {}]   ;;  %s8134_s1 = inlined_call_operand.vmem [shape: f32[1,256], index: 1, kind: input, shape index: {}]   ;;  %s8135_s2 = inlined_call_operand.vmem [shape: f32[1,256], index: 2, kind: input, shape index: {}]   ;;  %s8136_s3 = inlined_call_operand.vmem [shape: f32[1,256], index: 3, kind: input, shape index: {}]   ;;  %s8137_s4 = inlined_call_operand.vmem [shape: f32[8,1], index: 4, kind: input, shape index: {}]   ;;  %s8138_s5 = inlined_call_operand.vmem [shape: f32[8,1], index: 5, kind: input, shape index: {}]   ;;  %s8139_s6 = inlined_call_operand.vmem [shape: f32[10,8], index: 6, kind: input, shape index: {}]   ;;  %s8140_s7 = inlined_call_operand.vmem [shape: f32[10,8], index: 7, kind: input, shape index: {}]   ;;  %s8141_s8 = inlined_call_operand.vmem [shape: f32[4,256], index: 8, kind: output, shape index: {}]  }
   0x1   :  { %s6065_s29 = smov 0   ;;  %s6067_s30 = smov 0  }
   0x2   :  { %s6069_s9 = smov 0  }
   0x3 LB: > { %s27_s10 = sadd.s32 1, %s5998_s29  ;;  %s30_s11 = sadd.s32 1, %s6002_s30  ;;  %s6006_s9 = sphi %s6069_s9, %s18_s9   ;;  %s6002_s30 = sphi %s6067_s30, %s8173_s30   ;;  %s5998_s29 = sphi %s6065_s29, %s8172_s29   ;;  %s5994_s28 = sphi %s6063_s28, %s8171_s28   ;;  %s5990_s27 = sphi %s6061_s27, %s8170_s27  }
   0x4   : > { %p28_p0 = scmp.ge.s32.totalorder %s27_s10, 2  ;;  %p5799_p1 = scmp.ge.s32.totalorder %s6006_s9, 1 }
   0x5   : > { %p296_p2 = scmp.lt.s32.totalorder %s6006_s9, 5 }
   0x6   : > { %s8175_s10 = smov (%p28_p0, %s27_s10), 0  ;;  %s8177_s11 = smov (!%p28_p0, %s30_s11), %s6002_s30 }
   0x7   : > { %p297_p3 = pnand %p5799_p1, %p296_p2  ;;  %p32_p4 = scmp.ge.s32.totalorder %s8177_s11, 2 }
   0x8   : > { %p336_p5 = scmp.lt.s32.totalorder (!%p297_p3), %s5990_s27, 1  ;;  %p348_p6 = scmp.lt.s32.totalorder (!%p297_p3), %s5994_s28, 1 }
   0x9   : > { %s8179_s11 = smov (%p32_p4, %s8177_s11), 0  ;;  %300 = sbr.rel (%p297_p3) target bundleno = 1015 (0x3f7), region = 52 }
   0xa   : > { %s5809_s22 = sshll.u32 (!%p297_p3), %s5990_s27, 7  ;;  %s5810_s23 = sshll.u32 (!%p297_p3), %s5994_s28, 7 }
   0xb   : > { %s608_s25 = scvt.s32.f32 (!%p297_p3), %s5810_s23  ;;  %p5907_p7 = scmp.ne.s32.totalorder (!%p297_p3), %s5990_s27, 0 }
   0xe   : > { %v353_v0 = vld [vmem:[%s8137_s4] sm:$0xff]  ;;  %v6008_v1 = vmov 0   ;;  %s6101_s14 = scalar_select %p336_p5, %s5990_s27, 1  ;;  %vm385_vm0 = vcmask 64512   ;;  %v382_v18 = vld [vmem:[%s8139_s6 + $0x8] sm:$0x3]  ;;  %v552_v20 = vlaneseq  ;;  %v609_v28 = vstv %s608_s25 }
   0xf   : > { %5959 = vset.pattern.permute.xlu0 %v6008_v1  ;;  %s349_s21 = scalar_select %p348_p6, %s5994_s28, 1  ;;  %v364_v2 = vld [vmem:[%s8138_s5] sm:$0xff]  ;;  %v384_v19 = vld [vmem:[%s8140_s7 + $0x8] sm:$0x3] }
  0x10   : > { %359 = vperm.xlu0 %5959, %v353_v0   ;;  %s338_s17 = scalar_lea.vmem %s8133_s0, %s6101_s14  ;;  %s341_s20 = scalar_lea.vmem %s8134_s1, %s6101_s14  ;;  %v381_v15 = vld [vmem:[%s8139_s6] sm:$0xff]  ;;  %v6140_v21 = vshrl.u32 %v552_v20, 7  ;;  %v586_v23 = vand.u32 127, %v552_v20  ;;  %v6013_v20 = vmov 920167782  }
  0x11   : > { %s5800_s24 = sshll.u32 %s349_s21, 2  ;;  %v5960_v4 = vld [vmem:[%s338_s17] ss:$0 sm:$0xff]  ;;  %s344_s13 = scalar_lea.vmem %s8135_s2, %s6101_s14 }
  0x12   : > { %s6119_s12 = scalar_lea.vmem %s8141_s8, %s5800_s24  ;;  %v5961_v5 = vld [vmem:[%s341_s20] ss:$0 sm:$0xff]  ;;  %s589_s24 = scvt.s32.f32 %s5809_s22  ;;  %v568_v22 = vadd.s32 120, %v6140_v21  ;;  %v587_v25 = vcvt.s32.f32 %v586_v23  ;;  %v567_v26 = vadd.s32 112, %v6140_v21  ;;  %v566_v32 = vadd.s32 104, %v6140_v21 }
  0x13   : > { %v383_v17 = vld [vmem:[%s8140_s7] sm:$0xff]  ;;  %s347_s17 = scalar_lea.vmem %s8136_s3, %s6101_s14 }
  0x14   : > { %v584_v24 = vcvt.s32.f32 %v568_v22  ;;  %v6145_v27 = vstv %s589_s24  ;;  %v6148_v30 = vadd.f32 %v609_v28, %v587_v25  ;;  %v583_v31 = vcvt.s32.f32 %v567_v26 }
  0x15   : > { %v582_v35 = vcvt.s32.f32 %v566_v32  ;;  %v6014_v26 = vmov 1326507024  }
  0x16   : > { %v606_v29 = vadd.f32 %v6145_v27, %v584_v24  ;;  %v605_v34 = vadd.f32 %v6145_v27, %v583_v31 }
  0x17   : > { %v604_v38 = vadd.f32 %v6145_v27, %v582_v35 }
  0x18   : > { %370 = vperm.xlu0 %5959, %v364_v2   ;;  %v626_v33 = vmul.f32 %v6148_v30, %v606_v29  ;;  %v625_v37 = vmul.f32 %v6148_v30, %v605_v34 }
  0x19   : > { %v624_v41 = vmul.f32 %v6148_v30, %v604_v38 }
  0x1a   : > { %v642_v36 = vmul.f32 0.00390625, %v626_v33  ;;  %v641_v40 = vmul.f32 0.00390625, %v625_v37 }
  0x1b   : > { %v640_v44 = vmul.f32 0.00390625, %v624_v41 }
  0x1c   : > { %v658_v39 = vfloor.f32 %v642_v36  ;;  %v657_v43 = vfloor.f32 %v641_v40 }
  0x1d   : > { %v656_v47 = vfloor.f32 %v640_v44 }
  0x1e   : > { %v674_v42 = vmul.f32 256.0, %v658_v39  ;;  %v673_v46 = vmul.f32 256.0, %v657_v43 }
  0x1f   : > { %v672_v52 = vmul.f32 256.0, %v656_v47 }
  0x20   : > { %v690_v45 = vsub.f32 %v626_v33, %v674_v42  ;;  %v689_v49 = vsub.f32 %v625_v37, %v673_v46 }
  0x21   : > { %v688_v57 = vsub.f32 %v624_v41, %v672_v52 }
  0x22   : > { %v6158_v48 = vmul.f32 0.024543693, %v690_v45  ;;  %v6161_v51 = vmul.f32 0.024543693, %v689_v49 }
  0x23   : > { %v6164_v61 = vmul.f32 0.024543693, %v688_v57 }
  0x24   : > { %v3020_v50 = vand.u32 2139095040, %v6158_v48  ;;  %v2866_v54 = vand.u32 2139095040, %v6161_v51  ;;  %v2863_v37 = vand.u32 2147483647, %v6161_v51 }
  0x26   : > { %v3021_v53 = vshrl.u32 %v3020_v50, 23  ;;  %v2867_v56 = vshrl.u32 %v2866_v54, 23  ;;  %v6230_v45 = vand.u32 8388607, %v2863_v37 }
  0x28   : > { %v5856_v55 = vadd.s32 4294967169, %v3021_v53  ;;  %v5853_v59 = vadd.s32 4294967169, %v2867_v56 }
  0x2a   : > { %v3027_v58 = vadd.s32 1, %v5856_v55  ;;  %v2873_v60 = vadd.s32 1, %v5853_v59 }
  0x2c   : > { %vm3028_vm1 = vcmp.gt.s32.totalorder %v3027_v58, 0  ;;  %vm2874_vm2 = vcmp.gt.s32.totalorder %v2873_v60, 0 }
  0x2d   : > { %v3029_v62 = vsel %vm3028_vm1, %v3027_v58, 0  ;;  %v2875_v0 = vsel %vm2874_vm2, %v2873_v60, 0 }
  0x2e   : > { %v3031_v63 = vand.u32 31, %v3029_v62  ;;  %v6240_v59 = vshrl.u32 %v2875_v0, 5 }
  0x30   : > { %v6166_v2 = vsub.s32 32, %v3031_v63  ;;  %v3046_v23 = vshll.u32 %v6013_v20, %v3031_v63  ;;  %vm2895_vm11 = vcmp.lt.s32.totalorder %v6240_v59, 1  ;;  %vm2897_vm12 = vcmp.lt.s32.totalorder %v6240_v59, 3 }
  0x31   : > { %vm2898_vm13 = vcmp.lt.s32.totalorder %v6240_v59, 4  ;;  %vm2896_vm15 = vcmp.lt.s32.totalorder %v6240_v59, 2 }
  0x32   : > { %v3044_v22 = vshrl.u32 %v6013_v20, %v6166_v2  ;;  %v3047_v28 = vshrl.u32 %v6014_v26, %v6166_v2 }
  0x34   : > { %v3048_v32 = vor.u32 %v3047_v28, %v3046_v23 }
  0x82   : > { %v360_v3 = vpop.permute.xlu0 %359 }
  0x83   : > { %v362_v6 = vsub.f32 %v5960_v4, %v360_v3  ;;  %v6168_v3 = vand.u32 31, %v2875_v0  ;;  %v2712_v4 = vand.u32 2139095040, %v6164_v61 }
  0x85   : > { %v374_v9 = vmul.f32 %v362_v6, %v362_v6  ;;  %v6221_v41 = vsub.s32 32, %v6168_v3  ;;  %v6234_v50 = vshrl.u32 %v2712_v4, 23 }
  0x8a   : > { %v371_v7 = vpop.permute.xlu0 %370 }
  0x8b   : > { %v373_v8 = vsub.f32 %v5961_v5, %v371_v7  ;;  %v3017_v5 = vand.u32 2147483647, %v6158_v48 }
  0x8d   : > { %v375_v10 = vmul.f32 %v373_v8, %v373_v8 }
  0x8f   : > { %v376_v11 = vadd.f32 %v375_v10, %v374_v9  ;;  %v6175_v9 = vshrl.u32 %v3029_v62, 5  ;;  %v6010_v10 = vmov 683565275  }
  0x90   : > { %v2880_v54 = vshll.u32 %v6010_v10, %v6168_v3 }
  0x91   : > { %5962 = vrcp.f32 %v376_v11  ;;  %v3034_v11 = vshll.u32 %v6010_v10, %v3031_v63  ;;  %vm3049_vm3 = vcmp.lt.s32.totalorder %v6175_v9, 1  ;;  %vm3050_vm4 = vcmp.lt.s32.totalorder %v6175_v9, 2 }
  0x92   : > { %vm3051_vm5 = vcmp.lt.s32.totalorder %v6175_v9, 3  ;;  %vm3052_vm6 = vcmp.lt.s32.totalorder %v6175_v9, 4 }
  0x93   : > { %v3062_v39 = vsel %vm3052_vm6, %v3048_v32, 1326507024 }
  0x97   : > { %v5963_v12 = vpop.eup %5962 }
  0x98   : > { %v378_v13 = vmul.f32 %v5963_v12, %v362_v6  ;;  %v379_v14 = vmul.f32 %v5963_v12, %v373_v8  ;;  %v6009_v6 = vmov 2102212464   ;;  %v3024_v8 = vand.u32 8388607, %v3017_v5 }
  0x99   : > { %v3043_v7 = vshll.u32 %v6009_v6, %v3031_v63  ;;  %v6011_v12 = vmov 2475754826  }
  0x9a   : > { %407 = vmatpush.msra.mxu2 %v378_v13  ;;  %v380_v16 = vsub.f32 0.0, %v379_v14  ;;  %v3037_v14 = vshll.u32 %v6011_v12, %v3031_v63  ;;  %v2881_v55 = vshrl.u32 %v6011_v12, %v6221_v41 }
  0x9b   : > { %5801 = vmatmul.msk.f32.vlgmr.msra.gmra.mxu2 %vm385_vm0, %v381_v15  ;;  %v3045_v31 = vor.u32 %v3044_v22, %v3043_v7  ;;  %v2871_v7 = vor.u32 8388608, %v6230_v45  ;;  %v2879_v45 = vshrl.u32 %v6010_v10, %v6221_v41 }
  0x9c   : > { %461 = vmatpush.msrb.mxu2 %v378_v13  ;;  %436 = vmatpush.msra.mxu3 %v380_v16  ;;  %v3035_v13 = vshrl.u32 %v6011_v12, %v6166_v2 }
  0x9d   : > { %5803 = vmatmul.msk.f32.vlgmr.msra.gmra.mxu3 %vm385_vm0, %v383_v17  ;;  %v3058_v35 = vsel %vm3052_vm6, %v3045_v31, 920167782  ;;  %v3063_v43 = vsel %vm3051_vm5, %v3045_v31, %v3062_v39  ;;  %v2887_v31 = vshrl.u32 %v6009_v6, %v6221_v41 }
  0x9e   : > { %484 = vmatpush.msrb.mxu3 %v380_v16  ;;  %v6189_v24 = vor.u32 %v3035_v13, %v3034_v11  ;;  %v2883_v13 = vshll.u32 %v6011_v12, %v6168_v3 }
  0xa3   : > { %5802 = vmatmul.msk.f32.gmra.mxu2 %vm385_vm0, %v382_v18 }
  0xa5   : > { %5804 = vmatmul.msk.f32.gmra.mxu3 %vm385_vm0, %v384_v19 }
  0xab   : > { %5805 = vmatmul.msk.f32.vlgmr.msrb.gmra.mxu2 %vm385_vm0, %v383_v17 }
  0xad   : > { %5807 = vmatmul.msk.f32.vlgmr.msrb.gmra.mxu3 %vm385_vm0, %v381_v15  ;;  %v6012_v15 = vmov 2131351028  }
  0xae   : > { %v3038_v16 = vshrl.u32 %v6012_v15, %v6166_v2  ;;  %v3040_v17 = vshll.u32 %v6012_v15, %v3031_v63  ;;  %v2884_v0 = vshrl.u32 %v6012_v15, %v6221_v41  ;;  %v2886_v22 = vshll.u32 %v6012_v15, %v6168_v3 }
  0xb0   : > { %v6191_v25 = vor.u32 %v3038_v16, %v3037_v14 }
  0xb2   : > { %v3057_v33 = vsel %vm3049_vm3, %v6189_v24, %v6191_v25 }
  0xb3   : > { %5806 = vmatmul.msk.f32.gmra.mxu2 %vm385_vm0, %v384_v19  ;;  %v3041_v19 = vshrl.u32 %v6009_v6, %v6166_v2 }
  0xb5   : > { %5808 = vmatmul.msk.f32.gmra.mxu3 %vm385_vm0, %v382_v18  ;;  %v3025_v18 = vor.u32 8388608, %v3024_v8  ;;  %v6196_v29 = vor.u32 %v3041_v19, %v3040_v17 }
  0xb7   : > { %v6205_v34 = vshll.u32 %v3025_v18, 8  ;;  %v3061_v36 = vsel %vm3049_vm3, %v6191_v25, %v6196_v29  ;;  %v3059_v38 = vsel %vm3051_vm5, %v6196_v29, %v3058_v35  ;;  %v6245_v18 = vor.u32 %v2881_v55, %v2880_v54 }
  0xb8   : > { %v3060_v42 = vsel %vm3050_vm4, %v3057_v33, %v3059_v38  ;;  %v3064_v46 = vsel %vm3050_vm4, %v3061_v36, %v3063_v43  ;;  %v6270_v55 = vor.u32 %v2884_v0, %v2883_v13  ;;  %v5850_v0 = vadd.s32 4294967169, %v6234_v50 }
  0xb9   : > { %v3066_v40 = vand.u32 65535, %v6205_v34  ;;  %v3067_v44 = vshrl.u32 %v6205_v34, 16  ;;  %v3090_v47 = vand.u32 65535, %v3060_v42  ;;  %v3091_v49 = vshrl.u32 %v3060_v42, 16 }
  0xba   : > { %v3068_v52 = vand.u32 65535, %v3064_v46  ;;  %v3069_v53 = vshrl.u32 %v3064_v46, 16  ;;  %v3054_v46 = vsel %vm3052_vm6, %v6196_v29, 2102212464 }
  0xbb   : > { %v3092_v56 = vmul.u32 %v3090_v47, %v3066_v40  ;;  %v3093_v57 = vmul.u32 %v3091_v49, %v3066_v40  ;;  %v3094_v58 = vmul.u32 %v3090_v47, %v3067_v44  ;;  %v3095_v4 = vmul.u32 %v3091_v49, %v3067_v44 }
  0xbc   : > { %v3070_v60 = vmul.u32 %v3068_v52, %v3066_v40  ;;  %v3071_v62 = vmul.u32 %v3069_v53, %v3066_v40  ;;  %v3072_v63 = vmul.u32 %v3068_v52, %v3067_v44  ;;  %v3073_v14 = vmul.u32 %v3069_v53, %v3067_v44 }
  0xbd   : > { %v3096_v8 = vshll.u32 %v3093_v57, 16  ;;  %v3098_v11 = vshll.u32 %v3094_v58, 16  ;;  %v3097_v33 = vshrl.u32 %v3093_v57, 16  ;;  %v3033_v40 = vshrl.u32 %v6010_v10, %v6166_v2 }
  0xbe   : > { %v3074_v16 = vshll.u32 %v3071_v62, 16  ;;  %v3076_v17 = vshll.u32 %v3072_v63, 16  ;;  %v3075_v36 = vshrl.u32 %v3071_v62, 16  ;;  %v3099_v43 = vshrl.u32 %v3094_v58, 16 }
  0xbf   : > { %vm3100_vm7 = vc.u32 %v3092_v56, %v3096_v8  ;;  %v3102_v19 = vadd.s32 %v3096_v8, %v3092_v56  ;;  %v3077_v47 = vshrl.u32 %v3072_v63, 16  ;;  %v2889_v52 = vshll.u32 %v6009_v6, %v6168_v3 }
  0xc0   : > { %vm3078_vm8 = vc.u32 %v3070_v60, %v3074_v16  ;;  %v3080_v23 = vadd.s32 %v3074_v16, %v3070_v60  ;;  %v3101_v28 = vsel %vm3100_vm7, 1, %v6008_v1  ;;  %v3053_v53 = vsel %vm3049_vm3, %v3033_v40, %v6189_v24 }
  0xc1   : > { %v3079_v32 = vsel %vm3078_vm8, 1, %v6008_v1  ;;  %v3103_v35 = vadd.s32 %v3101_v28, %v3095_v4  ;;  %vm3104_vm9 = vc.u32 %v3102_v19, %v3098_v11  ;;  %v3055_v2 = vsel %vm3051_vm5, %v6191_v25, %v3054_v46 }
  0xc2   : > { %v3081_v38 = vadd.s32 %v3079_v32, %v3073_v14  ;;  %vm3082_vm10 = vc.u32 %v3080_v23, %v3076_v17  ;;  %v3105_v39 = vsel %vm3104_vm9, 1, %v6008_v1  ;;  %v3056_v56 = vsel %vm3050_vm4, %v3053_v53, %v3055_v2 }
  0xc3   : > { %v3083_v42 = vsel %vm3082_vm10, 1, %v6008_v1  ;;  %v3107_v44 = vadd.s32 %v3105_v39, %v3103_v35  ;;  %v6274_v57 = vadd.s32 %v3102_v19, %v3098_v11  ;;  %v2890_v58 = vshrl.u32 %v6013_v20, %v6221_v41 }
  0xc4   : > { %v3085_v49 = vadd.s32 %v3083_v42, %v3081_v38  ;;  %v2888_v62 = vor.u32 %v2887_v31, %v2886_v22  ;;  %v2892_v24 = vshll.u32 %v6013_v20, %v6168_v3  ;;  %v2893_v25 = vshrl.u32 %v6014_v26, %v6221_v41 }
  0xc5   : > { %v3108_v54 = vadd.s32 %v3107_v44, %v3097_v33  ;;  %v3110_v4 = vmul.u32 %v6205_v34, %v3056_v56  ;;  %v2891_v9 = vor.u32 %v2890_v58, %v2889_v52  ;;  %v2903_v3 = vsel %vm2895_vm11, %v6245_v18, %v6270_v55 }
  0xc6   : > { %v3086_v29 = vadd.s32 %v3085_v49, %v3075_v36  ;;  %v2894_v11 = vor.u32 %v2893_v25, %v2892_v24  ;;  %v2907_v14 = vsel %vm2895_vm11, %v6270_v55, %v2888_v62  ;;  %v6311_v28 = vshll.u32 %v2871_v7, 8 }
  0xc7   : > { %v3109_v60 = vadd.s32 %v3108_v54, %v3099_v43  ;;  %v2904_v13 = vsel %vm2898_vm13, %v2891_v9, 920167782  ;;  %v2719_v42 = vadd.s32 1, %v5850_v0  ;;  %v2900_v53 = vsel %vm2898_vm13, %v2888_v62, 2102212464 }
  0xc8   : > { %v6282_v63 = vadd.s32 %v3086_v29, %v3077_v47  ;;  %v2905_v17 = vsel %vm2897_vm12, %v2888_v62, %v2904_v13  ;;  %v2908_v19 = vsel %vm2898_vm13, %v2894_v11, 1326507024  ;;  %v2912_v36 = vand.u32 65535, %v6311_v28 }
  0xc9   : > { %v3113_v8 = vadd.s32 1, %v3109_v60  ;;  %v2906_v22 = vsel %vm2896_vm15, %v2903_v3, %v2905_v17  ;;  %v2909_v23 = vsel %vm2897_vm12, %v2891_v9, %v2908_v19  ;;  %v2913_v50 = vshrl.u32 %v6311_v28, 16 }
  0xca   : > { %vm3112_vm14 = vc.u32 %v6282_v63, %v6274_v57  ;;  %v2910_v32 = vsel %vm2896_vm15, %v2907_v14, %v2909_v23  ;;  %v2936_v33 = vand.u32 65535, %v2906_v22  ;;  %v2937_v35 = vshrl.u32 %v2906_v22, 16 }
  0xcb   : > { %v3114_v34 = vsel %vm3112_vm14, %v3113_v8, %v3109_v60  ;;  %v2914_v38 = vand.u32 65535, %v2910_v32  ;;  %v2915_v39 = vshrl.u32 %v2910_v32, 16  ;;  %vm2720_vm0 = vcmp.gt.s32.totalorder %v2719_v42, 0 }
  0xcc   : > { %v3115_v16 = vadd.s32 %v3114_v34, %v3110_v4  ;;  %v2938_v47 = vmul.u32 %v2936_v33, %v2912_v36  ;;  %v2939_v49 = vmul.u32 %v2937_v35, %v2912_v36  ;;  %v2940_v52 = vmul.u32 %v2936_v33, %v2913_v50 }
  0xcd   : > { %v2916_v7 = vmul.u32 %v2914_v38, %v2912_v36  ;;  %v2917_v43 = vmul.u32 %v2915_v39, %v2912_v36  ;;  %v2918_v44 = vmul.u32 %v2914_v38, %v2913_v50  ;;  %v2919_v2 = vmul.u32 %v2915_v39, %v2913_v50 }
  0xce   : > { %v3116_v31 = vadd.s32 536870912, %v3115_v16  ;;  %v2941_v58 = vmul.u32 %v2937_v35, %v2913_v50  ;;  %v2942_v60 = vshll.u32 %v2939_v49, 16  ;;  %v2944_v25 = vshll.u32 %v2940_v52, 16 }
  0xcf   : > { %v2920_v54 = vshll.u32 %v2917_v43, 16  ;;  %v2922_v56 = vshll.u32 %v2918_v44, 16  ;;  %v2921_v24 = vshrl.u32 %v2917_v43, 16  ;;  %v2923_v34 = vshrl.u32 %v2918_v44, 16 }
  0xd0   : > { %v6317_v40 = vshrl.u32 %v3116_v31, 30  ;;  %vm2946_vm3 = vc.u32 %v2938_v47, %v2942_v60  ;;  %v2948_v11 = vadd.s32 %v2942_v60, %v2938_v47  ;;  %v2943_v19 = vshrl.u32 %v2939_v49, 16 }
  0xd1   : > { %vm2924_vm1 = vc.u32 %v2916_v7, %v2920_v54  ;;  %v2926_v41 = vadd.s32 %v2920_v54, %v2916_v7  ;;  %v2947_v62 = vsel %vm2946_vm3, 1, %v6008_v1  ;;  %v2899_v0 = vsel %vm2895_vm11, %v2879_v45, %v6245_v18 }
  0xd2   : > { %v3118_v46 = vshll.u32 %v6317_v40, 30  ;;  %v2925_v9 = vsel %vm2924_vm1, 1, %v6008_v1  ;;  %v2949_v14 = vadd.s32 %v2947_v62, %v2941_v58  ;;  %vm2950_vm5 = vc.u32 %v2948_v11, %v2944_v25 }
  0xd3   : > { %v2927_v8 = vadd.s32 %v2925_v9, %v2919_v2  ;;  %vm2928_vm4 = vc.u32 %v2926_v41, %v2922_v56  ;;  %v2901_v22 = vsel %vm2897_vm12, %v6270_v55, %v2900_v53  ;;  %v2951_v23 = vsel %vm2950_vm5, 1, %v6008_v1 }
  0xd4   : > { %v3119_v29 = vsub.s32 %v3115_v16, %v3118_v46  ;;  %v2929_v13 = vsel %vm2928_vm4, 1, %v6008_v1  ;;  %v2721_v31 = vsel %vm2720_vm0, %v2719_v42, 0  ;;  %v2945_v35 = vshrl.u32 %v2940_v52, 16 }
  0xd5   : > { %v2931_v17 = vadd.s32 %v2929_v13, %v2927_v8  ;;  %v2953_v36 = vadd.s32 %v2951_v23, %v2949_v14  ;;  %v6335_v50 = vadd.s32 %v2948_v11, %v2944_v25  ;;  %v2709_v38 = vand.u32 2147483647, %v6164_v61 }
  0xd6   : > { %vm3120_vm2 = vcmp.lt.s32.totalorder %v3119_v29, 0  ;;  %v3121_v4 = vsub.s32 0, %v3119_v29  ;;  %v2723_v39 = vand.u32 31, %v2721_v31  ;;  %v2902_v18 = vsel %vm2896_vm15, %v2899_v0, %v2901_v22 }
  0xd7   : > { %v2932_v33 = vadd.s32 %v2931_v17, %v2921_v24  ;;  %v2954_v55 = vadd.s32 %v2953_v36, %v2943_v19  ;;  %v3111_v7 = vadd.s32 %v6274_v57, %v6282_v63  ;;  %v2956_v52 = vmul.u32 %v6311_v28, %v2902_v18 }
  0xd8   : > { %v3122_v3 = vsel %vm3120_vm2, %v3121_v4, %v3119_v29  ;;  %v6344_v43 = vsub.s32 32, %v2723_v39  ;;  %v2716_v59 = vand.u32 8388607, %v2709_v38  ;;  %v6351_v56 = vshrl.u32 %v2721_v31, 5 }
  0xd9   : > { %v3123_v16 = vclz %v3122_v3  ;;  %v6340_v45 = vadd.s32 %v2932_v33, %v2923_v34  ;;  %v2955_v47 = vadd.s32 %v2954_v55, %v2945_v35  ;;  %v2729_v57 = vshll.u32 %v6011_v12, %v2723_v39 }
  0xda   : > { %v2730_v63 = vshrl.u32 %v6012_v15, %v6344_v43  ;;  %v2733_v24 = vshrl.u32 %v6009_v6, %v6344_v43  ;;  %v2717_v25 = vor.u32 8388608, %v2716_v59  ;;  %v2735_v4 = vshll.u32 %v6009_v6, %v2723_v39 }
  0xdb   : > { %v5857_v32 = vadd.s32 4294967294, %v3123_v16  ;;  %vm2958_vm7 = vc.u32 %v6340_v45, %v6335_v50  ;;  %v2959_v54 = vadd.s32 1, %v2955_v47  ;;  %v2736_v9 = vshrl.u32 %v6013_v20, %v6344_v43 }
  0xdc   : > { %v2738_v11 = vshll.u32 %v6013_v20, %v2723_v39  ;;  %v2739_v3 = vshrl.u32 %v6014_v26, %v6344_v43  ;;  %vm2741_vm8 = vcmp.lt.s32.totalorder %v6351_v56, 1  ;;  %v6366_v14 = vor.u32 %v2730_v63, %v2729_v57 }
  0xdd   : > { %vm5858_vm6 = vcmp.lt.s32.totalorder %v5857_v32, 0  ;;  %v2960_v60 = vsel %vm2958_vm7, %v2959_v54, %v2955_v47  ;;  %v2726_v0 = vshll.u32 %v6010_v10, %v2723_v39  ;;  %v2727_v22 = vshrl.u32 %v6011_v12, %v6344_v43 }
  0xde   : > { %v3126_v42 = vsel %vm5858_vm6, 0, %v5857_v32  ;;  %v2961_v41 = vadd.s32 %v2960_v60, %v2956_v52  ;;  %v2740_v17 = vor.u32 %v2739_v3, %v2738_v11  ;;  %vm2744_vm9 = vcmp.lt.s32.totalorder %v6351_v56, 4 }
  0xdf   : > { %v3127_v44 = vsub.s32 32, %v3126_v42  ;;  %v3131_v46 = vsub.s32 4294967266, %v3126_v42  ;;  %v3128_v49 = vshll.u32 %v3119_v29, %v3126_v42  ;;  %v2732_v29 = vshll.u32 %v6012_v15, %v2723_v39 }
  0xe0   : > { %v2962_v34 = vadd.s32 536870912, %v2961_v41  ;;  %v2737_v31 = vor.u32 %v2736_v9, %v2735_v4  ;;  %vm2743_vm10 = vcmp.lt.s32.totalorder %v6351_v56, 3  ;;  %v6375_v32 = vshll.u32 %v2717_v25, 8 }
  0xe1   : > { %v3129_v53 = vshrl.u32 %v3111_v7, %v3127_v44  ;;  %v3132_v2 = vadd.s32 127, %v3131_v46  ;;  %v2734_v16 = vor.u32 %v2733_v24, %v2732_v29  ;;  %vm3019_vm11 = vcmp.lt.s32.totalorder %v6158_v48, 0 }
  0xe2   : > { %v6368_v19 = vshrl.u32 %v2962_v34, 30  ;;  %vm2742_vm12 = vcmp.lt.s32.totalorder %v6351_v56, 2  ;;  %vm6382_vm13 = vcmp.le.f32.partialorder %v3017_v5, 0.7853982  ;;  %v2754_v18 = vsel %vm2744_vm9, %v2740_v17, 1326507024 }
  0xe3   : > { %v3130_v58 = vor.u32 %v3129_v53, %v3128_v49  ;;  %v3133_v28 = vshll.u32 %v3132_v2, 23  ;;  %v2753_v39 = vsel %vm2741_vm8, %v6366_v14, %v2734_v16  ;;  %v2728_v7 = vor.u32 %v2727_v22, %v2726_v0 }
  0xe4   : > { %v2964_v33 = vshll.u32 %v6368_v19, 30  ;;  %v2755_v42 = vsel %vm2743_vm10, %v2737_v31, %v2754_v18  ;;  %v2750_v44 = vsel %vm2744_vm9, %v2737_v31, 920167782  ;;  %v2758_v47 = vand.u32 65535, %v6375_v32 }
  0xe5   : > { %v3134_v8 = vor.u32 4788187, %v3133_v28  ;;  %v3137_v62 = vcvt.s32.f32 %v3130_v58  ;;  %v2756_v46 = vsel %vm2742_vm12, %v2753_v39, %v2755_v42  ;;  %v6408_v59 = vshrl.u32 %v6375_v32, 16 }
  0xe6   : > { %v6391_v55 = vsub.s32 %v2961_v41, %v2964_v33  ;;  %v2760_v2 = vand.u32 65535, %v2756_v46  ;;  %v2761_v54 = vshrl.u32 %v2756_v46, 16  ;;  %v2725_v63 = vshrl.u32 %v6010_v10, %v6344_v43 }
  0xe7   : > { %v3135_v13 = vand.u32 2147483647, %v3134_v8  ;;  %v2749_v29 = vsel %vm2741_vm8, %v2728_v7, %v6366_v14  ;;  %v2751_v58 = vsel %vm2743_vm10, %v2734_v16, %v2750_v44  ;;  %v6419_v41 = vadd.s32 96, %v6140_v21 }
  0xe8   : > { %vm2966_vm14 = vcmp.lt.s32.totalorder %v6391_v55, 0  ;;  %v2967_v52 = vsub.s32 0, %v6391_v55  ;;  %v2957_v25 = vadd.s32 %v6335_v50, %v6340_v45  ;;  %v2762_v4 = vmul.u32 %v2760_v2, %v2758_v47 }
  0xe9   : > { %v3138_v23 = vmul.f32 %v3137_v62, %v3135_v13  ;;  %v6423_v9 = vmul.u32 %v2761_v54, %v2758_v47  ;;  %v6426_v43 = vmul.u32 %v2760_v2, %v6408_v59  ;;  %v6430_v3 = vsel %vm2742_vm12, %v2749_v29, %v2751_v58 }
  0xea   : > { %v2968_v57 = vsel %vm2966_vm14, %v2967_v52, %v6391_v55  ;;  %v6434_v34 = vsel %vm2741_vm8, %v2725_v63, %v2728_v7  ;;  %v6438_v50 = vsel %vm2744_vm9, %v2734_v16, 2102212464  ;;  %v2782_v13 = vand.u32 65535, %v6430_v3 }
  0xeb   : > { %v3139_v36 = vxor.u32 2147483648, %v3138_v23  ;;  %v2969_v24 = vclz %v2968_v57  ;;  %v2766_v45 = vshll.u32 %v6423_v9, 16  ;;  %v3141_v17 = vsub.s32 4, %v6317_v40 }
  0xec   : > { %v2768_v31 = vshll.u32 %v6426_v43, 16  ;;  %v2784_v58 = vmul.u32 %v2782_v13, %v2758_v47  ;;  %vm3160_vm8 = vweird.f32 %v6158_v48  ;;  %vm2865_vm9 = vcmp.lt.s32.totalorder %v6161_v51, 0 }
  0xed   : > { %v3140_v5 = vsel %vm3019_vm11, %v3139_v36, %v3138_v23  ;;  %v5854_v11 = vadd.s32 4294967294, %v2969_v24  ;;  %vm6444_vm0 = vc.u32 %v2762_v4, %v2766_v45  ;;  %v2783_v36 = vshrl.u32 %v6430_v3, 16 }
  0xee   : > { %v3143_v49 = vsel %vm6382_vm13, %v6158_v48, %v3140_v5  ;;  %v3142_v16 = vsel %vm3019_vm11, %v3141_v17, %v6317_v40  ;;  %v2772_v46 = vadd.s32 %v2766_v45, %v2762_v4  ;;  %v6458_v40 = vmul.u32 %v2782_v13, %v6408_v59 }
  0xef   : > { %v3145_v53 = vmul.f32 %v3143_v49, %v3143_v49  ;;  %vm5855_vm15 = vcmp.lt.s32.totalorder %v5854_v11, 0  ;;  %v3144_v42 = vsel %vm6382_vm13, 0, %v3142_v16  ;;  %vm6480_vm13 = vcmp.le.f32.partialorder %v2863_v37, 0.7853982 }
  0xf0   : > { %v2972_v23 = vsel %vm5855_vm15, 0, %v5854_v11  ;;  %v5640_v57 = vadd.s32 3, %v3144_v42  ;;  %vm2774_vm2 = vc.u32 %v2772_v46, %v2768_v31  ;;  %v2790_v48 = vshll.u32 %v6458_v40, 16 }
  0xf1   : > { %v3146_v28 = vmul.f32 -0.001358992, %v3145_v53  ;;  %v3153_v60 = vmul.f32 -0.00019511016, %v3145_v53  ;;  %v2973_v7 = vsub.s32 32, %v2972_v23  ;;  %v2974_v5 = vshll.u32 %v6391_v55, %v2972_v23 }
  0xf2   : > { %v2977_v44 = vsub.s32 4294967266, %v2972_v23  ;;  %v5641_v35 = vand.u32 3, %v5640_v57  ;;  %v2765_v55 = vmul.u32 %v2761_v54, %v6408_v59  ;;  %v2787_v46 = vmul.u32 %v2783_v36, %v6408_v59 }
  0xf3   : > { %v3147_v8 = vadd.f32 0.041655596, %v3146_v28  ;;  %v3154_v62 = vadd.f32 0.008332121, %v3153_v60  ;;  %v2975_v63 = vshrl.u32 %v2957_v25, %v2973_v7  ;;  %v6455_v28 = vmul.u32 %v2783_v36, %v2758_v47 }
  0xf4   : > { %v2978_v29 = vadd.s32 127, %v2977_v44  ;;  %vm5643_vm5 = vcmp.eq.s32.totalorder %v5641_v35, 0  ;;  %vm5646_vm6 = vcmp.eq.s32.totalorder %v5641_v35, 2  ;;  %vm5642_vm7 = vcmp.lt.s32.totalorder %v5641_v35, 2 }
  0xf5   : > { %v3148_v0 = vmul.f32 %v3147_v8, %v3145_v53  ;;  %v3155_v22 = vmul.f32 %v3154_v62, %v3145_v53  ;;  %v3161_v8 = vand.u32 3, %v3144_v42  ;;  %v2976_v62 = vor.u32 %v2975_v63, %v2974_v5 }
  0xf6   : > { %v2979_v11 = vshll.u32 %v2978_v29, 23  ;;  %v2788_v23 = vshll.u32 %v6455_v28, 16  ;;  %v2987_v42 = vsub.s32 4, %v6368_v19  ;;  %v2769_v59 = vshrl.u32 %v6426_v43, 16 }
  0xf7   : > { %v3149_v39 = vadd.f32 -0.4999988, %v3148_v0  ;;  %v3156_v18 = vadd.f32 -0.16666654, %v3155_v22  ;;  %vm3166_vm1 = vcmp.eq.s32.totalorder %v3161_v8, 2  ;;  %vm3162_vm3 = vcmp.lt.s32.totalorder %v3161_v8, 2 }
  0xf8   : > { %vm3163_vm4 = vcmp.eq.s32.totalorder %v3161_v8, 0  ;;  %v2980_v13 = vor.u32 4788187, %v2979_v11  ;;  %v2983_v54 = vcvt.s32.f32 %v2976_v62  ;;  %vm2792_vm11 = vc.u32 %v2784_v58, %v2788_v23 }
  0xf9   : > { %v3150_v52 = vmul.f32 %v3149_v39, %v3145_v53  ;;  %v3157_v2 = vmul.f32 %v3156_v18, %v3145_v53  ;;  %v2771_v53 = vsel %vm6444_vm0, 1, %v6008_v1  ;;  %v2767_v39 = vshrl.u32 %v6423_v9, 16 }
  0xfa   : > { %v2773_v17 = vadd.s32 %v2771_v53, %v2765_v55  ;;  %v2981_v16 = vand.u32 2147483647, %v2980_v13  ;;  %v2747_v9 = vsel %vm2743_vm10, %v6366_v14, %v6438_v50  ;;  %v2988_v36 = vsel %vm2865_vm9, %v2987_v42, %v6368_v19 }
  0xfb   : > { %v3151_v60 = vadd.f32 1.0, %v3150_v52  ;;  %v3158_v24 = vadd.f32 1.0, %v3157_v2  ;;  %v581_v52 = vcvt.s32.f32 %v6419_v41  ;;  %v2794_v2 = vadd.s32 %v2788_v23, %v2784_v58 }
  0xfc   : > { %v2984_v5 = vmul.f32 %v2983_v54, %v2981_v16  ;;  %v2789_v41 = vshrl.u32 %v6455_v28, 16  ;;  %v2791_v43 = vshrl.u32 %v6458_v40, 16  ;;  %v2990_v35 = vsel %vm6480_vm13, 0, %v2988_v36 }
  0xfd   : > { %v3159_v25 = vmul.f32 %v3158_v24, %v3143_v49  ;;  %v3167_v4 = vxor.u32 2147483648, %v3151_v60  ;;  %v2775_v49 = vsel %vm2774_vm2, 1, %v6008_v1  ;;  %vm2796_vm14 = vc.u32 %v2794_v2, %v2790_v48 }
  0xfe   : > { %v2777_v44 = vadd.s32 %v2775_v49, %v2773_v17  ;;  %v2985_v63 = vxor.u32 2147483648, %v2984_v5  ;;  %v2797_v58 = vsel %vm2796_vm14, 1, %v6008_v1  ;;  %v603_v37 = vadd.f32 %v6145_v27, %v581_v52 }
  0xff   : > { %v3164_v47 = vxor.u32 2147483648, %v3159_v25  ;;  %v3168_v3 = vsel %vm3166_vm1, %v3167_v4, %v3159_v25  ;;  %v5648_v45 = vsel %vm5646_vm6, %v3167_v4, %v3159_v25  ;;  %v2748_v62 = vsel %vm2742_vm12, %v6434_v34, %v2747_v9 }
 0x100   : > { %v2778_v29 = vadd.s32 %v2777_v44, %v2767_v39  ;;  %v2986_v14 = vsel %vm2865_vm9, %v2985_v63, %v2984_v5  ;;  %v623_v19 = vmul.f32 %v6148_v30, %v603_v37  ;;  %v6502_v55 = vadd.s32 %v2794_v2, %v2790_v48 }
 0x101   : > { %v3165_v0 = vsel %vm3163_vm4, %v3151_v60, %v3164_v47  ;;  %v5645_v22 = vsel %vm5643_vm5, %v3151_v60, %v3164_v47  ;;  %v2793_v60 = vsel %vm2792_vm11, 1, %v6008_v1  ;;  %v2989_v24 = vsel %vm6480_vm13, %v6161_v51, %v2986_v14 }
 0x102   : > { %v3169_v31 = vsel %vm3162_vm3, %v3165_v0, %v3168_v3  ;;  %v5649_v33 = vsel %vm5642_vm7, %v5645_v22, %v5648_v45  ;;  %v2795_v50 = vadd.s32 %v2793_v60, %v2787_v46  ;;  %v2991_v8 = vmul.f32 %v2989_v24, %v2989_v24 }
 0x103   : > { %v3170_v18 = vsel %vm3160_vm8, nan, %v3169_v31  ;;  %v5650_v7 = vsel %vm3160_vm8, nan, %v5649_v33  ;;  %v6500_v11 = vadd.s32 %v2778_v29, %v2769_v59  ;;  %v564_v47 = vadd.s32 88, %v6140_v21 }
 0x104   : > { %5651 = vmatpush.msra.mxu0 %v3170_v18  ;;  %5671 = vmatpush.msra.mxu1 %v5650_v7  ;;  %v2799_v28 = vadd.s32 %v2797_v58, %v2795_v50  ;;  %v2992_v53 = vmul.f32 -0.001358992, %v2991_v8  ;;  %v2999_v25 = vmul.f32 -0.00019511016, %v2991_v8  ;;  %v639_v40 = vmul.f32 0.00390625, %v623_v19 }
 0x105   : > { %v5485_v54 = vadd.s32 3, %v2990_v35  ;;  %v2802_v17 = vmul.u32 %v6375_v32, %v2748_v62  ;;  %vm2804_vm10 = vc.u32 %v6500_v11, %v6502_v55  ;;  %v580_v49 = vcvt.s32.f32 %v564_v47 }
 0x106   : > { %v2800_v4 = vadd.s32 %v2799_v28, %v2789_v41  ;;  %v2993_v3 = vadd.f32 0.041655596, %v2992_v53  ;;  %v3000_v45 = vadd.f32 0.008332121, %v2999_v25  ;;  %v655_v56 = vfloor.f32 %v639_v40 }
 0x107   : > { %v3007_v39 = vand.u32 3, %v2990_v35  ;;  %v5486_v18 = vand.u32 3, %v5485_v54  ;;  %v602_v32 = vadd.f32 %v6145_v27, %v580_v49  ;;  %vm3006_vm4 = vweird.f32 %v6161_v51 }
 0x108   : > { %v2801_v13 = vadd.s32 %v2800_v4, %v2791_v43  ;;  %v2994_v34 = vmul.f32 %v2993_v3, %v2991_v8  ;;  %v3001_v0 = vmul.f32 %v3000_v45, %v2991_v8  ;;  %v671_v23 = vmul.f32 256.0, %v655_v56 }
 0x109   : > { %vm3012_vm12 = vcmp.eq.s32.totalorder %v3007_v39, 2  ;;  %vm5491_vm15 = vcmp.eq.s32.totalorder %v5486_v18, 2  ;;  %vm3008_vm0 = vcmp.lt.s32.totalorder %v3007_v39, 2  ;;  %v6513_v41 = vmul.f32 %v6148_v30, %v602_v32 }
 0x10a   : > { %v2805_v22 = vadd.s32 1, %v2801_v13  ;;  %v2995_v31 = vadd.f32 -0.4999988, %v2994_v34  ;;  %v3002_v33 = vadd.f32 -0.16666654, %v3001_v0  ;;  %v687_v42 = vsub.f32 %v623_v19, %v671_v23 }
 0x10b   : > { %vm3009_vm1 = vcmp.eq.s32.totalorder %v3007_v39, 0  ;;  %vm5488_vm2 = vcmp.eq.s32.totalorder %v5486_v18, 0  ;;  %vm5487_vm3 = vcmp.lt.s32.totalorder %v5486_v18, 2  ;;  %v638_v28 = vmul.f32 0.00390625, %v6513_v41 }
 0x10c   : > { %v2806_v16 = vsel %vm2804_vm10, %v2805_v22, %v2801_v13  ;;  %v2996_v48 = vmul.f32 %v2995_v31, %v2991_v8  ;;  %v3003_v5 = vmul.f32 %v3002_v33, %v2991_v8  ;;  %v6509_v46 = vmul.f32 0.024543693, %v687_v42 }
 0x10d   : > { %v2807_v7 = vadd.s32 %v2806_v16, %v2802_v17  ;;  %v654_v45 = vfloor.f32 %v638_v28  ;;  %v2803_v17 = vadd.s32 %v6502_v55, %v6500_v11  ;;  %vm2711_vm8 = vcmp.lt.s32.totalorder %v6164_v61, 0 }
 0x10e   : > { %v2997_v52 = vadd.f32 1.0, %v2996_v48  ;;  %v3004_v9 = vadd.f32 1.0, %v3003_v5  ;;  %v2558_v57 = vand.u32 2139095040, %v6509_v46  ;;  %vm6531_vm9 = vcmp.le.f32.partialorder %v2709_v38, 0.7853982 }
 0x10f   : > { %v2808_v44 = vadd.s32 536870912, %v2807_v7  ;;  %v670_v22 = vmul.f32 256.0, %v654_v45 }
 0x110   : > { %v3005_v63 = vmul.f32 %v3004_v9, %v2989_v24  ;;  %v3013_v59 = vxor.u32 2147483648, %v2997_v52  ;;  %v2559_v29 = vshrl.u32 %v2558_v57, 23  ;;  %v2555_v24 = vand.u32 2147483647, %v6509_v46 }
 0x111   : > { %v2809_v2 = vshrl.u32 %v2808_v44, 30  ;;  %v686_v11 = vsub.f32 %v6513_v41, %v670_v22 }
 0x112   : > { %v3010_v60 = vxor.u32 2147483648, %v3005_v63  ;;  %v3014_v14 = vsel %vm3012_vm12, %v3013_v59, %v3005_v63  ;;  %v5493_v50 = vsel %vm5491_vm15, %v3013_v59, %v3005_v63  ;;  %v5847_v37 = vadd.s32 4294967169, %v2559_v29 }
 0x113   : > { %v2810_v36 = vshll.u32 %v2809_v2, 30  ;;  %v2562_v40 = vand.u32 8388607, %v2555_v24  ;;  %v2833_v34 = vsub.s32 4, %v2809_v2 }
 0x114   : > { %v3011_v8 = vsel %vm3009_vm1, %v2997_v52, %v3010_v60  ;;  %v5490_v43 = vsel %vm5488_vm2, %v2997_v52, %v3010_v60  ;;  %v2565_v4 = vadd.s32 1, %v5847_v37 }
 0x115   : > { %v2811_v58 = vsub.s32 %v2807_v7, %v2810_v36  ;;  %v3015_v19 = vsel %vm3008_vm0, %v3011_v8, %v3014_v14  ;;  %v5494_v35 = vsel %vm5487_vm3, %v5490_v43, %v5493_v50  ;;  %v2563_v0 = vor.u32 8388608, %v2562_v40 }
 0x116   : > { %v3016_v53 = vsel %vm3006_vm4, nan, %v3015_v19  ;;  %v5495_v25 = vsel %vm3006_vm4, nan, %v5494_v35  ;;  %vm2566_vm6 = vcmp.gt.s32.totalorder %v2565_v4, 0  ;;  %v2834_v18 = vsel %vm2711_vm8, %v2833_v34, %v2809_v2 }
 0x117   : > { %vm2812_vm5 = vcmp.lt.s32.totalorder %v2811_v58, 0  ;;  %v2813_v62 = vsub.s32 0, %v2811_v58  ;;  %5652 = vmatpush.msra.mxu0 %v3016_v53  ;;  %5672 = vmatpush.msra.mxu1 %v5495_v25  ;;  %v2567_v3 = vsel %vm2566_vm6, %v2565_v4, 0  ;;  %v6526_v7 = vshll.u32 %v2563_v0, 8 }
 0x118   : > { %v2569_v54 = vand.u32 31, %v2567_v3  ;;  %v2836_v57 = vsel %vm6531_vm9, 0, %v2834_v18  ;;  %v6541_v63 = vshrl.u32 %v2567_v3, 5  ;;  %v6546_v36 = vmul.f32 0.024543693, %v686_v11 }
 0x119   : > { %v2814_v47 = vsel %vm2812_vm5, %v2813_v62, %v2811_v58  ;;  %v2604_v59 = vand.u32 65535, %v6526_v7  ;;  %v2605_v41 = vshrl.u32 %v6526_v7, 16  ;;  %v5330_v62 = vadd.s32 3, %v2836_v57 }
 0x11a   : > { %v2815_v51 = vclz %v2814_v47  ;;  %v2570_v33 = vsub.s32 32, %v2569_v54  ;;  %v2572_v5 = vshll.u32 %v6010_v10, %v2569_v54  ;;  %v2575_v44 = vshll.u32 %v6011_v12, %v2569_v54 }
 0x11b   : > { %v2578_v38 = vshll.u32 %v6012_v15, %v2569_v54  ;;  %v2581_v14 = vshll.u32 %v6009_v6, %v2569_v54  ;;  %v2584_v8 = vshll.u32 %v6013_v20, %v2569_v54  ;;  %vm2587_vm11 = vcmp.lt.s32.totalorder %v6541_v63, 1 }
 0x11c   : > { %v5851_v13 = vadd.s32 4294967294, %v2815_v51  ;;  %v2573_v32 = vshrl.u32 %v6011_v12, %v2570_v33  ;;  %v2576_v52 = vshrl.u32 %v6012_v15, %v2570_v33  ;;  %v2579_v60 = vshrl.u32 %v6009_v6, %v2570_v33 }
 0x11d   : > { %v2582_v50 = vshrl.u32 %v6013_v20, %v2570_v33  ;;  %v2585_v43 = vshrl.u32 %v6014_v26, %v2570_v33  ;;  %v2401_v25 = vand.u32 2147483647, %v6546_v36  ;;  %v2404_v4 = vand.u32 2139095040, %v6546_v36 }
 0x11e   : > { %vm5852_vm7 = vcmp.lt.s32.totalorder %v5851_v13, 0  ;;  %v2577_v37 = vor.u32 %v2576_v52, %v2575_v44  ;;  %v2580_v19 = vor.u32 %v2579_v60, %v2578_v38  ;;  %vm2588_vm13 = vcmp.lt.s32.totalorder %v6541_v63, 2 }
 0x11f   : > { %v2818_v56 = vsel %vm5852_vm7, 0, %v5851_v13  ;;  %v2583_v35 = vor.u32 %v2582_v50, %v2581_v14  ;;  %v2586_v53 = vor.u32 %v2585_v43, %v2584_v8  ;;  %vm2589_vm14 = vcmp.lt.s32.totalorder %v6541_v63, 3 }
 0x120   : > { %v2819_v49 = vsub.s32 32, %v2818_v56  ;;  %v2820_v23 = vshll.u32 %v2811_v58, %v2818_v56  ;;  %v2823_v31 = vsub.s32 4294967266, %v2818_v56  ;;  %v2574_v58 = vor.u32 %v2573_v32, %v2572_v5 }
 0x121   : > { %vm2590_vm10 = vcmp.lt.s32.totalorder %v6541_v63, 4  ;;  %v2571_v51 = vshrl.u32 %v6010_v10, %v2570_v33  ;;  %v2599_v45 = vsel %vm2587_vm11, %v2577_v37, %v2580_v19  ;;  %v6566_v54 = vand.u32 3, %v2836_v57 }
 0x122   : > { %v2821_v16 = vshrl.u32 %v2803_v17, %v2819_v49  ;;  %v2824_v39 = vadd.s32 127, %v2823_v31  ;;  %v2595_v40 = vsel %vm2587_vm11, %v2574_v58, %v2577_v37  ;;  %v2596_v3 = vsel %vm2590_vm10, %v2583_v35, 920167782 }
 0x123   : > { %v2597_v17 = vsel %vm2589_vm14, %v2580_v19, %v2596_v3  ;;  %v2600_v56 = vsel %vm2590_vm10, %v2586_v53, 1326507024  ;;  %v2592_v0 = vsel %vm2590_vm10, %v2580_v19, 2102212464  ;;  %v2591_v18 = vsel %vm2587_vm11, %v2571_v51, %v2574_v58 }
 0x124   : > { %v2822_v42 = vor.u32 %v2821_v16, %v2820_v23  ;;  %v2825_v48 = vshll.u32 %v2824_v39, 23  ;;  %v2598_v22 = vsel %vm2588_vm13, %v2595_v40, %v2597_v17  ;;  %v2601_v49 = vsel %vm2589_vm14, %v2583_v35, %v2600_v56 }
 0x125   : > { %v2602_v31 = vsel %vm2588_vm13, %v2599_v45, %v2601_v49  ;;  %v2628_v33 = vand.u32 65535, %v2598_v22  ;;  %v2629_v16 = vshrl.u32 %v2598_v22, 16  ;;  %v6583_v39 = vand.u32 3, %v5330_v62 }
 0x126   : > { %v2826_v9 = vor.u32 4788187, %v2825_v48  ;;  %v2829_v2 = vcvt.s32.f32 %v2822_v42  ;;  %v2606_v11 = vand.u32 65535, %v2602_v31  ;;  %v2607_v55 = vshrl.u32 %v2602_v31, 16 }
 0x127   : > { %v2593_v5 = vsel %vm2589_vm14, %v2577_v37, %v2592_v0  ;;  %v2631_v32 = vmul.u32 %v2629_v16, %v2604_v59  ;;  %v2632_v60 = vmul.u32 %v2628_v33, %v2605_v41  ;;  %vm2858_vm12 = vcmp.eq.s32.totalorder %v6566_v54, 2 }
 0x128   : > { %v2827_v29 = vand.u32 2147483647, %v2826_v9  ;;  %v2608_v44 = vmul.u32 %v2606_v11, %v2604_v59  ;;  %v2609_v52 = vmul.u32 %v2607_v55, %v2604_v59  ;;  %v2610_v9 = vmul.u32 %v2606_v11, %v2605_v41 }
 0x129   : > { %v2611_v14 = vmul.u32 %v2607_v55, %v2605_v41  ;;  %v2633_v8 = vmul.u32 %v2629_v16, %v2605_v41  ;;  %v2634_v35 = vshll.u32 %v2631_v32, 16  ;;  %vm2855_vm15 = vcmp.eq.s32.totalorder %v6566_v54, 0 }
 0x12a   : > { %v2830_v28 = vmul.f32 %v2829_v2, %v2827_v29  ;;  %v2405_v2 = vshrl.u32 %v2404_v4, 23  ;;  %v2630_v29 = vmul.u32 %v2628_v33, %v2604_v59  ;;  %v2612_v50 = vshll.u32 %v2609_v52, 16 }
 0x12b   : > { %v2614_v58 = vshll.u32 %v2610_v9, 16  ;;  %v2613_v19 = vshrl.u32 %v2609_v52, 16  ;;  %v2615_v37 = vshrl.u32 %v2610_v9, 16  ;;  %v2636_v53 = vshll.u32 %v2632_v60, 16 }
 0x12c   : > { %v2831_v47 = vxor.u32 2147483648, %v2830_v28  ;;  %vm2616_vm0 = vc.u32 %v2608_v44, %v2612_v50  ;;  %v2618_v62 = vadd.s32 %v2612_v50, %v2608_v44  ;;  %vm2854_vm1 = vcmp.lt.s32.totalorder %v6566_v54, 2 }
 0x12d   : > { %vm5332_vm2 = vcmp.lt.s32.totalorder %v6583_v39, 2  ;;  %v2617_v59 = vsel %vm2616_vm0, 1, %v6008_v1  ;;  %vm2638_vm3 = vc.u32 %v2630_v29, %v2634_v35  ;;  %v2640_v40 = vadd.s32 %v2634_v35, %v2630_v29 }
 0x12e   : > { %v2832_v13 = vsel %vm2711_vm8, %v2831_v47, %v2830_v28  ;;  %v2619_v41 = vadd.s32 %v2617_v59, %v2611_v14  ;;  %vm2620_vm4 = vc.u32 %v2618_v62, %v2614_v58  ;;  %v2639_v51 = vsel %vm2638_vm3, 1, %v6008_v1 }
 0x12f   : > { %v6573_v34 = vsel %vm6531_vm9, %v6164_v61, %v2832_v13  ;;  %v2621_v13 = vsel %vm2620_vm4, 1, %v6008_v1  ;;  %v2641_v17 = vadd.s32 %v2639_v51, %v2633_v8  ;;  %v2635_v0 = vshrl.u32 %v2631_v32, 16 }
 0x130   : > { %v2837_v23 = vmul.f32 %v6573_v34, %v6573_v34  ;;  %v2623_v56 = vadd.s32 %v2621_v13, %v2619_v41  ;;  %vm2642_vm5 = vc.u32 %v2640_v40, %v2636_v53  ;;  %v5844_v22 = vadd.s32 4294967169, %v2405_v2 }
 0x131   : > { %vm5336_vm6 = vcmp.eq.s32.totalorder %v6583_v39, 2  ;;  %v2643_v33 = vsel %vm2642_vm5, 1, %v6008_v1  ;;  %v2637_v11 = vshrl.u32 %v2632_v60, 16  ;;  %v2594_v44 = vsel %vm2588_vm13, %v2591_v18, %v2593_v5 }
 0x132   : > { %v2838_v42 = vmul.f32 -0.001358992, %v2837_v23  ;;  %v2845_v48 = vmul.f32 -0.00019511016, %v2837_v23  ;;  %v2624_v16 = vadd.s32 %v2623_v56, %v2613_v19  ;;  %v2645_v55 = vadd.s32 %v2643_v33, %v2641_v17 }
 0x133   : > { %v6601_v52 = vadd.s32 %v2640_v40, %v2636_v53  ;;  %vm5333_vm7 = vcmp.eq.s32.totalorder %v6583_v39, 0  ;;  %vm2852_vm9 = vweird.f32 %v6164_v61  ;;  %v2648_v18 = vmul.u32 %v6526_v7, %v2594_v44 }
 0x134   : > { %v2839_v57 = vadd.f32 0.041655596, %v2838_v42  ;;  %v2846_v38 = vadd.f32 0.008332121, %v2845_v48  ;;  %v2411_v42 = vadd.s32 1, %v5844_v22  ;;  %v6604_v32 = vadd.s32 %v2624_v16, %v2615_v37 }
 0x135   : > { %v2646_v9 = vadd.s32 %v2645_v55, %v2635_v0  ;;  %v2408_v5 = vand.u32 8388607, %v2401_v25  ;;  %v563_v54 = vadd.s32 80, %v6140_v21  ;;  %vm6692_vm5 = vcmp.le.f32.partialorder %v2555_v24, 0.7853982 }
 0x136   : > { %v2840_v43 = vmul.f32 %v2839_v57, %v2837_v23  ;;  %v2847_v28 = vmul.f32 %v2846_v38, %v2837_v23  ;;  %vm2412_vm8 = vcmp.gt.s32.totalorder %v2411_v42, 0  ;;  %vm2650_vm11 = vc.u32 %v6604_v32, %v6601_v52 }
 0x137   : > { %v2647_v63 = vadd.s32 %v2646_v9, %v2637_v11  ;;  %v2409_v39 = vor.u32 8388608, %v2408_v5  ;;  %v579_v22 = vcvt.s32.f32 %v563_v54 }
 0x138   : > { %v2841_v4 = vadd.f32 -0.4999988, %v2840_v43  ;;  %v2848_v47 = vadd.f32 -0.16666654, %v2847_v28 }
 0x139   : > { %v2651_v58 = vadd.s32 1, %v2647_v63  ;;  %v601_v44 = vadd.f32 %v6145_v27, %v579_v22 }
 0x13a   : > { %v2842_v3 = vmul.f32 %v2841_v4, %v2837_v23  ;;  %v2849_v45 = vmul.f32 %v2848_v47, %v2837_v23 }
 0x13b   : > { %v2652_v35 = vsel %vm2650_vm11, %v2651_v58, %v2647_v63 }
 0x13c   : > { %v2843_v49 = vadd.f32 1.0, %v2842_v3  ;;  %v2850_v31 = vadd.f32 1.0, %v2849_v45  ;;  %v2653_v53 = vadd.s32 %v2652_v35, %v2648_v18 }
 0x13e   : > { %v2851_v48 = vmul.f32 %v2850_v31, %v6573_v34  ;;  %v2859_v23 = vxor.u32 2147483648, %v2843_v49  ;;  %v2413_v34 = vsel %vm2412_vm8, %v2411_v42, 0  ;;  %v2654_v3 = vadd.s32 536870912, %v2653_v53 }
 0x13f   : > { %v2415_v14 = vand.u32 31, %v2413_v34  ;;  %v6622_v8 = vshrl.u32 %v2413_v34, 5  ;;  %v6640_v31 = vshll.u32 %v2409_v39, 8  ;;  %v2649_v39 = vadd.s32 %v6601_v52, %v6604_v32 }
 0x140   : > { %v2856_v2 = vxor.u32 2147483648, %v2851_v48  ;;  %v2860_v57 = vsel %vm2858_vm12, %v2859_v23, %v2851_v48  ;;  %v5338_v38 = vsel %vm5336_vm6, %v2859_v23, %v2851_v48  ;;  %vm2557_vm6 = vcmp.lt.s32.totalorder %v6509_v46, 0 }
 0x141   : > { %v2416_v28 = vsub.s32 32, %v2415_v14  ;;  %v2418_v19 = vshll.u32 %v6010_v10, %v2415_v14  ;;  %v2421_v37 = vshll.u32 %v6011_v12, %v2415_v14  ;;  %v2424_v62 = vshll.u32 %v6012_v15, %v2415_v14 }
 0x142   : > { %v2857_v29 = vsel %vm2855_vm15, %v2843_v49, %v2856_v2  ;;  %v5335_v60 = vsel %vm5333_vm7, %v2843_v49, %v2856_v2  ;;  %v2427_v41 = vshll.u32 %v6009_v6, %v2415_v14  ;;  %v2430_v40 = vshll.u32 %v6013_v20, %v2415_v14 }
 0x143   : > { %v2861_v50 = vsel %vm2854_vm1, %v2857_v29, %v2860_v57  ;;  %v5339_v61 = vsel %vm5332_vm2, %v5335_v60, %v5338_v38  ;;  %v2419_v4 = vshrl.u32 %v6011_v12, %v2416_v28  ;;  %v2422_v47 = vshrl.u32 %v6012_v15, %v2416_v28 }
 0x144   : > { %v2862_v7 = vsel %vm2852_vm9, nan, %v2861_v50  ;;  %v5340_v43 = vsel %vm2852_vm9, nan, %v5339_v61  ;;  %v2425_v59 = vshrl.u32 %v6009_v6, %v2416_v28  ;;  %v2428_v51 = vshrl.u32 %v6013_v20, %v2416_v28 }
 0x145   : > { %5653 = vmatpush.msra.mxu0 %v2862_v7  ;;  %5673 = vmatpush.msra.mxu1 %v5340_v43  ;;  %v2420_v45 = vor.u32 %v2419_v4, %v2418_v19  ;;  %v2423_v13 = vor.u32 %v2422_v47, %v2421_v37  ;;  %vm2433_vm13 = vcmp.lt.s32.totalorder %v6622_v8, 1  ;;  %v2431_v0 = vshrl.u32 %v6014_v26, %v2416_v28 }
 0x146   : > { %v2426_v17 = vor.u32 %v2425_v59, %v2424_v62  ;;  %v2429_v56 = vor.u32 %v2428_v51, %v2427_v41  ;;  %v6636_v49 = vshrl.u32 %v2654_v3, 30  ;;  %vm2435_vm14 = vcmp.lt.s32.totalorder %v6622_v8, 3 }
 0x147   : > { %vm2436_vm10 = vcmp.lt.s32.totalorder %v6622_v8, 4  ;;  %v2432_v33 = vor.u32 %v2431_v0, %v2430_v40  ;;  %vm2434_vm12 = vcmp.lt.s32.totalorder %v6622_v8, 2  ;;  %v2441_v16 = vsel %vm2433_vm13, %v2420_v45, %v2423_v13 }
 0x148   : > { %v2442_v11 = vsel %vm2436_vm10, %v2429_v56, 920167782  ;;  %v2656_v55 = vshll.u32 %v6636_v49, 30  ;;  %v2445_v48 = vsel %vm2433_vm13, %v2423_v13, %v2426_v17  ;;  %v2450_v38 = vand.u32 65535, %v6640_v31 }
 0x149   : > { %v2443_v42 = vsel %vm2435_vm14, %v2426_v17, %v2442_v11  ;;  %v2446_v23 = vsel %vm2436_vm10, %v2432_v33, 1326507024  ;;  %v2451_v63 = vshrl.u32 %v6640_v31, 16  ;;  %v2417_v60 = vshrl.u32 %v6010_v10, %v2416_v28 }
 0x14a   : > { %v2657_v9 = vsub.s32 %v2653_v53, %v2656_v55  ;;  %v2444_v2 = vsel %vm2434_vm12, %v2441_v16, %v2443_v42  ;;  %v2447_v57 = vsel %vm2435_vm14, %v2429_v56, %v2446_v23  ;;  %v6665_v61 = vmul.f32 %v6148_v30, %v601_v44 }
 0x14b   : > { %v2448_v34 = vsel %vm2434_vm12, %v2445_v48, %v2447_v57  ;;  %v2474_v14 = vand.u32 65535, %v2444_v2  ;;  %v2475_v50 = vshrl.u32 %v2444_v2, 16  ;;  %v2437_v47 = vsel %vm2433_vm13, %v2417_v60, %v2420_v45 }
 0x14c   : > { %vm2658_vm15 = vcmp.lt.s32.totalorder %v2657_v9, 0  ;;  %v2659_v18 = vsub.s32 0, %v2657_v9  ;;  %v2452_v5 = vand.u32 65535, %v2448_v34  ;;  %v2453_v29 = vshrl.u32 %v2448_v34, 16 }
 0x14d   : > { %v2477_v53 = vmul.u32 %v2475_v50, %v2450_v38  ;;  %v637_v28 = vmul.f32 0.00390625, %v6665_v61  ;;  %v2478_v41 = vmul.u32 %v2474_v14, %v2451_v63  ;;  %v2438_v51 = vsel %vm2436_vm10, %v2426_v17, 2102212464 }
 0x14e   : > { %v2660_v58 = vsel %vm2658_vm15, %v2659_v18, %v2657_v9  ;;  %v2454_v7 = vmul.u32 %v2452_v5, %v2450_v38  ;;  %v2455_v43 = vmul.u32 %v2453_v29, %v2450_v38  ;;  %v2456_v19 = vmul.u32 %v2452_v5, %v2451_v63 }
 0x14f   : > { %v2661_v35 = vclz %v2660_v58  ;;  %v2457_v37 = vmul.u32 %v2453_v29, %v2451_v63  ;;  %v2476_v3 = vmul.u32 %v2474_v14, %v2450_v38  ;;  %v2480_v52 = vshll.u32 %v2477_v53, 16 }
 0x150   : > { %v2458_v62 = vshll.u32 %v2455_v43, 16  ;;  %v2460_v54 = vshll.u32 %v2456_v19, 16  ;;  %v2679_v16 = vsub.s32 4, %v6636_v49  ;;  %v2439_v45 = vsel %vm2435_vm14, %v2423_v13, %v2438_v51 }
 0x151   : > { %v5848_v4 = vadd.s32 4294967294, %v2661_v35  ;;  %v2459_v11 = vshrl.u32 %v2455_v43, 16  ;;  %v2479_v55 = vmul.u32 %v2475_v50, %v2451_v63  ;;  %v2482_v42 = vshll.u32 %v2478_v41, 16 }
 0x152   : > { %vm2462_vm0 = vc.u32 %v2454_v7, %v2458_v62  ;;  %v2464_v59 = vadd.s32 %v2458_v62, %v2454_v7  ;;  %v2461_v23 = vshrl.u32 %v2456_v19, 16  ;;  %vm2484_vm3 = vc.u32 %v2476_v3, %v2480_v52 }
 0x153   : > { %vm5849_vm1 = vcmp.lt.s32.totalorder %v5848_v4, 0  ;;  %v2463_v40 = vsel %vm2462_vm0, 1, %v6008_v1  ;;  %v2486_v57 = vadd.s32 %v2480_v52, %v2476_v3  ;;  %v653_v38 = vfloor.f32 %v637_v28 }
 0x154   : > { %v2664_v56 = vsel %vm5849_vm1, 0, %v5848_v4  ;;  %v2465_v0 = vadd.s32 %v2463_v40, %v2457_v37  ;;  %vm2466_vm2 = vc.u32 %v2464_v59, %v2460_v54  ;;  %v2485_v18 = vsel %vm2484_vm3, 1, %v6008_v1 }
 0x155   : > { %v2665_v32 = vsub.s32 32, %v2664_v56  ;;  %v2666_v22 = vshll.u32 %v2657_v9, %v2664_v56  ;;  %v2669_v33 = vsub.s32 4294967266, %v2664_v56  ;;  %v2467_v44 = vsel %vm2466_vm2, 1, %v6008_v1 }
 0x156   : > { %v2469_v2 = vadd.s32 %v2467_v44, %v2465_v0  ;;  %v562_v5 = vadd.s32 72, %v6140_v21  ;;  %v2481_v13 = vshrl.u32 %v2477_v53, 16  ;;  %v2487_v60 = vadd.s32 %v2485_v18, %v2479_v55 }
 0x157   : > { %v2667_v48 = vshrl.u32 %v2649_v39, %v2665_v32  ;;  %v2670_v17 = vadd.s32 127, %v2669_v33  ;;  %vm2488_vm4 = vc.u32 %v2486_v57, %v2482_v42  ;;  %v669_v58 = vmul.f32 256.0, %v653_v38 }
 0x158   : > { %v2470_v29 = vadd.s32 %v2469_v2, %v2459_v11  ;;  %v2489_v50 = vsel %vm2488_vm4, 1, %v6008_v1  ;;  %v2440_v7 = vsel %vm2434_vm12, %v2437_v47, %v2439_v45  ;;  %v2483_v43 = vshrl.u32 %v2478_v41, 16 }
 0x159   : > { %v2668_v34 = vor.u32 %v2667_v48, %v2666_v22  ;;  %v2671_v9 = vshll.u32 %v2670_v17, 23  ;;  %v2491_v19 = vadd.s32 %v2489_v50, %v2487_v60  ;;  %v578_v35 = vcvt.s32.f32 %v562_v5 }
 0x15a   : > { %v6684_v62 = vadd.s32 %v2470_v29, %v2461_v23  ;;  %v6686_v54 = vadd.s32 %v2486_v57, %v2482_v42  ;;  %v685_v53 = vsub.f32 %v6665_v61, %v669_v58  ;;  %v2680_v59 = vsel %vm2557_vm6, %v2679_v16, %v6636_v49 }
 0x15b   : > { %v2672_v63 = vor.u32 4788187, %v2671_v9  ;;  %v2675_v14 = vcvt.s32.f32 %v2668_v34  ;;  %v2492_v39 = vadd.s32 %v2491_v19, %v2481_v13  ;;  %v600_v4 = vadd.f32 %v6145_v27, %v578_v35 }
 0x15c   : > { %v6697_v47 = vmul.f32 0.024543693, %v685_v53  ;;  %v2494_v51 = vmul.u32 %v6640_v31, %v2440_v7  ;;  %vm2496_vm7 = vc.u32 %v6684_v62, %v6686_v54  ;;  %v2682_v52 = vsel %vm6692_vm5, 0, %v2680_v59 }
 0x15d   : > { %v2673_v37 = vand.u32 2147483647, %v2672_v63  ;;  %v2493_v41 = vadd.s32 %v2492_v39, %v2483_v43  ;;  %v6702_v61 = vmul.f32 %v6148_v30, %v600_v4  ;;  %v5175_v55 = vadd.s32 3, %v2682_v52 }
 0x15e   : > { %v2247_v24 = vand.u32 2147483647, %v6697_v47  ;;  %v2250_v3 = vand.u32 2139095040, %v6697_v47  ;;  %v6716_v44 = vand.u32 3, %v2682_v52  ;;  %vm2403_vm9 = vcmp.lt.s32.totalorder %v6546_v36, 0 }
 0x15f   : > { %v2676_v8 = vmul.f32 %v2675_v14, %v2673_v37  ;;  %v2497_v56 = vadd.s32 1, %v2493_v41  ;;  %v636_v33 = vmul.f32 0.00390625, %v6702_v61  ;;  %v5176_v18 = vand.u32 3, %v5175_v55 }
 0x160   : > { %v2251_v49 = vshrl.u32 %v2250_v3, 23  ;;  %v2254_v22 = vand.u32 8388607, %v2247_v24  ;;  %vm2701_vm11 = vcmp.eq.s32.totalorder %v6716_v44, 0  ;;  %vm2704_vm13 = vcmp.eq.s32.totalorder %v6716_v44, 2 }
 0x161   : > { %v2677_v40 = vxor.u32 2147483648, %v2676_v8  ;;  %v2498_v32 = vsel %vm2496_vm7, %v2497_v56, %v2493_v41  ;;  %v652_v57 = vfloor.f32 %v636_v33  ;;  %vm2700_vm14 = vcmp.lt.s32.totalorder %v6716_v44, 2 }
 0x162   : > { %v2499_v45 = vadd.s32 %v2498_v32, %v2494_v51  ;;  %v5841_v11 = vadd.s32 4294967169, %v2251_v49  ;;  %v2255_v2 = vor.u32 8388608, %v2254_v22  ;;  %vm2698_vm10 = vweird.f32 %v6509_v46 }
 0x163   : > { %v2678_v0 = vsel %vm2557_vm6, %v2677_v40, %v2676_v8  ;;  %v668_v14 = vmul.f32 256.0, %v652_v57  ;;  %vm5177_vm12 = vcmp.lt.s32.totalorder %v5176_v18, 2  ;;  %vm5178_vm15 = vcmp.eq.s32.totalorder %v5176_v18, 0 }
 0x164   : > { %v2681_v31 = vsel %vm6692_vm5, %v6509_v46, %v2678_v0  ;;  %v2500_v17 = vadd.s32 536870912, %v2499_v45  ;;  %v2257_v23 = vadd.s32 1, %v5841_v11  ;;  %v6724_v43 = vshll.u32 %v2255_v2, 8 }
 0x165   : > { %v2683_v16 = vmul.f32 %v2681_v31, %v2681_v31  ;;  %vm5181_vm0 = vcmp.eq.s32.totalorder %v5176_v18, 2  ;;  %v2495_v39 = vadd.s32 %v6686_v54, %v6684_v62  ;;  %v684_v28 = vsub.f32 %v6702_v61, %v668_v14 }
 0x166   : > { %v2501_v9 = vshrl.u32 %v2500_v17, 30  ;;  %vm2258_vm8 = vcmp.gt.s32.totalorder %v2257_v23, 0  ;;  %v6733_v8 = vadd.s32 64, %v6140_v21  ;;  %vm6737_vm2 = vcmp.le.f32.partialorder %v2401_v25, 0.7853982 }
 0x167   : > { %v2684_v42 = vmul.f32 -0.001358992, %v2683_v16  ;;  %v2691_v48 = vmul.f32 -0.00019511016, %v2683_v16  ;;  %v2259_v5 = vsel %vm2258_vm8, %v2257_v23, 0  ;;  %v6743_v3 = vand.u32 65535, %v6724_v43 }
 0x168   : > { %v2502_v60 = vshll.u32 %v2501_v9, 30  ;;  %v2261_v63 = vand.u32 31, %v2259_v5  ;;  %v2525_v19 = vsub.s32 4, %v2501_v9  ;;  %v6747_v61 = vshrl.u32 %v2259_v5, 5 }
 0x169   : > { %v2685_v38 = vadd.f32 0.041655596, %v2684_v42  ;;  %v2692_v34 = vadd.f32 0.008332121, %v2691_v48  ;;  %v6750_v56 = vshrl.u32 %v6724_v43, 16 }
 0x16a   : > { %v6722_v7 = vsub.s32 %v2499_v45, %v2502_v60  ;;  %v2262_v4 = vsub.s32 32, %v2261_v63  ;;  %v2526_v54 = vsel %vm2403_vm9, %v2525_v19, %v2501_v9  ;;  %v2264_v25 = vshll.u32 %v6010_v10, %v2261_v63 }
 0x16b   : > { %v2686_v29 = vmul.f32 %v2685_v38, %v2683_v16  ;;  %v2693_v13 = vmul.f32 %v2692_v34, %v2683_v16  ;;  %v2267_v49 = vshll.u32 %v6011_v12, %v2261_v63  ;;  %v2273_v42 = vshll.u32 %v6009_v6, %v2261_v63 }
 0x16c   : > { %vm2504_vm1 = vcmp.lt.s32.totalorder %v6722_v7, 0  ;;  %v2505_v53 = vsub.s32 0, %v6722_v7  ;;  %v2265_v22 = vshrl.u32 %v6011_v12, %v2262_v4  ;;  %v2268_v33 = vshrl.u32 %v6012_v15, %v2262_v4 }
 0x16d   : > { %v2687_v50 = vadd.f32 -0.4999988, %v2686_v29  ;;  %v2694_v58 = vadd.f32 -0.16666654, %v2693_v13  ;;  %v2274_v48 = vshrl.u32 %v6013_v20, %v2262_v4  ;;  %v2276_v17 = vshll.u32 %v6013_v20, %v2261_v63 }
 0x16e   : > { %v2506_v40 = vsel %vm2504_vm1, %v2505_v53, %v6722_v7  ;;  %v2277_v38 = vshrl.u32 %v6014_v26, %v2262_v4  ;;  %v6776_v14 = vmul.f32 0.024543693, %v684_v28  ;;  %v2528_v44 = vsel %vm6737_vm2, 0, %v2526_v54 }
 0x16f   : > { %v2688_v35 = vmul.f32 %v2687_v50, %v2683_v16  ;;  %v2695_v37 = vmul.f32 %v2694_v58, %v2683_v16  ;;  %v2507_v62 = vclz %v2506_v40  ;;  %v2270_v16 = vshll.u32 %v6012_v15, %v2261_v63 }
 0x170   : > { %v2266_v18 = vor.u32 %v2265_v22, %v2264_v25  ;;  %v2269_v58 = vor.u32 %v2268_v33, %v2267_v49  ;;  %vm2279_vm4 = vcmp.lt.s32.totalorder %v6747_v61, 1  ;;  %v2263_v46 = vshrl.u32 %v6010_v10, %v2262_v4 }
 0x171   : > { %v2689_v59 = vadd.f32 1.0, %v2688_v35  ;;  %v2696_v41 = vadd.f32 1.0, %v2695_v37  ;;  %v5845_v32 = vadd.s32 4294967294, %v2507_v62  ;;  %v2278_v53 = vor.u32 %v2277_v38, %v2276_v17 }
 0x172   : > { %vm2282_vm5 = vcmp.lt.s32.totalorder %v6747_v61, 4  ;;  %vm2281_vm6 = vcmp.lt.s32.totalorder %v6747_v61, 3  ;;  %vm2280_vm7 = vcmp.lt.s32.totalorder %v6747_v61, 2  ;;  %v2287_v62 = vsel %vm2279_vm4, %v2266_v18, %v2269_v58 }
 0x173   : > { %v2697_v0 = vmul.f32 %v2696_v41, %v2681_v31  ;;  %v2705_v52 = vxor.u32 2147483648, %v2689_v59  ;;  %v2271_v31 = vshrl.u32 %v6009_v6, %v2262_v4  ;;  %vm5846_vm3 = vcmp.lt.s32.totalorder %v5845_v32, 0 }
 0x174   : > { %v2510_v57 = vsel %vm5846_vm3, 0, %v5845_v32  ;;  %v5020_v41 = vadd.s32 3, %v2528_v44  ;;  %v6795_v25 = vand.u32 3, %v2528_v44  ;;  %v2283_v49 = vsel %vm2279_vm4, %v2263_v46, %v2266_v18 }
 0x175   : > { %v2702_v45 = vxor.u32 2147483648, %v2697_v0  ;;  %v2706_v11 = vsel %vm2704_vm13, %v2705_v52, %v2697_v0  ;;  %v5183_v55 = vsel %vm5181_vm0, %v2705_v52, %v2697_v0  ;;  %v2511_v5 = vsub.s32 32, %v2510_v57 }
 0x176   : > { %v2512_v29 = vshll.u32 %v6722_v7, %v2510_v57  ;;  %v2515_v63 = vsub.s32 4294967266, %v2510_v57  ;;  %v2272_v35 = vor.u32 %v2271_v31, %v2270_v16  ;;  %v2275_v7 = vor.u32 %v2274_v48, %v2273_v42 }
 0x177   : > { %v2703_v23 = vsel %vm2701_vm11, %v2689_v59, %v2702_v45  ;;  %v5180_v2 = vsel %vm5178_vm15, %v2689_v59, %v2702_v45  ;;  %v2513_v50 = vshrl.u32 %v2495_v39, %v2511_v5  ;;  %v2093_v39 = vand.u32 2147483647, %v6776_v14 }
 0x178   : > { %v2707_v34 = vsel %vm2700_vm14, %v2703_v23, %v2706_v11  ;;  %v5184_v9 = vsel %vm5177_vm12, %v5180_v2, %v5183_v55  ;;  %v2516_v19 = vadd.s32 127, %v2515_v63  ;;  %v2096_v59 = vand.u32 2139095040, %v6776_v14 }
 0x179   : > { %v2708_v13 = vsel %vm2698_vm10, nan, %v2707_v34  ;;  %v5185_v60 = vsel %vm2698_vm10, nan, %v5184_v9  ;;  %v2514_v37 = vor.u32 %v2513_v50, %v2512_v29  ;;  %v2284_v40 = vsel %vm2282_vm5, %v2272_v35, 2102212464 }
 0x17a   : > { %5654 = vmatpush.msra.mxu0 %v2708_v13  ;;  %5674 = vmatpush.msra.mxu1 %v5185_v60  ;;  %v2517_v28 = vshll.u32 %v2516_v19, 23  ;;  %v2288_v0 = vsel %vm2282_vm5, %v2275_v7, 920167782  ;;  %v2291_v52 = vsel %vm2279_vm4, %v2269_v58, %v2272_v35  ;;  %v2292_v22 = vsel %vm2282_vm5, %v2278_v53, 1326507024 }
 0x17b   : > { %v2521_v54 = vcvt.s32.f32 %v2514_v37  ;;  %v2289_v32 = vsel %vm2281_vm6, %v2272_v35, %v2288_v0  ;;  %v2285_v16 = vsel %vm2281_vm6, %v2269_v58, %v2284_v40  ;;  %v2293_v11 = vsel %vm2281_vm6, %v2275_v7, %v2292_v22 }
 0x17c   : > { %v2518_v4 = vor.u32 4788187, %v2517_v28  ;;  %v2290_v45 = vsel %vm2280_vm7, %v2287_v62, %v2289_v32  ;;  %v2294_v55 = vsel %vm2280_vm7, %v2291_v52, %v2293_v11  ;;  %v2097_v48 = vshrl.u32 %v2096_v59, 23 }
 0x17d   : > { %v2320_v31 = vand.u32 65535, %v2290_v45  ;;  %v2321_v42 = vshrl.u32 %v2290_v45, 16  ;;  %v6811_v23 = vand.u32 3, %v5020_v41  ;;  %v2298_v2 = vand.u32 65535, %v2294_v55 }
 0x17e   : > { %v2519_v33 = vand.u32 2147483647, %v2518_v4  ;;  %v2299_v57 = vshrl.u32 %v2294_v55, 16  ;;  %v6815_v38 = vsel %vm2280_vm7, %v2283_v49, %v2285_v16  ;;  %v5838_v18 = vadd.s32 4294967169, %v2097_v48 }
 0x17f   : > { %v2322_v34 = vmul.u32 %v2320_v31, %v6743_v3  ;;  %v2323_v9 = vmul.u32 %v2321_v42, %v6743_v3  ;;  %v2324_v5 = vmul.u32 %v2320_v31, %v6750_v56  ;;  %v2300_v13 = vmul.u32 %v2298_v2, %v6743_v3 }
 0x180   : > { %v2522_v17 = vmul.f32 %v2521_v54, %v2519_v33  ;;  %v2301_v60 = vmul.u32 %v2299_v57, %v6743_v3  ;;  %v2302_v63 = vmul.u32 %v2298_v2, %v6750_v56  ;;  %v2303_v50 = vmul.u32 %v2299_v57, %v6750_v56 }
 0x181   : > { %v2325_v44 = vmul.u32 %v2321_v42, %v6750_v56  ;;  %v2326_v61 = vshll.u32 %v2323_v9, 16  ;;  %v2327_v7 = vshrl.u32 %v2323_v9, 16  ;;  %v2328_v46 = vshll.u32 %v2324_v5, 16 }
 0x182   : > { %v2523_v29 = vxor.u32 2147483648, %v2522_v17  ;;  %v2304_v19 = vshll.u32 %v2301_v60, 16  ;;  %v2306_v35 = vshll.u32 %v2302_v63, 16  ;;  %v2305_v3 = vshrl.u32 %v2301_v60, 16 }
 0x183   : > { %vm2330_vm8 = vc.u32 %v2322_v34, %v2326_v61  ;;  %v2332_v41 = vadd.s32 %v2326_v61, %v2322_v34  ;;  %v2103_v62 = vadd.s32 1, %v5838_v18  ;;  %v2307_v0 = vshrl.u32 %v2302_v63, 16 }
 0x184   : > { %v2524_v58 = vsel %vm2403_vm9, %v2523_v29, %v2522_v17  ;;  %vm2308_vm11 = vc.u32 %v2300_v13, %v2304_v19  ;;  %v2310_v56 = vadd.s32 %v2304_v19, %v2300_v13  ;;  %v2331_v28 = vsel %vm2330_vm8, 1, %v6008_v1 }
 0x185   : > { %v6830_v37 = vsel %vm6737_vm2, %v6546_v36, %v2524_v58  ;;  %v2309_v59 = vsel %vm2308_vm11, 1, %v6008_v1  ;;  %v2333_v40 = vadd.s32 %v2331_v28, %v2325_v44  ;;  %vm2334_vm13 = vc.u32 %v2332_v41, %v2328_v46 }
 0x186   : > { %v2529_v53 = vmul.f32 %v6830_v37, %v6830_v37  ;;  %v2311_v51 = vadd.s32 %v2309_v59, %v2303_v50  ;;  %vm2312_vm9 = vc.u32 %v2310_v56, %v2306_v35  ;;  %vm2104_vm14 = vcmp.gt.s32.totalorder %v2103_v62, 0 }
 0x187   : > { %v2313_v52 = vsel %vm2312_vm9, 1, %v6008_v1  ;;  %v2335_v33 = vsel %vm2334_vm13, 1, %v6008_v1  ;;  %v2329_v16 = vshrl.u32 %v2324_v5, 16  ;;  %v2100_v11 = vand.u32 8388607, %v2093_v39 }
 0x188   : > { %v2530_v4 = vmul.f32 -0.001358992, %v2529_v53  ;;  %v2537_v54 = vmul.f32 -0.00019511016, %v2529_v53  ;;  %v2315_v22 = vadd.s32 %v2313_v52, %v2311_v51  ;;  %v2337_v45 = vadd.s32 %v2335_v33, %v2333_v40 }
 0x189   : > { %v2105_v55 = vsel %vm2104_vm14, %v2103_v62, 0  ;;  %v6840_v17 = vadd.s32 %v2332_v41, %v2328_v46  ;;  %vm2547_vm10 = vcmp.eq.s32.totalorder %v6795_v25, 0  ;;  %vm2550_vm12 = vcmp.eq.s32.totalorder %v6795_v25, 2 }
 0x18a   : > { %v2531_v49 = vadd.f32 0.041655596, %v2530_v4  ;;  %v2538_v32 = vadd.f32 0.008332121, %v2537_v54  ;;  %v2316_v48 = vadd.s32 %v2315_v22, %v2305_v3  ;;  %v2338_v2 = vadd.s32 %v2337_v45, %v2327_v7 }
 0x18b   : > { %v2107_v57 = vand.u32 31, %v2105_v55  ;;  %vm2546_vm15 = vcmp.lt.s32.totalorder %v6795_v25, 2  ;;  %vm5022_vm0 = vcmp.lt.s32.totalorder %v6811_v23, 2  ;;  %vm5023_vm1 = vcmp.eq.s32.totalorder %v6811_v23, 0 }
 0x18c   : > { %v2532_v31 = vmul.f32 %v2531_v49, %v2529_v53  ;;  %v2539_v42 = vmul.f32 %v2538_v32, %v2529_v53  ;;  %v6847_v5 = vadd.s32 %v2316_v48, %v2307_v0  ;;  %vm2544_vm2 = vweird.f32 %v6546_v36 }
 0x18d   : > { %vm5026_vm3 = vcmp.eq.s32.totalorder %v6811_v23, 2  ;;  %v2339_v29 = vadd.s32 %v2338_v2, %v2329_v16  ;;  %v2340_v13 = vmul.u32 %v6724_v43, %v6815_v38  ;;  %v6853_v60 = vsub.s32 32, %v2107_v57 }
 0x18e   : > { %v2533_v34 = vadd.f32 -0.4999988, %v2532_v31  ;;  %v2540_v9 = vadd.f32 -0.16666654, %v2539_v42  ;;  %vm2342_vm4 = vc.u32 %v6847_v5, %v6840_v17  ;;  %v2101_v44 = vor.u32 8388608, %v2100_v11 }
 0x18f   : > { %v2343_v61 = vadd.s32 1, %v2339_v29  ;;  %v6857_v18 = vshrl.u32 %v2105_v55, 5  ;;  %v2110_v58 = vshll.u32 %v6010_v10, %v2107_v57  ;;  %v2113_v19 = vshll.u32 %v6011_v12, %v2107_v57 }
 0x190   : > { %v2534_v63 = vmul.f32 %v2533_v34, %v2529_v53  ;;  %v2541_v50 = vmul.f32 %v2540_v9, %v2529_v53  ;;  %v2111_v43 = vshrl.u32 %v6011_v12, %v6853_v60  ;;  %v2114_v38 = vshrl.u32 %v6012_v15, %v6853_v60 }
 0x191   : > { %v2344_v3 = vsel %vm2342_vm4, %v2343_v61, %v2339_v29  ;;  %v2116_v46 = vshll.u32 %v6012_v15, %v2107_v57  ;;  %v2117_v53 = vshrl.u32 %v6009_v6, %v6853_v60  ;;  %v2119_v56 = vshll.u32 %v6009_v6, %v2107_v57 }
 0x192   : > { %v2535_v35 = vadd.f32 1.0, %v2534_v63  ;;  %v2542_v7 = vadd.f32 1.0, %v2541_v50  ;;  %v2345_v41 = vadd.s32 %v2344_v3, %v2340_v13  ;;  %v6870_v40 = vshll.u32 %v2101_v44, 8 }
 0x193   : > { %v2120_v62 = vshrl.u32 %v6013_v20, %v6853_v60  ;;  %v2122_v4 = vshll.u32 %v6013_v20, %v2107_v57  ;;  %v2123_v54 = vshrl.u32 %v6014_v26, %v6853_v60  ;;  %vm2125_vm5 = vcmp.lt.s32.totalorder %v6857_v18, 1 }
 0x194   : > { %v2543_v28 = vmul.f32 %v2542_v7, %v6830_v37  ;;  %v2551_v59 = vxor.u32 2147483648, %v2535_v35  ;;  %v2346_v52 = vadd.s32 536870912, %v2345_v41  ;;  %v2112_v49 = vor.u32 %v2111_v43, %v2110_v58 }
 0x195   : > { %v6882_v32 = vor.u32 %v2114_v38, %v2113_v19  ;;  %v2118_v22 = vor.u32 %v2117_v53, %v2116_v46  ;;  %v2121_v33 = vor.u32 %v2120_v62, %v2119_v56  ;;  %v2124_v55 = vor.u32 %v2123_v54, %v2122_v4 }
 0x196   : > { %v2548_v51 = vxor.u32 2147483648, %v2543_v28  ;;  %v2552_v0 = vsel %vm2550_vm12, %v2551_v59, %v2543_v28  ;;  %v5028_v37 = vsel %vm5026_vm3, %v2551_v59, %v2543_v28  ;;  %v6888_v11 = vshrl.u32 %v2346_v52, 30 }
 0x197   : > { %vm2127_vm6 = vcmp.lt.s32.totalorder %v6857_v18, 3  ;;  %vm2128_vm7 = vcmp.lt.s32.totalorder %v6857_v18, 4  ;;  %vm2126_vm8 = vcmp.lt.s32.totalorder %v6857_v18, 2  ;;  %v2133_v25 = vsel %vm2125_vm5, %v2112_v49, %v6882_v32 }
 0x198   : > { %v2549_v16 = vsel %vm2547_vm10, %v2535_v35, %v2548_v51  ;;  %v5025_v45 = vsel %vm5023_vm1, %v2535_v35, %v2548_v51  ;;  %v2348_v57 = vshll.u32 %v6888_v11, 30  ;;  %v2134_v23 = vsel %vm2128_vm7, %v2121_v33, 920167782 }
 0x199   : > { %v2553_v31 = vsel %vm2546_vm15, %v2549_v16, %v2552_v0  ;;  %v5029_v42 = vsel %vm5022_vm0, %v5025_v45, %v5028_v37  ;;  %v577_v34 = vcvt.s32.f32 %v6733_v8  ;;  %v2135_v36 = vsel %vm2127_vm6, %v2118_v22, %v2134_v23 }
 0x19a   : > { %v2554_v48 = vsel %vm2544_vm2, nan, %v2553_v31  ;;  %v5030_v2 = vsel %vm2544_vm2, nan, %v5029_v42  ;;  %v2349_v9 = vsub.s32 %v2345_v41, %v2348_v57  ;;  %v2137_v29 = vsel %vm2125_vm5, %v6882_v32, %v2118_v22 }
 0x19b   : > { %5655 = vmatpush.msra.mxu0 %v2554_v48  ;;  %5675 = vmatpush.msra.mxu1 %v5030_v2  ;;  %v2136_v13 = vsel %vm2126_vm8, %v2133_v25, %v2135_v36  ;;  %v2138_v63 = vsel %vm2128_vm7, %v2124_v55, 1326507024  ;;  %v2142_v50 = vand.u32 65535, %v6870_v40  ;;  %v2143_v61 = vshrl.u32 %v6870_v40, 16 }
 0x19c   : > { %vm2350_vm11 = vcmp.lt.s32.totalorder %v2349_v9, 0  ;;  %v2351_v44 = vsub.s32 0, %v2349_v9  ;;  %v2139_v8 = vsel %vm2127_vm6, %v2121_v33, %v2138_v63  ;;  %v2167_v19 = vshrl.u32 %v2136_v13, 16 }
 0x19d   : > { %v2140_v58 = vsel %vm2126_vm8, %v2137_v29, %v2139_v8  ;;  %v599_v35 = vadd.f32 %v6145_v27, %v577_v34  ;;  %v2166_v3 = vand.u32 65535, %v2136_v13  ;;  %v2109_v62 = vshrl.u32 %v6010_v10, %v6853_v60 }
 0x19e   : > { %v2352_v7 = vsel %vm2350_vm11, %v2351_v44, %v2349_v9  ;;  %v2144_v43 = vand.u32 65535, %v2140_v58  ;;  %v2145_v38 = vshrl.u32 %v2140_v58, 16  ;;  %v6924_v53 = vmul.u32 %v2167_v19, %v2142_v50 }
 0x19f   : > { %v2353_v46 = vclz %v2352_v7  ;;  %v2341_v4 = vadd.s32 %v6840_v17, %v6847_v5  ;;  %v2168_v51 = vmul.u32 %v2166_v3, %v2142_v50  ;;  %v619_v0 = vmul.f32 %v6148_v30, %v599_v35 }
 0x1a0   : > { %v2146_v56 = vmul.u32 %v2144_v43, %v2142_v50  ;;  %v2147_v28 = vmul.u32 %v2145_v38, %v2142_v50  ;;  %v2148_v59 = vmul.u32 %v2144_v43, %v2143_v61  ;;  %v2149_v37 = vmul.u32 %v2145_v38, %v2143_v61 }
 0x1a1   : > { %v5842_v41 = vadd.s32 4294967294, %v2353_v46  ;;  %v2170_v52 = vmul.u32 %v2166_v3, %v2143_v61  ;;  %v2172_v33 = vshll.u32 %v6924_v53, 16  ;;  %vm2249_vm14 = vcmp.lt.s32.totalorder %v6697_v47, 0 }
 0x1a2   : > { %v2150_v54 = vshll.u32 %v2147_v28, 16  ;;  %v2152_v45 = vshll.u32 %v2148_v59, 16  ;;  %v2129_v17 = vsel %vm2125_vm5, %v2109_v62, %v2112_v49  ;;  %v2371_v5 = vsub.s32 4, %v6888_v11 }
 0x1a3   : > { %vm5843_vm9 = vcmp.lt.s32.totalorder %v5842_v41, 0  ;;  %v2130_v48 = vsel %vm2128_vm7, %v2118_v22, 2102212464  ;;  %v2171_v2 = vmul.u32 %v2167_v19, %v2143_v61  ;;  %v635_v57 = vmul.f32 0.00390625, %v619_v0 }
 0x1a4   : > { %v2356_v16 = vsel %vm5843_vm9, 0, %v5842_v41  ;;  %vm2154_vm13 = vc.u32 %v2146_v56, %v2150_v54  ;;  %v2156_v55 = vadd.s32 %v2150_v54, %v2146_v56  ;;  %v2174_v36 = vshll.u32 %v2170_v52, 16 }
 0x1a5   : > { %v2357_v31 = vsub.s32 32, %v2356_v16  ;;  %v2358_v60 = vshll.u32 %v2349_v9, %v2356_v16  ;;  %v2361_v42 = vsub.s32 4294967266, %v2356_v16  ;;  %v2155_v34 = vsel %vm2154_vm13, 1, %v6008_v1 }
 0x1a6   : > { %v2151_v29 = vshrl.u32 %v2147_v28, 16  ;;  %v2157_v13 = vadd.s32 %v2155_v34, %v2149_v37  ;;  %vm2158_vm10 = vc.u32 %v2156_v55, %v2152_v45  ;;  %vm2176_vm12 = vc.u32 %v2168_v51, %v2172_v33 }
 0x1a7   : > { %v2359_v25 = vshrl.u32 %v2341_v4, %v2357_v31  ;;  %v2362_v23 = vadd.s32 127, %v2361_v42  ;;  %v2159_v49 = vsel %vm2158_vm10, 1, %v6008_v1  ;;  %v2177_v50 = vsel %vm2176_vm12, 1, %v6008_v1 }
 0x1a8   : > { %v2161_v44 = vadd.s32 %v2159_v49, %v2157_v13  ;;  %v2178_v8 = vadd.s32 %v2172_v33, %v2168_v51  ;;  %v2179_v22 = vadd.s32 %v2177_v50, %v2171_v2  ;;  %v651_v61 = vfloor.f32 %v635_v57 }
 0x1a9   : > { %v2360_v9 = vor.u32 %v2359_v25, %v2358_v60  ;;  %v2363_v63 = vshll.u32 %v2362_v23, 23  ;;  %v2153_v35 = vshrl.u32 %v2148_v59, 16  ;;  %v560_v7 = vadd.s32 56, %v6140_v21 }
 0x1aa   : > { %v2162_v43 = vadd.s32 %v2161_v44, %v2151_v29  ;;  %v2173_v38 = vshrl.u32 %v6924_v53, 16  ;;  %vm2180_vm15 = vc.u32 %v2178_v8, %v2174_v36  ;;  %v667_v3 = vmul.f32 256.0, %v651_v61 }
 0x1ab   : > { %v2364_v58 = vor.u32 4788187, %v2363_v63  ;;  %v2367_v19 = vcvt.s32.f32 %v2360_v9  ;;  %v2131_v56 = vsel %vm2127_vm6, %v6882_v32, %v2130_v48  ;;  %v2181_v28 = vsel %vm2180_vm15, 1, %v6008_v1 }
 0x1ac   : > { %v576_v41 = vcvt.s32.f32 %v560_v7  ;;  %v2372_v62 = vsel %vm2249_vm14, %v2371_v5, %v6888_v11  ;;  %v2175_v59 = vshrl.u32 %v2170_v52, 16  ;;  %v2183_v4 = vadd.s32 %v2181_v28, %v2179_v22 }
 0x1ad   : > { %v2365_v46 = vand.u32 2147483647, %v2364_v58  ;;  %v683_v54 = vsub.f32 %v619_v0, %v667_v3  ;;  %v2163_v37 = vadd.s32 %v2162_v43, %v2153_v35  ;;  %v2182_v53 = vadd.s32 %v2178_v8, %v2174_v36 }
 0x1ae   : > { %v598_v33 = vadd.f32 %v6145_v27, %v576_v41  ;;  %v2132_v16 = vsel %vm2126_vm8, %v2129_v17, %v2131_v56  ;;  %v2184_v45 = vadd.s32 %v2183_v4, %v2173_v38  ;;  %vm2248_vm0 = vcmp.le.f32.partialorder %v2247_v24, 0.7853982 }
 0x1af   : > { %v2368_v51 = vmul.f32 %v2367_v19, %v2365_v46  ;;  %v6953_v32 = vmul.f32 0.024543693, %v683_v54  ;;  %v2374_v52 = vsel %vm2248_vm0, 0, %v2372_v62  ;;  %v2186_v18 = vmul.u32 %v6870_v40, %v2132_v16 }
 0x1b0   : > { %v6958_v11 = vmul.f32 %v6148_v30, %v598_v33  ;;  %v2185_v0 = vadd.s32 %v2184_v45, %v2175_v59  ;;  %vm2188_vm1 = vc.u32 %v2163_v37, %v2182_v53  ;;  %v4865_v57 = vadd.s32 3, %v2374_v52 }
 0x1b1   : > { %v2369_v55 = vxor.u32 2147483648, %v2368_v51  ;;  %v1942_v31 = vand.u32 2139095040, %v6953_v32  ;;  %v1939_v42 = vand.u32 2147483647, %v6953_v32  ;;  %v6967_v13 = vand.u32 3, %v2374_v52 }
 0x1b2   : > { %v2189_v5 = vadd.s32 1, %v2185_v0  ;;  %v634_v48 = vmul.f32 0.00390625, %v6958_v11  ;;  %v4866_v8 = vand.u32 3, %v4865_v57  ;;  %vm2095_vm2 = vcmp.lt.s32.totalorder %v6776_v14, 0 }
 0x1b3   : > { %v2370_v60 = vsel %vm2249_vm14, %v2369_v55, %v2368_v51  ;;  %v1943_v24 = vshrl.u32 %v1942_v31, 23  ;;  %v1946_v40 = vand.u32 8388607, %v1939_v42  ;;  %vm2393_vm4 = vcmp.eq.s32.totalorder %v6967_v13, 0 }
 0x1b4   : > { %v2373_v17 = vsel %vm2248_vm0, %v6697_v47, %v2370_v60  ;;  %v2190_v25 = vsel %vm2188_vm1, %v2189_v5, %v2185_v0  ;;  %v650_v63 = vfloor.f32 %v634_v48  ;;  %v6976_v38 = vadd.s32 48, %v6140_v21 }
 0x1b5   : > { %v2375_v2 = vmul.f32 %v2373_v17, %v2373_v17  ;;  %v5835_v23 = vadd.s32 4294967169, %v1943_v24  ;;  %v2191_v29 = vadd.s32 %v2190_v25, %v2186_v18  ;;  %v1947_v35 = vor.u32 8388608, %v1946_v40 }
 0x1b6   : > { %v6973_v43 = vmul.f32 256.0, %v650_v63  ;;  %vm2392_vm5 = vcmp.lt.s32.totalorder %v6967_v13, 2  ;;  %vm2396_vm6 = vcmp.eq.s32.totalorder %v6967_v13, 2  ;;  %vm6982_vm7 = vcmp.le.f32.partialorder %v2093_v39, 0.7853982 }
 0x1b7   : > { %v2376_v34 = vmul.f32 -0.001358992, %v2375_v2  ;;  %v2383_v36 = vmul.f32 -0.00019511016, %v2375_v2  ;;  %v1949_v9 = vadd.s32 1, %v5835_v23  ;;  %v2192_v44 = vadd.s32 536870912, %v2191_v29 }
 0x1b8   : > { %vm2390_vm8 = vweird.f32 %v6697_v47  ;;  %vm4867_vm11 = vcmp.lt.s32.totalorder %v4866_v8, 2  ;;  %vm4868_vm9 = vcmp.eq.s32.totalorder %v4866_v8, 0  ;;  %vm4871_vm13 = vcmp.eq.s32.totalorder %v4866_v8, 2 }
 0x1b9   : > { %v2377_v49 = vadd.f32 0.041655596, %v2376_v34  ;;  %v2384_v50 = vadd.f32 0.008332121, %v2383_v36  ;;  %vm1950_vm3 = vcmp.gt.s32.totalorder %v1949_v9, 0  ;;  %v2193_v58 = vshrl.u32 %v2192_v44, 30 }
 0x1ba   : > { %v1951_v19 = vsel %vm1950_vm3, %v1949_v9, 0  ;;  %v2187_v51 = vadd.s32 %v2182_v53, %v2163_v37  ;;  %v6989_v33 = vshll.u32 %v1947_v35, 8  ;;  %v682_v39 = vsub.f32 %v6958_v11, %v6973_v43 }
 0x1bb   : > { %v2378_v22 = vmul.f32 %v2377_v49, %v2375_v2  ;;  %v2385_v61 = vmul.f32 %v2384_v50, %v2375_v2  ;;  %v1953_v7 = vand.u32 31, %v1951_v19  ;;  %v2194_v28 = vshll.u32 %v2193_v58, 30 }
 0x1bc   : > { %v2217_v54 = vsub.s32 4, %v2193_v58  ;;  %v575_v16 = vcvt.s32.f32 %v6976_v38  ;;  %v7002_v48 = vshrl.u32 %v1951_v19, 5  ;;  %v1989_v47 = vshrl.u32 %v6989_v33, 16 }
 0x1bd   : > { %v2379_v3 = vadd.f32 -0.4999988, %v2378_v22  ;;  %v2386_v46 = vadd.f32 -0.16666654, %v2385_v61  ;;  %v6987_v41 = vsub.s32 32, %v1953_v7  ;;  %v2195_v4 = vsub.s32 %v2191_v29, %v2194_v28 }
 0x1be   : > { %v1956_v0 = vshll.u32 %v6010_v10, %v1953_v7  ;;  %v1959_v60 = vshll.u32 %v6011_v12, %v1953_v7  ;;  %v2218_v11 = vsel %vm2095_vm2, %v2217_v54, %v2193_v58  ;;  %v1965_v57 = vshll.u32 %v6009_v6, %v1953_v7 }
 0x1bf   : > { %v2380_v62 = vmul.f32 %v2379_v3, %v2375_v2  ;;  %v2387_v59 = vmul.f32 %v2386_v46, %v2375_v2  ;;  %vm2196_vm14 = vcmp.lt.s32.totalorder %v2195_v4, 0  ;;  %v2197_v52 = vsub.s32 0, %v2195_v4 }
 0x1c0   : > { %v1957_v31 = vshrl.u32 %v6011_v12, %v6987_v41  ;;  %v1960_v37 = vshrl.u32 %v6012_v15, %v6987_v41  ;;  %v1962_v2 = vshll.u32 %v6012_v15, %v1953_v7  ;;  %v2220_v29 = vsel %vm6982_vm7, 0, %v2218_v11 }
 0x1c1   : > { %v2381_v45 = vadd.f32 1.0, %v2380_v62  ;;  %v2388_v55 = vadd.f32 1.0, %v2387_v59  ;;  %v2198_v5 = vsel %vm2196_vm14, %v2197_v52, %v2195_v4  ;;  %v1963_v50 = vshrl.u32 %v6009_v6, %v6987_v41 }
 0x1c2   : > { %v2199_v24 = vclz %v2198_v5  ;;  %v1958_v40 = vor.u32 %v1957_v31, %v1956_v0  ;;  %v1961_v9 = vor.u32 %v1960_v37, %v1959_v60  ;;  %v1968_v44 = vshll.u32 %v6013_v20, %v1953_v7 }
 0x1c3   : > { %v2389_v53 = vmul.f32 %v2388_v55, %v2373_v17  ;;  %v2397_v18 = vxor.u32 2147483648, %v2381_v45  ;;  %v1966_v17 = vshrl.u32 %v6013_v20, %v6987_v41  ;;  %v1969_v58 = vshrl.u32 %v6014_v26, %v6987_v41 }
 0x1c4   : > { %v5839_v36 = vadd.s32 4294967294, %v2199_v24  ;;  %vm1971_vm12 = vcmp.lt.s32.totalorder %v7002_v48, 1  ;;  %v1964_v8 = vor.u32 %v1963_v50, %v1962_v2  ;;  %vm1974_vm15 = vcmp.lt.s32.totalorder %v7002_v48, 4 }
 0x1c5   : > { %v2394_v25 = vxor.u32 2147483648, %v2389_v53  ;;  %v2398_v23 = vsel %vm2396_vm6, %v2397_v18, %v2389_v53  ;;  %v4873_v34 = vsel %vm4871_vm13, %v2397_v18, %v2389_v53  ;;  %v1967_v38 = vor.u32 %v1966_v17, %v1965_v57 }
 0x1c6   : > { %vm5840_vm10 = vcmp.lt.s32.totalorder %v5839_v36, 0  ;;  %v1988_v46 = vand.u32 65535, %v6989_v33  ;;  %v597_v28 = vadd.f32 %v6145_v27, %v575_v16  ;;  %vm1973_vm0 = vcmp.lt.s32.totalorder %v7002_v48, 3 }
 0x1c7   : > { %v2395_v63 = vsel %vm2393_vm4, %v2381_v45, %v2394_v25  ;;  %v4870_v49 = vsel %vm4868_vm9, %v2381_v45, %v2394_v25  ;;  %v2202_v43 = vsel %vm5840_vm10, 0, %v5839_v36  ;;  %v4710_v54 = vadd.s32 3, %v2220_v29 }
 0x1c8   : > { %v2399_v22 = vsel %vm2392_vm5, %v2395_v63, %v2398_v23  ;;  %v4874_v61 = vsel %vm4867_vm11, %v4870_v49, %v4873_v34  ;;  %v2203_v7 = vsub.s32 32, %v2202_v43  ;;  %v2204_v3 = vshll.u32 %v2195_v4, %v2202_v43 }
 0x1c9   : > { %v2400_v19 = vsel %vm2390_vm8, nan, %v2399_v22  ;;  %v4875_v35 = vsel %vm2390_vm8, nan, %v4874_v61  ;;  %v2207_v13 = vsub.s32 4294967266, %v2202_v43  ;;  %v1970_v45 = vor.u32 %v1969_v58, %v1968_v44 }
 0x1ca   : > { %5656 = vmatpush.msra.mxu0 %v2400_v19  ;;  %5676 = vmatpush.msra.mxu1 %v4875_v35  ;;  %v2205_v62 = vshrl.u32 %v2187_v51, %v2203_v7  ;;  %vm1972_vm1 = vcmp.lt.s32.totalorder %v7002_v48, 2  ;;  %v1979_v4 = vsel %vm1971_vm12, %v1958_v40, %v1961_v9  ;;  %v1980_v0 = vsel %vm1974_vm15, %v1967_v38, 920167782 }
 0x1cb   : > { %v2208_v59 = vadd.s32 127, %v2207_v13  ;;  %v7039_v31 = vmul.f32 0.024543693, %v682_v39  ;;  %v7041_v51 = vand.u32 3, %v2220_v29  ;;  %v1955_v16 = vshrl.u32 %v6010_v10, %v6987_v41 }
 0x1cc   : > { %v2206_v55 = vor.u32 %v2205_v62, %v2204_v3  ;;  %v1981_v60 = vsel %vm1973_vm0, %v1964_v8, %v1980_v0  ;;  %v7048_v37 = vmul.f32 %v6148_v30, %v597_v28  ;;  %v1983_v39 = vsel %vm1971_vm12, %v1961_v9, %v1964_v8 }
 0x1cd   : > { %v2209_v52 = vshll.u32 %v2208_v59, 23  ;;  %v1982_v5 = vsel %vm1972_vm1, %v1979_v4, %v1981_v60  ;;  %v7054_v11 = vand.u32 3, %v4710_v54  ;;  %v1984_v24 = vsel %vm1974_vm15, %v1970_v45, 1326507024 }
 0x1ce   : > { %v2213_v18 = vcvt.s32.f32 %v2206_v55  ;;  %v2012_v41 = vand.u32 65535, %v1982_v5  ;;  %v2013_v2 = vshrl.u32 %v1982_v5, 16  ;;  %v1976_v25 = vsel %vm1974_vm15, %v1964_v8, 2102212464 }
 0x1cf   : > { %v2210_v53 = vor.u32 4788187, %v2209_v52  ;;  %v1985_v23 = vsel %vm1973_vm0, %v1967_v38, %v1984_v24  ;;  %v1788_v34 = vand.u32 2139095040, %v7039_v31  ;;  %v1975_v50 = vsel %vm1971_vm12, %v1955_v16, %v1958_v40 }
 0x1d0   : > { %v1986_v17 = vsel %vm1972_vm1, %v1983_v39, %v1985_v23  ;;  %v2014_v36 = vmul.u32 %v2012_v41, %v1988_v46  ;;  %v2015_v29 = vmul.u32 %v2013_v2, %v1988_v46  ;;  %v2016_v63 = vmul.u32 %v2012_v41, %v1989_v47 }
 0x1d1   : > { %v2211_v57 = vand.u32 2147483647, %v2210_v53  ;;  %v1990_v44 = vand.u32 65535, %v1986_v17  ;;  %v1991_v22 = vshrl.u32 %v1986_v17, 16  ;;  %v1977_v61 = vsel %vm1973_vm0, %v1961_v9, %v1976_v25 }
 0x1d2   : > { %v2017_v58 = vmul.u32 %v2013_v2, %v1989_v47  ;;  %v2018_v19 = vshll.u32 %v2015_v29, 16  ;;  %v2020_v35 = vshll.u32 %v2016_v63, 16  ;;  %v1785_v8 = vand.u32 2147483647, %v7039_v31 }
 0x1d3   : > { %v2214_v49 = vmul.f32 %v2213_v18, %v2211_v57  ;;  %v1992_v38 = vmul.u32 %v1990_v44, %v1988_v46  ;;  %v1993_v7 = vmul.u32 %v1991_v22, %v1988_v46  ;;  %v1994_v3 = vmul.u32 %v1990_v44, %v1989_v47 }
 0x1d4   : > { %vm2022_vm3 = vc.u32 %v2014_v36, %v2018_v19  ;;  %v2024_v13 = vadd.s32 %v2018_v19, %v2014_v36  ;;  %v1789_v28 = vshrl.u32 %v1788_v34, 23  ;;  %v1995_v62 = vmul.u32 %v1991_v22, %v1989_v47 }
 0x1d5   : > { %v2215_v43 = vxor.u32 2147483648, %v2214_v49  ;;  %v1996_v59 = vshll.u32 %v1993_v7, 16  ;;  %v1998_v54 = vshll.u32 %v1994_v3, 16  ;;  %v2019_v45 = vshrl.u32 %v2015_v29, 16 }
 0x1d6   : > { %v2023_v4 = vsel %vm2022_vm3, 1, %v6008_v1  ;;  %vm2026_vm4 = vc.u32 %v2024_v13, %v2020_v35  ;;  %v1997_v0 = vshrl.u32 %v1993_v7, 16  ;;  %v5832_v47 = vadd.s32 4294967169, %v1789_v28 }
 0x1d7   : > { %v2216_v40 = vsel %vm2095_vm2, %v2215_v43, %v2214_v49  ;;  %vm2000_vm5 = vc.u32 %v1992_v38, %v1996_v59  ;;  %v2002_v55 = vadd.s32 %v1996_v59, %v1992_v38  ;;  %v2025_v52 = vadd.s32 %v2023_v4, %v2017_v58 }
 0x1d8   : > { %v2219_v9 = vsel %vm6982_vm7, %v6776_v14, %v2216_v40  ;;  %v2001_v16 = vsel %vm2000_vm5, 1, %v6008_v1  ;;  %v2027_v60 = vsel %vm2026_vm4, 1, %v6008_v1  ;;  %v2021_v39 = vshrl.u32 %v2016_v63, 16 }
 0x1d9   : > { %v2221_v46 = vmul.f32 %v2219_v9, %v2219_v9  ;;  %v2003_v5 = vadd.s32 %v2001_v16, %v1995_v62  ;;  %vm2004_vm2 = vc.u32 %v2002_v55, %v1998_v54  ;;  %v2029_v24 = vadd.s32 %v2027_v60, %v2025_v52 }
 0x1da   : > { %v2005_v56 = vsel %vm2004_vm2, 1, %v6008_v1  ;;  %v1795_v41 = vadd.s32 1, %v5832_v47  ;;  %v1999_v25 = vshrl.u32 %v1994_v3, 16  ;;  %v1978_v34 = vsel %vm1972_vm1, %v1975_v50, %v1977_v61 }
 0x1db   : > { %v2222_v53 = vmul.f32 -0.001358992, %v2221_v46  ;;  %v2229_v18 = vmul.f32 -0.00019511016, %v2221_v46  ;;  %v2007_v23 = vadd.s32 %v2005_v56, %v2003_v5  ;;  %v7081_v17 = vadd.s32 %v2024_v13, %v2020_v35 }
 0x1dc   : > { %v2030_v36 = vadd.s32 %v2029_v24, %v2019_v45  ;;  %vm1796_vm6 = vcmp.gt.s32.totalorder %v1795_v41, 0  ;;  %vm2239_vm7 = vcmp.eq.s32.totalorder %v7041_v51, 0  ;;  %v1792_v58 = vand.u32 8388607, %v1785_v8 }
 0x1dd   : > { %v2223_v2 = vadd.f32 0.041655596, %v2222_v53  ;;  %v2230_v57 = vadd.f32 0.008332121, %v2229_v18  ;;  %v2008_v44 = vadd.s32 %v2007_v23, %v1997_v0  ;;  %v1797_v22 = vsel %vm1796_vm6, %v1795_v41, 0 }
 0x1de   : > { %v2031_v63 = vadd.s32 %v2030_v36, %v2021_v39  ;;  %v1799_v19 = vand.u32 31, %v1797_v22  ;;  %vm2238_vm8 = vcmp.lt.s32.totalorder %v7041_v51, 2  ;;  %v2032_v50 = vmul.u32 %v6989_v33, %v1978_v34 }
 0x1df   : > { %v2224_v29 = vmul.f32 %v2223_v2, %v2221_v46  ;;  %v2231_v49 = vmul.f32 %v2230_v57, %v2221_v46  ;;  %v7087_v48 = vadd.s32 %v2008_v44, %v1999_v25  ;;  %vm2236_vm11 = vweird.f32 %v6776_v14 }
 0x1e0   : > { %vm2242_vm9 = vcmp.eq.s32.totalorder %v7041_v51, 2  ;;  %vm4712_vm13 = vcmp.lt.s32.totalorder %v7054_v11, 2  ;;  %v2035_v61 = vadd.s32 1, %v2031_v63  ;;  %v7093_v35 = vsub.s32 32, %v1799_v19 }
 0x1e1   : > { %v2225_v43 = vadd.f32 -0.4999988, %v2224_v29  ;;  %v2232_v38 = vadd.f32 -0.16666654, %v2231_v49  ;;  %vm4713_vm14 = vcmp.eq.s32.totalorder %v7054_v11, 0  ;;  %vm2034_vm10 = vc.u32 %v7087_v48, %v7081_v17 }
 0x1e2   : > { %vm4716_vm12 = vcmp.eq.s32.totalorder %v7054_v11, 2  ;;  %v2036_v13 = vsel %vm2034_vm10, %v2035_v61, %v2031_v63  ;;  %v1793_v33 = vor.u32 8388608, %v1792_v58  ;;  %v1802_v28 = vshll.u32 %v6010_v10, %v1799_v19 }
 0x1e3   : > { %v2226_v7 = vmul.f32 %v2225_v43, %v2221_v46  ;;  %v2233_v3 = vmul.f32 %v2232_v38, %v2221_v46  ;;  %v2037_v59 = vadd.s32 %v2036_v13, %v2032_v50  ;;  %v1805_v54 = vshll.u32 %v6011_v12, %v1799_v19 }
 0x1e4   : > { %v1803_v45 = vshrl.u32 %v6011_v12, %v7093_v35  ;;  %v1806_v4 = vshrl.u32 %v6012_v15, %v7093_v35  ;;  %v1808_v46 = vshll.u32 %v6012_v15, %v1799_v19  ;;  %v1809_v55 = vshrl.u32 %v6009_v6, %v7093_v35 }
 0x1e5   : > { %v2227_v40 = vadd.f32 1.0, %v2226_v7  ;;  %v2234_v62 = vadd.f32 1.0, %v2233_v3  ;;  %v2038_v16 = vadd.s32 536870912, %v2037_v59  ;;  %v7108_v60 = vshrl.u32 %v1797_v22, 5 }
 0x1e6   : > { %v1811_v47 = vshll.u32 %v6009_v6, %v1799_v19  ;;  %v1812_v53 = vshrl.u32 %v6013_v20, %v7093_v35  ;;  %v1814_v18 = vshll.u32 %v6013_v20, %v1799_v19  ;;  %v1815_v5 = vshrl.u32 %v6014_v26, %v7093_v35 }
 0x1e7   : > { %v2235_v52 = vmul.f32 %v2234_v62, %v2219_v9  ;;  %v2243_v0 = vxor.u32 2147483648, %v2227_v40  ;;  %v7120_v24 = vshrl.u32 %v2038_v16, 30  ;;  %v7122_v41 = vor.u32 %v1803_v45, %v1802_v28 }
 0x1e8   : > { %v7124_v2 = vor.u32 %v1806_v4, %v1805_v54  ;;  %v7126_v57 = vor.u32 %v1809_v55, %v1808_v46  ;;  %v7128_v25 = vshll.u32 %v1793_v33, 8  ;;  %vm1817_vm15 = vcmp.lt.s32.totalorder %v7108_v60, 1 }
 0x1e9   : > { %v2240_v56 = vxor.u32 2147483648, %v2235_v52  ;;  %v2244_v39 = vsel %vm2242_vm9, %v2243_v0, %v2235_v52  ;;  %v4718_v9 = vsel %vm4716_vm12, %v2243_v0, %v2235_v52  ;;  %v2040_v36 = vshll.u32 %v7120_v24, 30 }
 0x1ea   : > { %v1813_v44 = vor.u32 %v1812_v53, %v1811_v47  ;;  %v1816_v22 = vor.u32 %v1815_v5, %v1814_v18  ;;  %vm1820_vm0 = vcmp.lt.s32.totalorder %v7108_v60, 4  ;;  %vm1819_vm1 = vcmp.lt.s32.totalorder %v7108_v60, 3 }
 0x1eb   : > { %v2241_v23 = vsel %vm2239_vm7, %v2227_v40, %v2240_v56  ;;  %v4715_v34 = vsel %vm4713_vm14, %v2227_v40, %v2240_v56  ;;  %v2041_v19 = vsub.s32 %v2037_v59, %v2040_v36  ;;  %vm1818_vm4 = vcmp.lt.s32.totalorder %v7108_v60, 2 }
 0x1ec   : > { %v2245_v29 = vsel %vm2238_vm8, %v2241_v23, %v2244_v39  ;;  %v4719_v49 = vsel %vm4712_vm13, %v4715_v34, %v4718_v9  ;;  %v1826_v11 = vsel %vm1820_vm0, %v1813_v44, 920167782  ;;  %v1829_v14 = vsel %vm1817_vm15, %v7124_v2, %v7126_v57 }
 0x1ed   : > { %v2246_v63 = vsel %vm2236_vm11, nan, %v2245_v29  ;;  %v4720_v58 = vsel %vm2236_vm11, nan, %v4719_v49  ;;  %vm2042_vm3 = vcmp.lt.s32.totalorder %v2041_v19, 0  ;;  %v2043_v51 = vsub.s32 0, %v2041_v19 }
 0x1ee   : > { %5657 = vmatpush.msra.mxu0 %v2246_v63  ;;  %5677 = vmatpush.msra.mxu1 %v4720_v58  ;;  %v1830_v43 = vsel %vm1820_vm0, %v1816_v22, 1326507024  ;;  %v633_v38 = vmul.f32 0.00390625, %v7048_v37  ;;  %v1825_v61 = vsel %vm1817_vm15, %v7122_v41, %v7124_v2  ;;  %v1834_v3 = vand.u32 65535, %v7128_v25 }
 0x1ef   : > { %v2044_v50 = vsel %vm2042_vm3, %v2043_v51, %v2041_v19  ;;  %v1831_v7 = vsel %vm1819_vm1, %v1813_v44, %v1830_v43  ;;  %v1827_v33 = vsel %vm1819_vm1, %v7126_v57, %v1826_v11  ;;  %v1835_v40 = vshrl.u32 %v7128_v25, 16 }
 0x1f0   : > { %v2045_v13 = vclz %v2044_v50  ;;  %v1832_v28 = vsel %vm1818_vm4, %v1829_v14, %v1831_v7  ;;  %v1828_v45 = vsel %vm1818_vm4, %v1825_v61, %v1827_v33  ;;  %v2033_v46 = vadd.s32 %v7081_v17, %v7087_v48 }
 0x1f1   : > { %v1836_v62 = vand.u32 65535, %v1832_v28  ;;  %v1837_v59 = vshrl.u32 %v1832_v28, 16  ;;  %v649_v52 = vfloor.f32 %v633_v38  ;;  %v1858_v53 = vand.u32 65535, %v1828_v45 }
 0x1f2   : > { %v5836_v54 = vadd.s32 4294967294, %v2045_v13  ;;  %v1859_v39 = vshrl.u32 %v1828_v45, 16  ;;  %vm1941_vm2 = vcmp.lt.s32.totalorder %v6953_v32, 0  ;;  %v2063_v9 = vsub.s32 4, %v7120_v24 }
 0x1f3   : > { %v1839_v4 = vmul.u32 %v1837_v59, %v1834_v3  ;;  %v1840_v55 = vmul.u32 %v1836_v62, %v1835_v40  ;;  %v1838_v16 = vmul.u32 %v1836_v62, %v1834_v3  ;;  %v1801_v23 = vshrl.u32 %v6010_v10, %v7093_v35 }
 0x1f4   : > { %vm5837_vm5 = vcmp.lt.s32.totalorder %v5836_v54, 0  ;;  %v1841_v34 = vmul.u32 %v1837_v59, %v1835_v40  ;;  %v665_v29 = vmul.f32 256.0, %v649_v52  ;;  %v1860_v22 = vmul.u32 %v1858_v53, %v1834_v3 }
 0x1f5   : > { %v2048_v0 = vsel %vm5837_vm5, 0, %v5836_v54  ;;  %v1842_v47 = vshll.u32 %v1839_v4, 16  ;;  %v1844_v36 = vshll.u32 %v1840_v55, 16  ;;  %v1843_v49 = vshrl.u32 %v1839_v4, 16 }
 0x1f6   : > { %v2049_v18 = vsub.s32 32, %v2048_v0  ;;  %v2050_v5 = vshll.u32 %v2041_v19, %v2048_v0  ;;  %v2053_v56 = vsub.s32 4294967266, %v2048_v0  ;;  %v1861_v51 = vmul.u32 %v1859_v39, %v1834_v3 }
 0x1f7   : > { %vm1846_vm6 = vc.u32 %v1838_v16, %v1842_v47  ;;  %v1848_v44 = vadd.s32 %v1842_v47, %v1838_v16  ;;  %v1862_v14 = vmul.u32 %v1858_v53, %v1835_v40  ;;  %v1863_v43 = vmul.u32 %v1859_v39, %v1835_v40 }
 0x1f8   : > { %v2051_v17 = vshrl.u32 %v2033_v46, %v2049_v18  ;;  %v2054_v48 = vadd.s32 127, %v2053_v56  ;;  %v1847_v19 = vsel %vm1846_vm6, 1, %v6008_v1  ;;  %v1864_v61 = vshll.u32 %v1861_v51, 16 }
 0x1f9   : > { %v1849_v11 = vadd.s32 %v1847_v19, %v1841_v34  ;;  %vm1850_vm7 = vc.u32 %v1848_v44, %v1844_v36  ;;  %v2064_v7 = vsel %vm1941_vm2, %v2063_v9, %v7120_v24  ;;  %v1822_v13 = vsel %vm1820_vm0, %v7126_v57, 2102212464 }
 0x1fa   : > { %v2052_v63 = vor.u32 %v2051_v17, %v2050_v5  ;;  %v2055_v58 = vshll.u32 %v2054_v48, 23  ;;  %v1851_v50 = vsel %vm1850_vm7, 1, %v6008_v1  ;;  %v1866_v28 = vshll.u32 %v1862_v14, 16 }
 0x1fb   : > { %v1853_v33 = vadd.s32 %v1851_v50, %v1849_v11  ;;  %vm1868_vm8 = vc.u32 %v1860_v22, %v1864_v61  ;;  %v1870_v62 = vadd.s32 %v1864_v61, %v1860_v22  ;;  %v681_v40 = vsub.f32 %v7048_v37, %v665_v29 }
 0x1fc   : > { %v2056_v38 = vor.u32 4788187, %v2055_v58  ;;  %v2059_v35 = vcvt.s32.f32 %v2052_v63  ;;  %v1845_v59 = vshrl.u32 %v1840_v55, 16  ;;  %v1869_v45 = vsel %vm1868_vm8, 1, %v6008_v1 }
 0x1fd   : > { %v1854_v54 = vadd.s32 %v1853_v33, %v1843_v49  ;;  %v558_v4 = vadd.s32 40, %v6140_v21  ;;  %v1865_v52 = vshrl.u32 %v1861_v51, 16  ;;  %v1871_v24 = vadd.s32 %v1869_v45, %v1863_v43 }
 0x1fe   : > { %v2057_v3 = vand.u32 2147483647, %v2056_v38  ;;  %vm1872_vm11 = vc.u32 %v1870_v62, %v1866_v28  ;;  %v1821_v57 = vsel %vm1817_vm15, %v1801_v23, %v7122_v41  ;;  %v1823_v0 = vsel %vm1819_vm1, %v7124_v2, %v1822_v13 }
 0x1ff   : > { %v1873_v37 = vsel %vm1872_vm11, 1, %v6008_v1  ;;  %v7195_v55 = vmul.f32 0.024543693, %v681_v40  ;;  %vm1940_vm9 = vcmp.le.f32.partialorder %v1939_v42, 0.7853982  ;;  %v1867_v47 = vshrl.u32 %v1862_v14, 16 }
 0x200   : > { %v2060_v46 = vmul.f32 %v2059_v35, %v2057_v3  ;;  %v1875_v53 = vadd.s32 %v1873_v37, %v1871_v24  ;;  %v2066_v18 = vsel %vm1940_vm9, 0, %v2064_v7  ;;  %v7199_v5 = vadd.s32 %v1854_v54, %v1845_v59 }
 0x201   : > { %v7201_v56 = vadd.s32 %v1870_v62, %v1866_v28  ;;  %v1634_v41 = vand.u32 2139095040, %v7195_v55  ;;  %v1824_v39 = vsel %vm1818_vm4, %v1821_v57, %v1823_v0  ;;  %v574_v23 = vcvt.s32.f32 %v558_v4 }
 0x202   : > { %v2061_v16 = vxor.u32 2147483648, %v2060_v46  ;;  %v1876_v9 = vadd.s32 %v1875_v53, %v1865_v52  ;;  %v4555_v48 = vadd.s32 3, %v2066_v18  ;;  %v1878_v29 = vmul.u32 %v7128_v25, %v1824_v39 }
 0x203   : > { %v1635_v34 = vshrl.u32 %v1634_v41, 23  ;;  %vm1880_vm13 = vc.u32 %v7199_v5, %v7201_v56  ;;  %v596_v60 = vadd.f32 %v6145_v27, %v574_v23  ;;  %v7213_v58 = vand.u32 3, %v2066_v18 }
 0x204   : > { %v2062_v2 = vsel %vm1941_vm2, %v2061_v16, %v2060_v46  ;;  %v1877_v36 = vadd.s32 %v1876_v9, %v1867_v47  ;;  %v4556_v14 = vand.u32 3, %v4555_v48  ;;  %v1631_v35 = vand.u32 2147483647, %v7195_v55 }
 0x205   : > { %v2065_v42 = vsel %vm1940_vm9, %v6953_v32, %v2062_v2  ;;  %v5829_v49 = vadd.s32 4294967169, %v1635_v34  ;;  %v7217_v7 = vmul.f32 %v6148_v30, %v596_v60  ;;  %vm2085_vm10 = vcmp.eq.s32.totalorder %v7213_v58, 0 }
 0x206   : > { %v2067_v17 = vmul.f32 %v2065_v42, %v2065_v42  ;;  %v1881_v63 = vadd.s32 1, %v1877_v36  ;;  %vm2084_vm12 = vcmp.lt.s32.totalorder %v7213_v58, 2  ;;  %vm2088_vm15 = vcmp.eq.s32.totalorder %v7213_v58, 2 }
 0x207   : > { %v1641_v19 = vadd.s32 1, %v5829_v49  ;;  %vm4558_vm0 = vcmp.eq.s32.totalorder %v4556_v14, 0  ;;  %vm2082_vm1 = vweird.f32 %v6953_v32  ;;  %vm4557_vm3 = vcmp.lt.s32.totalorder %v4556_v14, 2 }
 0x208   : > { %v2068_v44 = vmul.f32 -0.001358992, %v2067_v17  ;;  %v2075_v22 = vmul.f32 -0.00019511016, %v2067_v17  ;;  %v1882_v43 = vsel %vm1880_vm13, %v1881_v63, %v1877_v36  ;;  %vm4561_vm4 = vcmp.eq.s32.totalorder %v4556_v14, 2 }
 0x209   : > { %v1883_v38 = vadd.s32 %v1882_v43, %v1878_v29  ;;  %vm1642_vm14 = vcmp.gt.s32.totalorder %v1641_v19, 0  ;;  %v1638_v45 = vand.u32 8388607, %v1631_v35  ;;  %v632_v4 = vmul.f32 0.00390625, %v7217_v7 }
 0x20a   : > { %v2069_v51 = vadd.f32 0.041655596, %v2068_v44  ;;  %v2076_v11 = vadd.f32 0.008332121, %v2075_v22  ;;  %v1643_v61 = vsel %vm1642_vm14, %v1641_v19, 0  ;;  %vm1787_vm9 = vcmp.lt.s32.totalorder %v7039_v31, 0 }
 0x20b   : > { %v1884_v13 = vadd.s32 536870912, %v1883_v38  ;;  %v1645_v33 = vand.u32 31, %v1643_v61  ;;  %v1639_v23 = vor.u32 8388608, %v1638_v45  ;;  %v648_v34 = vfloor.f32 %v632_v4 }
 0x20c   : > { %v2070_v25 = vmul.f32 %v2069_v51, %v2067_v17  ;;  %v2077_v50 = vmul.f32 %v2076_v11, %v2067_v17  ;;  %v7243_v48 = vshrl.u32 %v1643_v61, 5  ;;  %vm7294_vm13 = vcmp.le.f32.partialorder %v1785_v8, 0.7853982 }
 0x20d   : > { %v7223_v62 = vshrl.u32 %v1884_v13, 30  ;;  %v7225_v40 = vsub.s32 32, %v1645_v33  ;;  %v1648_v52 = vshll.u32 %v6010_v10, %v1645_v33  ;;  %v1651_v57 = vshll.u32 %v6011_v12, %v1645_v33 }
 0x20e   : > { %v2071_v28 = vadd.f32 -0.4999988, %v2070_v25  ;;  %v2078_v3 = vadd.f32 -0.16666654, %v2077_v50  ;;  %v1654_v47 = vshll.u32 %v6012_v15, %v1645_v33  ;;  %v1657_v41 = vshll.u32 %v6009_v6, %v1645_v33 }
 0x20f   : > { %v1886_v46 = vshll.u32 %v7223_v62, 30  ;;  %v1649_v24 = vshrl.u32 %v6011_v12, %v7225_v40  ;;  %v1652_v16 = vshrl.u32 %v6012_v15, %v7225_v40  ;;  %v1655_v18 = vshrl.u32 %v6009_v6, %v7225_v40 }
 0x210   : > { %v2072_v59 = vmul.f32 %v2071_v28, %v2067_v17  ;;  %v2079_v54 = vmul.f32 %v2078_v3, %v2067_v17  ;;  %v1658_v2 = vshrl.u32 %v6013_v20, %v7225_v40  ;;  %vm1663_vm2 = vcmp.lt.s32.totalorder %v7243_v48, 1 }
 0x211   : > { %v1887_v53 = vsub.s32 %v1883_v38, %v1886_v46  ;;  %v1650_v36 = vor.u32 %v1649_v24, %v1648_v52  ;;  %v7248_v22 = vor.u32 %v1652_v16, %v1651_v57  ;;  %v1656_v60 = vor.u32 %v1655_v18, %v1654_v47 }
 0x212   : > { %v2073_v0 = vadd.f32 1.0, %v2072_v59  ;;  %v2080_v37 = vadd.f32 1.0, %v2079_v54  ;;  %v1659_v19 = vor.u32 %v1658_v2, %v1657_v41  ;;  %v1661_v38 = vshrl.u32 %v6014_v26, %v7225_v40 }
 0x213   : > { %vm1888_vm5 = vcmp.lt.s32.totalorder %v1887_v53, 0  ;;  %v1889_v17 = vsub.s32 0, %v1887_v53  ;;  %vm1666_vm6 = vcmp.lt.s32.totalorder %v7243_v48, 4  ;;  %vm1665_vm7 = vcmp.lt.s32.totalorder %v7243_v48, 3 }
 0x214   : > { %v2081_v39 = vmul.f32 %v2080_v37, %v2065_v42  ;;  %v2089_v9 = vxor.u32 2147483648, %v2073_v0  ;;  %v1660_v42 = vshll.u32 %v6013_v20, %v1645_v33  ;;  %v1672_v58 = vsel %vm1666_vm6, %v1659_v19, 920167782 }
 0x215   : > { %v1890_v63 = vsel %vm1888_vm5, %v1889_v17, %v1887_v53  ;;  %v7268_v14 = vshll.u32 %v1639_v23, 8  ;;  %v664_v28 = vmul.f32 256.0, %v648_v34  ;;  %v1879_v3 = vadd.s32 %v7201_v56, %v7199_v5 }
 0x216   : > { %v2086_v29 = vxor.u32 2147483648, %v2081_v39  ;;  %v2090_v49 = vsel %vm2088_vm15, %v2089_v9, %v2081_v39  ;;  %v4563_v44 = vsel %vm4561_vm4, %v2089_v9, %v2081_v39  ;;  %v1891_v43 = vclz %v1890_v63 }
 0x217   : > { %vm1664_vm11 = vcmp.lt.s32.totalorder %v7243_v48, 2  ;;  %v1662_v32 = vor.u32 %v1661_v38, %v1660_v42  ;;  %v1671_v54 = vsel %vm1663_vm2, %v1650_v36, %v7248_v22  ;;  %v1673_v45 = vsel %vm1665_vm7, %v1656_v60, %v1672_v58 }
 0x218   : > { %v2087_v51 = vsel %vm2085_vm10, %v2073_v0, %v2086_v29  ;;  %v4560_v11 = vsel %vm4558_vm0, %v2073_v0, %v2086_v29  ;;  %v5833_v33 = vadd.s32 4294967294, %v1891_v43  ;;  %v1909_v24 = vsub.s32 4, %v7223_v62 }
 0x219   : > { %v2091_v25 = vsel %vm2084_vm12, %v2087_v51, %v2090_v49  ;;  %v4564_v50 = vsel %vm4557_vm3, %v4560_v11, %v4563_v44  ;;  %v1680_v5 = vand.u32 65535, %v7268_v14  ;;  %v1681_v56 = vshrl.u32 %v7268_v14, 16 }
 0x21a   : > { %v2092_v61 = vsel %vm2082_vm1, nan, %v2091_v25  ;;  %v4565_v13 = vsel %vm2082_vm1, nan, %v4564_v50  ;;  %vm5834_vm8 = vcmp.lt.s32.totalorder %v5833_v33, 0  ;;  %v680_v57 = vsub.f32 %v7217_v7, %v664_v28 }
 0x21b   : > { %5658 = vmatpush.msra.mxu0 %v2092_v61  ;;  %5678 = vmatpush.msra.mxu1 %v4565_v13  ;;  %v1894_v59 = vsel %vm5834_vm8, 0, %v5833_v33  ;;  %v1647_v16 = vshrl.u32 %v6010_v10, %v7225_v40  ;;  %v1674_v47 = vsel %vm1664_vm11, %v1671_v54, %v1673_v45  ;;  %v1676_v18 = vsel %vm1666_vm6, %v1662_v32, 1326507024 }
 0x21c   : > { %v1895_v4 = vsub.s32 32, %v1894_v59  ;;  %v1896_v46 = vshll.u32 %v1887_v53, %v1894_v59  ;;  %v1899_v52 = vsub.s32 4294967266, %v1894_v59  ;;  %v1675_v53 = vsel %vm1663_vm2, %v7248_v22, %v1656_v60 }
 0x21d   : > { %v1704_v41 = vand.u32 65535, %v1674_v47  ;;  %v1705_v2 = vshrl.u32 %v1674_v47, 16  ;;  %v1677_v9 = vsel %vm1665_vm7, %v1659_v19, %v1676_v18  ;;  %v1910_v23 = vsel %vm1787_vm9, %v1909_v24, %v7223_v62 }
 0x21e   : > { %v1897_v0 = vshrl.u32 %v1879_v3, %v1895_v4  ;;  %v1900_v37 = vadd.s32 127, %v1899_v52  ;;  %v1668_v34 = vsel %vm1666_vm6, %v1656_v60, 2102212464  ;;  %v1678_v17 = vsel %vm1664_vm11, %v1675_v53, %v1677_v9 }
 0x21f   : > { %v7307_v29 = vmul.f32 0.024543693, %v680_v57  ;;  %v1682_v44 = vand.u32 65535, %v1678_v17  ;;  %v1683_v63 = vshrl.u32 %v1678_v17, 16  ;;  %v1667_v42 = vsel %vm1663_vm2, %v1647_v16, %v1650_v36 }
 0x220   : > { %v1898_v39 = vor.u32 %v1897_v0, %v1896_v46  ;;  %v1901_v40 = vshll.u32 %v1900_v37, 23  ;;  %v1706_v19 = vmul.u32 %v1704_v41, %v1680_v5  ;;  %v1707_v51 = vmul.u32 %v1705_v2, %v1680_v5 }
 0x221   : > { %v1708_v11 = vmul.u32 %v1704_v41, %v1681_v56  ;;  %v1684_v62 = vmul.u32 %v1682_v44, %v1680_v5  ;;  %v1685_v38 = vmul.u32 %v1683_v63, %v1680_v5  ;;  %v1686_v25 = vmul.u32 %v1682_v44, %v1681_v56 }
 0x222   : > { %v1902_v8 = vor.u32 4788187, %v1901_v40  ;;  %v1905_v49 = vcvt.s32.f32 %v1898_v39  ;;  %v1669_v60 = vsel %vm1665_vm7, %v7248_v22, %v1668_v34  ;;  %v1709_v50 = vmul.u32 %v1705_v2, %v1681_v56 }
 0x223   : > { %v1710_v61 = vshll.u32 %v1707_v51, 16  ;;  %v1712_v13 = vshll.u32 %v1708_v11, 16  ;;  %v1687_v58 = vmul.u32 %v1683_v63, %v1681_v56  ;;  %v1688_v28 = vshll.u32 %v1685_v38, 16 }
 0x224   : > { %v1903_v43 = vand.u32 2147483647, %v1902_v8  ;;  %v1690_v3 = vshll.u32 %v1686_v25, 16  ;;  %v1689_v59 = vshrl.u32 %v1685_v38, 16  ;;  %v1711_v36 = vshrl.u32 %v1707_v51, 16 }
 0x225   : > { %vm1714_vm14 = vc.u32 %v1706_v19, %v1710_v61  ;;  %v1716_v32 = vadd.s32 %v1710_v61, %v1706_v19  ;;  %vm1692_vm10 = vc.u32 %v1684_v62, %v1688_v28  ;;  %v1694_v45 = vadd.s32 %v1688_v28, %v1684_v62 }
 0x226   : > { %v1906_v33 = vmul.f32 %v1905_v49, %v1903_v43  ;;  %v1715_v4 = vsel %vm1714_vm14, 1, %v6008_v1  ;;  %v1693_v46 = vsel %vm1692_vm10, 1, %v6008_v1  ;;  %v1713_v52 = vshrl.u32 %v1708_v11, 16 }
 0x227   : > { %v1717_v22 = vadd.s32 %v1715_v4, %v1709_v50  ;;  %vm1718_vm12 = vc.u32 %v1716_v32, %v1712_v13  ;;  %v1695_v5 = vadd.s32 %v1693_v46, %v1687_v58  ;;  %vm1696_vm15 = vc.u32 %v1694_v45, %v1690_v3 }
 0x228   : > { %v1907_v54 = vxor.u32 2147483648, %v1906_v33  ;;  %v1719_v56 = vsel %vm1718_vm12, 1, %v6008_v1  ;;  %v1697_v0 = vsel %vm1696_vm15, 1, %v6008_v1  ;;  %v1480_v16 = vand.u32 2139095040, %v7307_v29 }
 0x229   : > { %v1721_v37 = vadd.s32 %v1719_v56, %v1717_v22  ;;  %v1912_v47 = vsel %vm7294_vm13, 0, %v1910_v23  ;;  %v1691_v18 = vshrl.u32 %v1686_v25, 16  ;;  %v1699_v41 = vadd.s32 %v1697_v0, %v1695_v5 }
 0x22a   : > { %v1908_v24 = vsel %vm1787_vm9, %v1907_v54, %v1906_v33  ;;  %v1670_v2 = vsel %vm1664_vm11, %v1667_v42, %v1669_v60  ;;  %v1481_v40 = vshrl.u32 %v1480_v16, 23  ;;  %v557_v9 = vadd.s32 32, %v6140_v21 }
 0x22b   : > { %v1911_v57 = vsel %vm7294_vm13, %v7039_v31, %v1908_v24  ;;  %v1722_v39 = vadd.s32 %v1721_v37, %v1711_v36  ;;  %v1700_v8 = vadd.s32 %v1699_v41, %v1689_v59  ;;  %v7329_v49 = vadd.s32 %v1716_v32, %v1712_v13 }
 0x22c   : > { %v1913_v53 = vmul.f32 %v1911_v57, %v1911_v57  ;;  %v4400_v44 = vadd.s32 3, %v1912_v47  ;;  %v1477_v7 = vand.u32 2147483647, %v7307_v29  ;;  %v5826_v23 = vadd.s32 4294967169, %v1481_v40 }
 0x22d   : > { %v1723_v63 = vadd.s32 %v1722_v39, %v1713_v52  ;;  %v7332_v11 = vadd.s32 %v1700_v8, %v1691_v18  ;;  %v1724_v48 = vmul.u32 %v7268_v14, %v1670_v2  ;;  %v1929_v42 = vand.u32 3, %v1912_v47 }
 0x22e   : > { %v1914_v34 = vmul.f32 -0.001358992, %v1913_v53  ;;  %v1921_v17 = vmul.f32 -0.00019511016, %v1913_v53  ;;  %v1487_v62 = vadd.s32 1, %v5826_v23  ;;  %v573_v38 = vcvt.s32.f32 %v557_v9 }
 0x22f   : > { %v1727_v43 = vadd.s32 1, %v1723_v63  ;;  %vm1726_vm0 = vc.u32 %v7332_v11, %v7329_v49  ;;  %v4401_v50 = vand.u32 3, %v4400_v44  ;;  %v1484_v13 = vand.u32 8388607, %v1477_v7 }
 0x230   : > { %v1915_v19 = vadd.f32 0.041655596, %v1914_v34  ;;  %v1922_v51 = vadd.f32 0.008332121, %v1921_v17  ;;  %vm1488_vm1 = vcmp.gt.s32.totalorder %v1487_v62, 0  ;;  %vm1928_vm3 = vweird.f32 %v7039_v31 }
 0x231   : > { %v1728_v61 = vsel %vm1726_vm0, %v1727_v43, %v1723_v63  ;;  %v1489_v3 = vsel %vm1488_vm1, %v1487_v62, 0  ;;  %vm1930_vm4 = vcmp.lt.s32.totalorder %v1929_v42, 2  ;;  %vm1931_vm5 = vcmp.eq.s32.totalorder %v1929_v42, 0 }
 0x232   : > { %v1916_v25 = vmul.f32 %v1915_v19, %v1913_v53  ;;  %v1923_v60 = vmul.f32 %v1922_v51, %v1913_v53  ;;  %v1729_v28 = vadd.s32 %v1728_v61, %v1724_v48  ;;  %v1491_v14 = vand.u32 31, %v1489_v3 }
 0x233   : > { %v595_v59 = vadd.f32 %v6145_v27, %v573_v38  ;;  %vm1934_vm2 = vcmp.eq.s32.totalorder %v1929_v42, 2  ;;  %vm4402_vm6 = vcmp.lt.s32.totalorder %v4401_v50, 2  ;;  %vm4403_vm7 = vcmp.eq.s32.totalorder %v4401_v50, 0 }
 0x234   : > { %v1917_v33 = vadd.f32 -0.4999988, %v1916_v25  ;;  %v1924_v58 = vadd.f32 -0.16666654, %v1923_v60  ;;  %v1730_v54 = vadd.s32 536870912, %v1729_v28  ;;  %vm4406_vm8 = vcmp.eq.s32.totalorder %v4401_v50, 2 }
 0x235   : > { %v1492_v45 = vsub.s32 32, %v1491_v14  ;;  %v1485_v22 = vor.u32 8388608, %v1484_v13  ;;  %v1494_v24 = vshll.u32 %v6010_v10, %v1491_v14  ;;  %v1497_v56 = vshll.u32 %v6011_v12, %v1491_v14 }
 0x236   : > { %v1918_v36 = vmul.f32 %v1917_v33, %v1913_v53  ;;  %v1925_v32 = vmul.f32 %v1924_v58, %v1913_v53  ;;  %v7341_v52 = vshrl.u32 %v1730_v54, 30  ;;  %v7347_v0 = vmul.f32 %v6148_v30, %v595_v59 }
 0x237   : > { %v1495_v5 = vshrl.u32 %v6011_v12, %v1492_v45  ;;  %v1500_v53 = vshll.u32 %v6012_v15, %v1491_v14  ;;  %v1498_v18 = vshrl.u32 %v6012_v15, %v1492_v45  ;;  %v1501_v41 = vshrl.u32 %v6009_v6, %v1492_v45 }
 0x238   : > { %v1919_v4 = vadd.f32 1.0, %v1918_v36  ;;  %v1926_v46 = vadd.f32 1.0, %v1925_v32  ;;  %v1732_v47 = vshll.u32 %v7341_v52, 30  ;;  %v1503_v2 = vshll.u32 %v6009_v6, %v1491_v14 }
 0x239   : > { %v1504_v39 = vshrl.u32 %v6013_v20, %v1492_v45  ;;  %v1496_v8 = vor.u32 %v1495_v5, %v1494_v24  ;;  %v1506_v44 = vshll.u32 %v6013_v20, %v1491_v14  ;;  %v1507_v63 = vshrl.u32 %v6014_v26, %v1492_v45 }
 0x23a   : > { %v1927_v37 = vmul.f32 %v1926_v46, %v1911_v57  ;;  %v1935_v16 = vxor.u32 2147483648, %v1919_v4  ;;  %v1733_v17 = vsub.s32 %v1729_v28, %v1732_v47  ;;  %v7357_v57 = vshrl.u32 %v1489_v3, 5 }
 0x23b   : > { %v1499_v62 = vor.u32 %v1498_v18, %v1497_v56  ;;  %v1505_v38 = vor.u32 %v1504_v39, %v1503_v2  ;;  %v1502_v13 = vor.u32 %v1501_v41, %v1500_v53  ;;  %v1508_v58 = vor.u32 %v1507_v63, %v1506_v44 }
 0x23c   : > { %v1932_v40 = vxor.u32 2147483648, %v1927_v37  ;;  %v1936_v9 = vsel %vm1934_vm2, %v1935_v16, %v1927_v37  ;;  %v4408_v34 = vsel %vm4406_vm8, %v1935_v16, %v1927_v37  ;;  %vm1734_vm11 = vcmp.lt.s32.totalorder %v1733_v17, 0 }
 0x23d   : > { %v1735_v51 = vsub.s32 0, %v1733_v17  ;;  %vm1509_vm9 = vcmp.lt.s32.totalorder %v7357_v57, 1  ;;  %v7370_v42 = vshll.u32 %v1485_v22, 8  ;;  %vm7374_vm13 = vcmp.le.f32.partialorder %v1631_v35, 0.7853982 }
 0x23e   : > { %v1933_v23 = vsel %vm1931_vm5, %v1919_v4, %v1932_v40  ;;  %v4405_v19 = vsel %vm4403_vm7, %v1919_v4, %v1932_v40  ;;  %vm1511_vm14 = vcmp.lt.s32.totalorder %v7357_v57, 3  ;;  %vm1512_vm10 = vcmp.lt.s32.totalorder %v7357_v57, 4 }
 0x23f   : > { %v1937_v48 = vsel %vm1930_vm4, %v1933_v23, %v1936_v9  ;;  %v4409_v43 = vsel %vm4402_vm6, %v4405_v19, %v4408_v34  ;;  %v1736_v61 = vsel %vm1734_vm11, %v1735_v51, %v1733_v17  ;;  %v1755_v28 = vsub.s32 4, %v7341_v52 }
 0x240   : > { %v1938_v25 = vsel %vm1928_vm3, nan, %v1937_v48  ;;  %v4410_v60 = vsel %vm1928_vm3, nan, %v4409_v43  ;;  %v1737_v33 = vclz %v1736_v61  ;;  %v1518_v3 = vsel %vm1512_vm10, %v1505_v38, 920167782 }
 0x241   : > { %5659 = vmatpush.msra.mxu0 %v1938_v25  ;;  %5679 = vmatpush.msra.mxu1 %v4410_v60  ;;  %v631_v14 = vmul.f32 0.00390625, %v7347_v0  ;;  %vm1510_vm12 = vcmp.lt.s32.totalorder %v7357_v57, 2  ;;  %v1517_v35 = vsel %vm1509_vm9, %v1496_v8, %v1499_v62  ;;  %v1519_v59 = vsel %vm1511_vm14, %v1502_v13, %v1518_v3 }
 0x242   : > { %v5830_v31 = vadd.s32 4294967294, %v1737_v33  ;;  %v1522_v36 = vsel %vm1512_vm10, %v1508_v58, 1326507024  ;;  %vm1633_vm15 = vcmp.lt.s32.totalorder %v7195_v55, 0  ;;  %v1725_v32 = vadd.s32 %v7329_v49, %v7332_v11 }
 0x243   : > { %v1526_v54 = vand.u32 65535, %v7370_v42  ;;  %v1493_v46 = vshrl.u32 %v6010_v10, %v1492_v45  ;;  %v1521_v22 = vsel %vm1509_vm9, %v1499_v62, %v1502_v13  ;;  %v1523_v24 = vsel %vm1511_vm14, %v1505_v38, %v1522_v36 }
 0x244   : > { %vm5831_vm0 = vcmp.lt.s32.totalorder %v5830_v31, 0  ;;  %v1520_v16 = vsel %vm1510_vm12, %v1517_v35, %v1519_v59  ;;  %v1756_v49 = vsel %vm1633_vm15, %v1755_v28, %v7341_v52  ;;  %v1527_v11 = vshrl.u32 %v7370_v42, 16 }
 0x245   : > { %v1740_v4 = vsel %vm5831_vm0, 0, %v5830_v31  ;;  %v647_v47 = vfloor.f32 %v631_v14  ;;  %v7407_v45 = vadd.s32 24, %v6140_v21  ;;  %v1514_v41 = vsel %vm1512_vm10, %v1502_v13, 2102212464 }
 0x246   : > { %v1741_v5 = vsub.s32 32, %v1740_v4  ;;  %v1742_v56 = vshll.u32 %v1733_v17, %v1740_v4  ;;  %v1745_v37 = vsub.s32 4294967266, %v1740_v4  ;;  %v1524_v2 = vsel %vm1510_vm12, %v1521_v22, %v1523_v24 }
 0x247   : > { %v1528_v39 = vand.u32 65535, %v1524_v2  ;;  %v1529_v40 = vshrl.u32 %v1524_v2, 16  ;;  %v1550_v9 = vand.u32 65535, %v1520_v16  ;;  %v1551_v34 = vshrl.u32 %v1520_v16, 16 }
 0x248   : > { %v1743_v53 = vshrl.u32 %v1725_v32, %v1741_v5  ;;  %v1746_v18 = vadd.s32 127, %v1745_v37  ;;  %v1758_v44 = vsel %vm7374_vm13, 0, %v1756_v49  ;;  %v1513_v63 = vsel %vm1509_vm9, %v1493_v46, %v1496_v8 }
 0x249   : > { %v1530_v23 = vmul.u32 %v1528_v39, %v1526_v54  ;;  %v1531_v19 = vmul.u32 %v1529_v40, %v1526_v54  ;;  %v1532_v51 = vmul.u32 %v1528_v39, %v1527_v11  ;;  %v663_v48 = vmul.f32 256.0, %v647_v47 }
 0x24a   : > { %v1744_v17 = vor.u32 %v1743_v53, %v1742_v56  ;;  %v1747_v52 = vshll.u32 %v1746_v18, 23  ;;  %v1515_v25 = vsel %vm1511_vm14, %v1499_v62, %v1514_v41  ;;  %v1553_v60 = vmul.u32 %v1551_v34, %v1526_v54 }
 0x24b   : > { %v1533_v61 = vmul.u32 %v1529_v40, %v1527_v11  ;;  %v1534_v13 = vshll.u32 %v1531_v19, 16  ;;  %v1536_v33 = vshll.u32 %v1532_v51, 16  ;;  %v1552_v58 = vmul.u32 %v1550_v9, %v1526_v54 }
 0x24c   : > { %v1748_v43 = vor.u32 4788187, %v1747_v52  ;;  %v1751_v38 = vcvt.s32.f32 %v1744_v17  ;;  %v1535_v28 = vshrl.u32 %v1531_v19, 16  ;;  %v1554_v3 = vmul.u32 %v1550_v9, %v1527_v11 }
 0x24d   : > { %v1556_v14 = vshll.u32 %v1553_v60, 16  ;;  %vm1538_vm1 = vc.u32 %v1530_v23, %v1534_v13  ;;  %v1540_v8 = vadd.s32 %v1534_v13, %v1530_v23  ;;  %v1555_v35 = vmul.u32 %v1551_v34, %v1527_v11 }
 0x24e   : > { %v1749_v31 = vand.u32 2147483647, %v1748_v43  ;;  %v679_v59 = vsub.f32 %v7347_v0, %v663_v48  ;;  %v1537_v32 = vshrl.u32 %v1532_v51, 16  ;;  %v1539_v4 = vsel %vm1538_vm1, 1, %v6008_v1 }
 0x24f   : > { %v1558_v46 = vshll.u32 %v1554_v3, 16  ;;  %v1541_v62 = vadd.s32 %v1539_v4, %v1533_v61  ;;  %vm1542_vm3 = vc.u32 %v1540_v8, %v1536_v33  ;;  %vm1560_vm4 = vc.u32 %v1552_v58, %v1556_v14 }
 0x250   : > { %v1752_v36 = vmul.f32 %v1751_v38, %v1749_v31  ;;  %v1562_v22 = vadd.s32 %v1556_v14, %v1552_v58  ;;  %v1543_v54 = vsel %vm1542_vm3, 1, %v6008_v1  ;;  %v1561_v5 = vsel %vm1560_vm4, 1, %v6008_v1 }
 0x251   : > { %v7423_v56 = vmul.f32 0.024543693, %v679_v59  ;;  %v1545_v37 = vadd.s32 %v1543_v54, %v1541_v62  ;;  %v1557_v16 = vshrl.u32 %v1553_v60, 16  ;;  %v1563_v49 = vadd.s32 %v1561_v5, %v1555_v35 }
 0x252   : > { %v1753_v24 = vxor.u32 2147483648, %v1752_v36  ;;  %vm1564_vm5 = vc.u32 %v1562_v22, %v1558_v46  ;;  %v1559_v11 = vshrl.u32 %v1554_v3, 16  ;;  %v1516_v9 = vsel %vm1510_vm12, %v1513_v63, %v1515_v25 }
 0x253   : > { %v1565_v47 = vsel %vm1564_vm5, 1, %v6008_v1  ;;  %v1326_v53 = vand.u32 2139095040, %v7423_v56  ;;  %v1546_v41 = vadd.s32 %v1545_v37, %v1535_v28  ;;  %v1323_v39 = vand.u32 2147483647, %v7423_v56 }
 0x254   : > { %v1754_v0 = vsel %vm1633_vm15, %v1753_v24, %v1752_v36  ;;  %v1567_v2 = vadd.s32 %v1565_v47, %v1563_v49  ;;  %v7435_v34 = vadd.s32 %v1562_v22, %v1558_v46  ;;  %v4245_v52 = vadd.s32 3, %v1758_v44 }
 0x255   : > { %v1757_v18 = vsel %vm7374_vm13, %v7195_v55, %v1754_v0  ;;  %v1327_v17 = vshrl.u32 %v1326_v53, 23  ;;  %v7437_v23 = vadd.s32 %v1546_v41, %v1537_v32  ;;  %v7439_v43 = vand.u32 3, %v1758_v44 }
 0x256   : > { %v1759_v40 = vmul.f32 %v1757_v18, %v1757_v18  ;;  %v1568_v19 = vadd.s32 %v1567_v2, %v1557_v16  ;;  %v1570_v60 = vmul.u32 %v7370_v42, %v1516_v9  ;;  %v1330_v61 = vand.u32 8388607, %v1323_v39 }
 0x257   : > { %v5823_v50 = vadd.s32 4294967169, %v1327_v17  ;;  %v572_v57 = vcvt.s32.f32 %v7407_v45  ;;  %vm1572_vm2 = vc.u32 %v7437_v23, %v7435_v34  ;;  %v4246_v33 = vand.u32 3, %v4245_v52 }
 0x258   : > { %v1760_v51 = vmul.f32 -0.001358992, %v1759_v40  ;;  %v1767_v48 = vmul.f32 -0.00019511016, %v1759_v40  ;;  %v1569_v38 = vadd.s32 %v1568_v19, %v1559_v11  ;;  %vm1776_vm7 = vcmp.lt.s32.totalorder %v7439_v43, 2 }
 0x259   : > { %v1333_v13 = vadd.s32 1, %v5823_v50  ;;  %v594_v42 = vadd.f32 %v6145_v27, %v572_v57  ;;  %v1331_v35 = vor.u32 8388608, %v1330_v61  ;;  %vm1774_vm8 = vweird.f32 %v7195_v55 }
 0x25a   : > { %v1761_v63 = vadd.f32 0.041655596, %v1760_v51  ;;  %v1768_v25 = vadd.f32 0.008332121, %v1767_v48  ;;  %v1573_v58 = vadd.s32 1, %v1569_v38  ;;  %vm1777_vm11 = vcmp.eq.s32.totalorder %v7439_v43, 0 }
 0x25b   : > { %vm1334_vm6 = vcmp.gt.s32.totalorder %v1333_v13, 0  ;;  %vm1780_vm9 = vcmp.eq.s32.totalorder %v7439_v43, 2  ;;  %vm4248_vm13 = vcmp.eq.s32.totalorder %v4246_v33, 0  ;;  %vm4251_vm14 = vcmp.eq.s32.totalorder %v4246_v33, 2 }
 0x25c   : > { %v1762_v31 = vmul.f32 %v1761_v63, %v1759_v40  ;;  %v1769_v44 = vmul.f32 %v1768_v25, %v1759_v40  ;;  %v1574_v28 = vsel %vm1572_vm2, %v1573_v58, %v1569_v38  ;;  %v1335_v3 = vsel %vm1334_vm6, %v1333_v13, 0 }
 0x25d   : > { %v1575_v45 = vadd.s32 %v1574_v28, %v1570_v60  ;;  %v1337_v59 = vand.u32 31, %v1335_v3  ;;  %vm4247_vm10 = vcmp.lt.s32.totalorder %v4246_v33, 2  ;;  %v7456_v22 = vmul.f32 %v6148_v30, %v594_v42 }
 0x25e   : > { %v1763_v14 = vadd.f32 -0.4999988, %v1762_v31  ;;  %v1770_v8 = vadd.f32 -0.16666654, %v1769_v44  ;;  %v7460_v37 = vshll.u32 %v1331_v35, 8  ;;  %v7469_v2 = vshrl.u32 %v1335_v3, 5 }
 0x25f   : > { %v1576_v4 = vadd.s32 536870912, %v1575_v45  ;;  %v7452_v46 = vsub.s32 32, %v1337_v59  ;;  %v1343_v62 = vshll.u32 %v6011_v12, %v1337_v59  ;;  %v1346_v49 = vshll.u32 %v6012_v15, %v1337_v59 }
 0x260   : > { %v1764_v36 = vmul.f32 %v1763_v14, %v1759_v40  ;;  %v1771_v32 = vmul.f32 %v1770_v8, %v1759_v40  ;;  %v1349_v11 = vshll.u32 %v6009_v6, %v1337_v59  ;;  %v1340_v40 = vshll.u32 %v6010_v10, %v1337_v59 }
 0x261   : > { %v7458_v5 = vshrl.u32 %v1576_v4, 30  ;;  %v1344_v16 = vshrl.u32 %v6012_v15, %v7452_v46  ;;  %v1347_v0 = vshrl.u32 %v6009_v6, %v7452_v46  ;;  %v1341_v9 = vshrl.u32 %v6011_v12, %v7452_v46 }
 0x262   : > { %v1765_v24 = vadd.f32 1.0, %v1764_v36  ;;  %v1772_v54 = vadd.f32 1.0, %v1771_v32  ;;  %v1350_v52 = vshrl.u32 %v6013_v20, %v7452_v46  ;;  %v1352_v60 = vshll.u32 %v6013_v20, %v1337_v59 }
 0x263   : > { %v1578_v41 = vshll.u32 %v7458_v5, 30  ;;  %v7474_v17 = vor.u32 %v1344_v16, %v1343_v62  ;;  %v7481_v50 = vor.u32 %v1347_v0, %v1346_v49  ;;  %v1353_v61 = vshrl.u32 %v6014_v26, %v7452_v46 }
 0x264   : > { %v1773_v47 = vmul.f32 %v1772_v54, %v1757_v18  ;;  %v1781_v53 = vxor.u32 2147483648, %v1765_v24  ;;  %v1351_v38 = vor.u32 %v1350_v52, %v1349_v11  ;;  %vm1355_vm15 = vcmp.lt.s32.totalorder %v7469_v2, 1 }
 0x265   : > { %v1579_v48 = vsub.s32 %v1575_v45, %v1578_v41  ;;  %v1354_v31 = vor.u32 %v1353_v61, %v1352_v60  ;;  %v630_v42 = vmul.f32 0.00390625, %v7456_v22  ;;  %v1342_v8 = vor.u32 %v1341_v9, %v1340_v40 }
 0x266   : > { %v1778_v19 = vxor.u32 2147483648, %v1773_v47  ;;  %v1782_v51 = vsel %vm1780_vm9, %v1781_v53, %v1773_v47  ;;  %v4253_v18 = vsel %vm4251_vm14, %v1781_v53, %v1773_v47  ;;  %vm1357_vm0 = vcmp.lt.s32.totalorder %v7469_v2, 3 }
 0x267   : > { %vm1580_vm12 = vcmp.lt.s32.totalorder %v1579_v48, 0  ;;  %v1581_v25 = vsub.s32 0, %v1579_v48  ;;  %vm1358_vm1 = vcmp.lt.s32.totalorder %v7469_v2, 4  ;;  %vm1356_vm3 = vcmp.lt.s32.totalorder %v7469_v2, 2 }
 0x268   : > { %v1779_v57 = vsel %vm1777_vm11, %v1765_v24, %v1778_v19  ;;  %v4250_v63 = vsel %vm4248_vm13, %v1765_v24, %v1778_v19  ;;  %v1364_v43 = vsel %vm1358_vm1, %v1351_v38, 920167782  ;;  %v1367_v55 = vsel %vm1355_vm15, %v7474_v17, %v7481_v50 }
 0x269   : > { %v1783_v13 = vsel %vm1776_vm7, %v1779_v57, %v1782_v51  ;;  %v4254_v58 = vsel %vm4247_vm10, %v4250_v63, %v4253_v18  ;;  %v1582_v3 = vsel %vm1580_vm12, %v1581_v25, %v1579_v48  ;;  %v1368_v45 = vsel %vm1358_vm1, %v1354_v31, 1326507024 }
 0x26a   : > { %v1784_v44 = vsel %vm1774_vm8, nan, %v1783_v13  ;;  %v4255_v28 = vsel %vm1774_vm8, nan, %v4254_v58  ;;  %v1583_v14 = vclz %v1582_v3  ;;  %v1571_v35 = vadd.s32 %v7435_v34, %v7437_v23 }
 0x26b   : > { %5660 = vmatpush.msra.mxu0 %v1784_v44  ;;  %5680 = vmatpush.msra.mxu1 %v4255_v28  ;;  %v1369_v59 = vsel %vm1357_vm0, %v1351_v38, %v1368_v45  ;;  %v1372_v36 = vand.u32 65535, %v7460_v37  ;;  %v646_v32 = vfloor.f32 %v630_v42  ;;  %v1363_v4 = vsel %vm1355_vm15, %v1342_v8, %v7474_v17 }
 0x26c   : > { %v5827_v33 = vadd.s32 4294967294, %v1583_v14  ;;  %v1365_v62 = vsel %vm1357_vm0, %v7481_v50, %v1364_v43  ;;  %v1370_v24 = vsel %vm1356_vm3, %v1367_v55, %v1369_v59  ;;  %v1373_v34 = vshrl.u32 %v7460_v37, 16 }
 0x26d   : > { %v1374_v23 = vand.u32 65535, %v1370_v24  ;;  %v1375_v16 = vshrl.u32 %v1370_v24, 16  ;;  %v1601_v47 = vsub.s32 4, %v7458_v5  ;;  %v1366_v53 = vsel %vm1356_vm3, %v1363_v4, %v1365_v62 }
 0x26e   : > { %vm5828_vm4 = vcmp.lt.s32.totalorder %v5827_v33, 0  ;;  %vm1479_vm5 = vcmp.lt.s32.totalorder %v7307_v29, 0  ;;  %v662_v9 = vmul.f32 256.0, %v646_v32  ;;  %v1396_v18 = vand.u32 65535, %v1366_v53 }
 0x26f   : > { %v1586_v54 = vsel %vm5828_vm4, 0, %v5827_v33  ;;  %v1376_v52 = vmul.u32 %v1374_v23, %v1372_v36  ;;  %v1377_v19 = vmul.u32 %v1375_v16, %v1372_v36  ;;  %v1378_v51 = vmul.u32 %v1374_v23, %v1373_v34 }
 0x270   : > { %v1587_v49 = vsub.s32 32, %v1586_v54  ;;  %v1588_v0 = vshll.u32 %v1579_v48, %v1586_v54  ;;  %v1591_v11 = vsub.s32 4294967266, %v1586_v54  ;;  %vm7529_vm2 = vcmp.le.f32.partialorder %v1477_v7, 0.7853982 }
 0x271   : > { %v1397_v61 = vshrl.u32 %v1366_v53, 16  ;;  %v555_v57 = vadd.s32 16, %v6140_v21  ;;  %v1602_v63 = vsel %vm1479_vm5, %v1601_v47, %v7458_v5  ;;  %v1339_v25 = vshrl.u32 %v6010_v10, %v7452_v46 }
 0x272   : > { %v1589_v41 = vshrl.u32 %v1571_v35, %v1587_v49  ;;  %v1592_v40 = vadd.s32 127, %v1591_v11  ;;  %v1379_v13 = vmul.u32 %v1375_v16, %v1373_v34  ;;  %v1380_v58 = vshll.u32 %v1377_v19, 16 }
 0x273   : > { %v1360_v7 = vsel %vm1358_vm1, %v7481_v50, 2102212464  ;;  %v1382_v28 = vshll.u32 %v1378_v51, 16  ;;  %v1398_v42 = vmul.u32 %v1396_v18, %v1372_v36  ;;  %v1399_v14 = vmul.u32 %v1397_v61, %v1372_v36 }
 0x274   : > { %v1590_v48 = vor.u32 %v1589_v41, %v1588_v0  ;;  %v1593_v60 = vshll.u32 %v1592_v40, 23  ;;  %vm1384_vm6 = vc.u32 %v1376_v52, %v1380_v58  ;;  %v1386_v3 = vadd.s32 %v1380_v58, %v1376_v52 }
 0x275   : > { %v1381_v55 = vshrl.u32 %v1377_v19, 16  ;;  %v1385_v5 = vsel %vm1384_vm6, 1, %v6008_v1  ;;  %v1400_v33 = vmul.u32 %v1396_v18, %v1373_v34  ;;  %v1401_v46 = vmul.u32 %v1397_v61, %v1373_v34 }
 0x276   : > { %v1594_v31 = vor.u32 4788187, %v1593_v60  ;;  %v1597_v44 = vcvt.s32.f32 %v1590_v48  ;;  %v1387_v45 = vadd.s32 %v1385_v5, %v1379_v13  ;;  %vm1388_vm7 = vc.u32 %v1386_v3, %v1382_v28 }
 0x277   : > { %v1402_v35 = vshll.u32 %v1399_v14, 16  ;;  %v1359_v32 = vsel %vm1355_vm15, %v1339_v25, %v1342_v8  ;;  %v1389_v50 = vsel %vm1388_vm7, 1, %v6008_v1  ;;  %v1404_v4 = vshll.u32 %v1400_v33, 16 }
 0x278   : > { %v1595_v43 = vand.u32 2147483647, %v1594_v31  ;;  %v1391_v62 = vadd.s32 %v1389_v50, %v1387_v45  ;;  %v678_v36 = vsub.f32 %v7456_v22, %v662_v9  ;;  %v1361_v23 = vsel %vm1357_vm0, %v7474_v17, %v1360_v7 }
 0x279   : > { %vm1406_vm8 = vc.u32 %v1398_v42, %v1402_v35  ;;  %v1408_v24 = vadd.s32 %v1402_v35, %v1398_v42  ;;  %v1383_v16 = vshrl.u32 %v1378_v51, 16  ;;  %v1403_v0 = vshrl.u32 %v1399_v14, 16 }
 0x27a   : > { %v1598_v59 = vmul.f32 %v1597_v44, %v1595_v43  ;;  %v1407_v34 = vsel %vm1406_vm8, 1, %v6008_v1  ;;  %v1392_v49 = vadd.s32 %v1391_v62, %v1381_v55  ;;  %v7554_v53 = vmul.f32 0.024543693, %v678_v36 }
 0x27b   : > { %v1409_v11 = vadd.s32 %v1407_v34, %v1401_v46  ;;  %vm1410_vm11 = vc.u32 %v1408_v24, %v1404_v4  ;;  %v571_v22 = vcvt.s32.f32 %v555_v57  ;;  %v1362_v17 = vsel %vm1356_vm3, %v1359_v32, %v1361_v23 }
 0x27c   : > { %v1599_v54 = vxor.u32 2147483648, %v1598_v59  ;;  %v1411_v47 = vsel %vm1410_vm11, 1, %v6008_v1  ;;  %v1405_v40 = vshrl.u32 %v1400_v33, 16  ;;  %v7561_v19 = vadd.s32 %v1392_v49, %v1383_v16 }
 0x27d   : > { %v1413_v9 = vadd.s32 %v1411_v47, %v1409_v11  ;;  %v7563_v51 = vadd.s32 %v1408_v24, %v1404_v4  ;;  %v1172_v18 = vand.u32 2139095040, %v7554_v53  ;;  %v1604_v48 = vsel %vm7529_vm2, 0, %v1602_v63 }
 0x27e   : > { %v1600_v8 = vsel %vm1479_vm5, %v1599_v54, %v1598_v59  ;;  %v593_v13 = vadd.f32 %v6145_v27, %v571_v22  ;;  %v1416_v58 = vmul.u32 %v7460_v37, %v1362_v17  ;;  %v4090_v28 = vadd.s32 3, %v1604_v48 }
 0x27f   : > { %v1603_v41 = vsel %vm7529_vm2, %v7307_v29, %v1600_v8  ;;  %v1414_v60 = vadd.s32 %v1413_v9, %v1403_v0  ;;  %v1173_v25 = vshrl.u32 %v1172_v18, 23  ;;  %vm1418_vm9 = vc.u32 %v7561_v19, %v7563_v51 }
 0x280   : > { %v1605_v52 = vmul.f32 %v1603_v41, %v1603_v41  ;;  %v7573_v14 = vmul.f32 %v6148_v30, %v593_v13  ;;  %v1621_v43 = vand.u32 3, %v1604_v48  ;;  %v1169_v5 = vand.u32 2147483647, %v7554_v53 }
 0x281   : > { %v1415_v2 = vadd.s32 %v1414_v60, %v1405_v40  ;;  %v5820_v7 = vadd.s32 4294967169, %v1173_v25  ;;  %vm1620_vm14 = vweird.f32 %v7307_v29  ;;  %v4091_v46 = vand.u32 3, %v4090_v28 }
 0x282   : > { %v1606_v61 = vmul.f32 -0.001358992, %v1605_v52  ;;  %v1613_v57 = vmul.f32 -0.00019511016, %v1605_v52  ;;  %v629_v4 = vmul.f32 0.00390625, %v7573_v14  ;;  %vm1622_vm10 = vcmp.lt.s32.totalorder %v1621_v43, 2 }
 0x283   : > { %v1419_v3 = vadd.s32 1, %v1415_v2  ;;  %v1179_v63 = vadd.s32 1, %v5820_v7  ;;  %vm1623_vm12 = vcmp.eq.s32.totalorder %v1621_v43, 0  ;;  %v1176_v62 = vand.u32 8388607, %v1169_v5 }
 0x284   : > { %v1607_v31 = vadd.f32 0.041655596, %v1606_v61  ;;  %v1614_v44 = vadd.f32 0.008332121, %v1613_v57  ;;  %vm1626_vm15 = vcmp.eq.s32.totalorder %v1621_v43, 2  ;;  %vm4092_vm0 = vcmp.lt.s32.totalorder %v4091_v46, 2 }
 0x285   : > { %v1420_v55 = vsel %vm1418_vm9, %v1419_v3, %v1415_v2  ;;  %vm1180_vm13 = vcmp.gt.s32.totalorder %v1179_v63, 0  ;;  %vm4093_vm1 = vcmp.eq.s32.totalorder %v4091_v46, 0  ;;  %vm4096_vm3 = vcmp.eq.s32.totalorder %v4091_v46, 2 }
 0x286   : > { %v1608_v42 = vmul.f32 %v1607_v31, %v1605_v52  ;;  %v1615_v38 = vmul.f32 %v1614_v44, %v1605_v52  ;;  %v1421_v45 = vadd.s32 %v1420_v55, %v1416_v58  ;;  %v1181_v35 = vsel %vm1180_vm13, %v1179_v63, 0 }
 0x287   : > { %v1183_v24 = vand.u32 31, %v1181_v35  ;;  %v645_v11 = vfloor.f32 %v629_v4  ;;  %v1177_v8 = vor.u32 8388608, %v1176_v62  ;;  %v7583_v47 = vshrl.u32 %v1181_v35, 5 }
 0x288   : > { %v1609_v33 = vadd.f32 -0.4999988, %v1608_v42  ;;  %v1616_v37 = vadd.f32 -0.16666654, %v1615_v38  ;;  %v1422_v50 = vadd.s32 536870912, %v1421_v45  ;;  %vm1325_vm8 = vcmp.lt.s32.totalorder %v7423_v56, 0 }
 0x289   : > { %v1184_v16 = vsub.s32 32, %v1183_v24  ;;  %v1186_v22 = vshll.u32 %v6010_v10, %v1183_v24  ;;  %v1189_v17 = vshll.u32 %v6011_v12, %v1183_v24  ;;  %v1195_v31 = vshll.u32 %v6009_v6, %v1183_v24 }
 0x28a   : > { %v1610_v59 = vmul.f32 %v1609_v33, %v1605_v52  ;;  %v1617_v32 = vmul.f32 %v1616_v37, %v1605_v52  ;;  %v7580_v23 = vshrl.u32 %v1422_v50, 30  ;;  %v661_v44 = vmul.f32 256.0, %v645_v11 }
 0x28b   : > { %v1187_v48 = vshrl.u32 %v6011_v12, %v1184_v16  ;;  %v1190_v60 = vshrl.u32 %v6012_v15, %v1184_v16  ;;  %v1193_v61 = vshrl.u32 %v6009_v6, %v1184_v16  ;;  %v1196_v42 = vshrl.u32 %v6013_v20, %v1184_v16 }
 0x28c   : > { %v1611_v36 = vadd.f32 1.0, %v1610_v59  ;;  %v1618_v54 = vadd.f32 1.0, %v1617_v32  ;;  %v1424_v0 = vshll.u32 %v7580_v23, 30  ;;  %v1198_v43 = vshll.u32 %v6013_v20, %v1183_v24 }
 0x28d   : > { %v1188_v63 = vor.u32 %v1187_v48, %v1186_v22  ;;  %v1199_v55 = vshrl.u32 %v6014_v26, %v1184_v16  ;;  %v1191_v33 = vor.u32 %v1190_v60, %v1189_v17  ;;  %vm1204_vm5 = vcmp.lt.s32.totalorder %v7583_v47, 4 }
 0x28e   : > { %v1619_v34 = vmul.f32 %v1618_v54, %v1603_v41  ;;  %v1627_v49 = vxor.u32 2147483648, %v1611_v36  ;;  %v1425_v18 = vsub.s32 %v1421_v45, %v1424_v0  ;;  %v1192_v41 = vshll.u32 %v6012_v15, %v1183_v24 }
 0x28f   : > { %v1197_v45 = vor.u32 %v1196_v42, %v1195_v31  ;;  %vm7606_vm2 = vcmp.le.f32.partialorder %v1323_v39, 0.7853982  ;;  %v1200_v35 = vor.u32 %v1199_v55, %v1198_v43  ;;  %vm1201_vm6 = vcmp.lt.s32.totalorder %v7583_v47, 1 }
 0x290   : > { %v1624_v40 = vxor.u32 2147483648, %v1619_v34  ;;  %v1628_v9 = vsel %vm1626_vm15, %v1627_v49, %v1619_v34  ;;  %v4098_v52 = vsel %vm4096_vm3, %v1627_v49, %v1619_v34  ;;  %vm1426_vm4 = vcmp.lt.s32.totalorder %v1425_v18, 0 }
 0x291   : > { %v1427_v13 = vsub.s32 0, %v1425_v18  ;;  %v1194_v37 = vor.u32 %v1193_v61, %v1192_v41  ;;  %vm1203_vm7 = vcmp.lt.s32.totalorder %v7583_v47, 3  ;;  %v1417_v59 = vadd.s32 %v7563_v51, %v7561_v19 }
 0x292   : > { %v1625_v57 = vsel %vm1623_vm12, %v1611_v36, %v1624_v40  ;;  %v4095_v25 = vsel %vm4093_vm1, %v1611_v36, %v1624_v40  ;;  %v1210_v32 = vsel %vm1204_vm5, %v1197_v45, 920167782  ;;  %v7617_v50 = vshll.u32 %v1177_v8, 8 }
 0x293   : > { %v1629_v2 = vsel %vm1622_vm10, %v1625_v57, %v1628_v9  ;;  %v4099_v58 = vsel %vm4092_vm0, %v4095_v25, %v4098_v52  ;;  %v1428_v3 = vsel %vm1426_vm4, %v1427_v13, %v1425_v18  ;;  %v1447_v39 = vsub.s32 4, %v7580_v23 }
 0x294   : > { %v1630_v7 = vsel %vm1620_vm14, nan, %v1629_v2  ;;  %v4100_v28 = vsel %vm1620_vm14, nan, %v4099_v58  ;;  %v1429_v38 = vclz %v1428_v3  ;;  %v677_v4 = vsub.f32 %v7573_v14, %v661_v44 }
 0x295   : > { %5661 = vmatpush.msra.mxu0 %v1630_v7  ;;  %5681 = vmatpush.msra.mxu1 %v4100_v28  ;;  %v7622_v62 = vadd.s32 8, %v6140_v21  ;;  %vm1202_vm9 = vcmp.lt.s32.totalorder %v7583_v47, 2  ;;  %v1209_v36 = vsel %vm1201_vm6, %v1188_v63, %v1191_v33  ;;  %v1211_v19 = vsel %vm1203_vm7, %v1194_v37, %v1210_v32 }
 0x296   : > { %v5824_v46 = vadd.s32 4294967294, %v1429_v38  ;;  %v1214_v49 = vsel %vm1204_vm5, %v1200_v35, 1326507024  ;;  %v1185_v14 = vshrl.u32 %v6010_v10, %v1184_v16  ;;  %v1213_v0 = vsel %vm1201_vm6, %v1191_v33, %v1194_v37 }
 0x297   : > { %v1218_v11 = vand.u32 65535, %v7617_v50  ;;  %v1219_v8 = vshrl.u32 %v7617_v50, 16  ;;  %v1448_v40 = vsel %vm1325_vm8, %v1447_v39, %v7580_v23  ;;  %v1212_v9 = vsel %vm1202_vm9, %v1209_v36, %v1211_v19 }
 0x298   : > { %vm5825_vm11 = vcmp.lt.s32.totalorder %v5824_v46, 0  ;;  %v1206_v52 = vsel %vm1204_vm5, %v1194_v37, 2102212464  ;;  %v1215_v16 = vsel %vm1203_vm7, %v1197_v45, %v1214_v49  ;;  %v1243_v48 = vshrl.u32 %v1212_v9, 16 }
 0x299   : > { %v1432_v24 = vsel %vm5825_vm11, 0, %v5824_v46  ;;  %v1216_v61 = vsel %vm1202_vm9, %v1213_v0, %v1215_v16  ;;  %v7647_v57 = vmul.f32 0.024543693, %v677_v4  ;;  %v1450_v23 = vsel %vm7606_vm2, 0, %v1448_v40 }
 0x29a   : > { %v1433_v51 = vsub.s32 32, %v1432_v24  ;;  %v1434_v54 = vshll.u32 %v1425_v18, %v1432_v24  ;;  %v1437_v34 = vsub.s32 4294967266, %v1432_v24  ;;  %v1242_v18 = vand.u32 65535, %v1212_v9 }
 0x29b   : > { %v1205_v25 = vsel %vm1201_vm6, %v1185_v14, %v1188_v63  ;;  %v1220_v13 = vand.u32 65535, %v1216_v61  ;;  %v1221_v2 = vshrl.u32 %v1216_v61, 16  ;;  %v1207_v44 = vsel %vm1203_vm7, %v1191_v33, %v1206_v52 }
 0x29c   : > { %v1435_v22 = vshrl.u32 %v1417_v59, %v1433_v51  ;;  %v1438_v17 = vadd.s32 127, %v1437_v34  ;;  %v1245_v7 = vmul.u32 %v1243_v48, %v1218_v11  ;;  %v1244_v38 = vmul.u32 %v1242_v18, %v1218_v11 }
 0x29d   : > { %v1222_v28 = vmul.u32 %v1220_v13, %v1218_v11  ;;  %v1223_v3 = vmul.u32 %v1221_v2, %v1218_v11  ;;  %v1224_v42 = vmul.u32 %v1220_v13, %v1219_v8  ;;  %v1225_v55 = vmul.u32 %v1221_v2, %v1219_v8 }
 0x29e   : > { %v1436_v60 = vor.u32 %v1435_v22, %v1434_v54  ;;  %v1439_v41 = vshll.u32 %v1438_v17, 23  ;;  %v1246_v37 = vmul.u32 %v1242_v18, %v1219_v8  ;;  %v1248_v45 = vshll.u32 %v1245_v7, 16 }
 0x29f   : > { %v1226_v46 = vshll.u32 %v1223_v3, 16  ;;  %v1227_v35 = vshrl.u32 %v1223_v3, 16  ;;  %v1228_v59 = vshll.u32 %v1224_v42, 16  ;;  %v1247_v63 = vmul.u32 %v1243_v48, %v1219_v8 }
 0x2a0   : > { %v1440_v58 = vor.u32 4788187, %v1439_v41  ;;  %v1443_v31 = vcvt.s32.f32 %v1436_v60  ;;  %v1229_v39 = vshrl.u32 %v1224_v42, 16  ;;  %v1249_v4 = vshrl.u32 %v1245_v7, 16 }
 0x2a1   : > { %v1250_v24 = vshll.u32 %v1246_v37, 16  ;;  %vm1230_vm13 = vc.u32 %v1222_v28, %v1226_v46  ;;  %v1232_v36 = vadd.s32 %v1226_v46, %v1222_v28  ;;  %vm1252_vm14 = vc.u32 %v1244_v38, %v1248_v45 }
 0x2a2   : > { %v1441_v43 = vand.u32 2147483647, %v1440_v58  ;;  %v1254_v33 = vadd.s32 %v1248_v45, %v1244_v38  ;;  %v1231_v51 = vsel %vm1230_vm13, 1, %v6008_v1  ;;  %v1253_v54 = vsel %vm1252_vm14, 1, %v6008_v1 }
 0x2a3   : > { %v1018_v34 = vand.u32 2139095040, %v7647_v57  ;;  %v1233_v49 = vadd.s32 %v1231_v51, %v1225_v55  ;;  %vm1234_vm10 = vc.u32 %v1232_v36, %v1228_v59  ;;  %v1255_v14 = vadd.s32 %v1253_v54, %v1247_v63 }
 0x2a4   : > { %v1444_v32 = vmul.f32 %v1443_v31, %v1441_v43  ;;  %vm1256_vm12 = vc.u32 %v1254_v33, %v1250_v24  ;;  %v1235_v11 = vsel %vm1234_vm10, 1, %v6008_v1  ;;  %v1251_v8 = vshrl.u32 %v1246_v37, 16 }
 0x2a5   : > { %v1257_v22 = vsel %vm1256_vm12, 1, %v6008_v1  ;;  %v1237_v40 = vadd.s32 %v1235_v11, %v1233_v49  ;;  %v1019_v52 = vshrl.u32 %v1018_v34, 23  ;;  %v3935_v18 = vadd.s32 3, %v1450_v23 }
 0x2a6   : > { %v1445_v19 = vxor.u32 2147483648, %v1444_v32  ;;  %v1259_v9 = vadd.s32 %v1257_v22, %v1255_v14  ;;  %v1208_v48 = vsel %vm1202_vm9, %v1205_v25, %v1207_v44  ;;  %v7667_v41 = vadd.s32 %v1254_v33, %v1250_v24 }
 0x2a7   : > { %v1238_v60 = vadd.s32 %v1237_v40, %v1227_v35  ;;  %v5817_v13 = vadd.s32 4294967169, %v1019_v52  ;;  %v570_v31 = vcvt.s32.f32 %v7622_v62  ;;  %v7670_v7 = vand.u32 3, %v1450_v23 }
 0x2a8   : > { %v1446_v0 = vsel %vm1325_vm8, %v1445_v19, %v1444_v32  ;;  %v1260_v61 = vadd.s32 %v1259_v9, %v1249_v4  ;;  %v7674_v43 = vand.u32 3, %v3935_v18  ;;  %v1262_v47 = vmul.u32 %v7617_v50, %v1208_v48 }
 0x2a9   : > { %v1449_v17 = vsel %vm7606_vm2, %v7423_v56, %v1446_v0  ;;  %v7672_v29 = vadd.s32 %v1238_v60, %v1229_v39  ;;  %v1025_v3 = vadd.s32 1, %v5817_v13  ;;  %v1015_v44 = vand.u32 2147483647, %v7647_v57 }
 0x2aa   : > { %v1451_v16 = vmul.f32 %v1449_v17, %v1449_v17  ;;  %v1261_v28 = vadd.s32 %v1260_v61, %v1251_v8  ;;  %v592_v37 = vadd.f32 %v6145_v27, %v570_v31  ;;  %vm1469_vm1 = vcmp.eq.s32.totalorder %v7670_v7, 0 }
 0x2ab   : > { %vm1264_vm15 = vc.u32 %v7672_v29, %v7667_v41  ;;  %vm1026_vm0 = vcmp.gt.s32.totalorder %v1025_v3, 0  ;;  %vm1472_vm3 = vcmp.eq.s32.totalorder %v7670_v7, 2  ;;  %vm1468_vm4 = vcmp.lt.s32.totalorder %v7670_v7, 2 }
 0x2ac   : > { %v1452_v2 = vmul.f32 -0.001358992, %v1451_v16  ;;  %v1459_v58 = vmul.f32 -0.00019511016, %v1451_v16  ;;  %v1265_v25 = vadd.s32 1, %v1261_v28  ;;  %v1027_v55 = vsel %vm1026_vm0, %v1025_v3, 0 }
 0x2ad   : > { %v1029_v46 = vand.u32 31, %v1027_v55  ;;  %vm3938_vm5 = vcmp.eq.s32.totalorder %v7674_v43, 0  ;;  %vm1466_vm2 = vweird.f32 %v7423_v56  ;;  %vm3937_vm6 = vcmp.lt.s32.totalorder %v7674_v43, 2 }
 0x2ae   : > { %v1453_v42 = vadd.f32 0.041655596, %v1452_v2  ;;  %v1460_v38 = vadd.f32 0.008332121, %v1459_v58  ;;  %v1266_v45 = vsel %vm1264_vm15, %v1265_v25, %v1261_v28  ;;  %vm3941_vm7 = vcmp.eq.s32.totalorder %v7674_v43, 2 }
 0x2af   : > { %v1267_v59 = vadd.s32 %v1266_v45, %v1262_v47  ;;  %v1022_v63 = vand.u32 8388607, %v1015_v44  ;;  %v7690_v32 = vsub.s32 32, %v1029_v46  ;;  %v7693_v36 = vmul.f32 %v6148_v30, %v592_v37 }
 0x2b0   : > { %v1454_v62 = vmul.f32 %v1453_v42, %v1451_v16  ;;  %v1461_v23 = vmul.f32 %v1460_v38, %v1451_v16  ;;  %v1032_v33 = vshll.u32 %v6010_v10, %v1029_v46  ;;  %v1035_v51 = vshll.u32 %v6011_v12, %v1029_v46 }
 0x2b1   : > { %v1268_v24 = vadd.s32 536870912, %v1267_v59  ;;  %v1033_v19 = vshrl.u32 %v6011_v12, %v7690_v32  ;;  %v1038_v54 = vshll.u32 %v6012_v15, %v1029_v46  ;;  %v1041_v0 = vshll.u32 %v6009_v6, %v1029_v46 }
 0x2b2   : > { %v1455_v35 = vadd.f32 -0.4999988, %v1454_v62  ;;  %v1462_v50 = vadd.f32 -0.16666654, %v1461_v23  ;;  %v1036_v11 = vshrl.u32 %v6012_v15, %v7690_v32  ;;  %v1039_v8 = vshrl.u32 %v6009_v6, %v7690_v32 }
 0x2b3   : > { %v1269_v14 = vshrl.u32 %v1268_v24, 30  ;;  %v1042_v22 = vshrl.u32 %v6013_v20, %v7690_v32  ;;  %v1044_v40 = vshll.u32 %v6013_v20, %v1029_v46  ;;  %v1023_v18 = vor.u32 8388608, %v1022_v63 }
 0x2b4   : > { %v1456_v39 = vmul.f32 %v1455_v35, %v1451_v16  ;;  %v1463_v4 = vmul.f32 %v1462_v50, %v1451_v16  ;;  %v7708_v48 = vshrl.u32 %v1027_v55, 5  ;;  %v7710_v60 = vor.u32 %v1033_v19, %v1032_v33 }
 0x2b5   : > { %v1270_v16 = vshll.u32 %v1269_v14, 30  ;;  %v1045_v61 = vshrl.u32 %v6014_v26, %v7690_v32  ;;  %v628_v13 = vmul.f32 0.00390625, %v7693_v36  ;;  %v7719_v28 = vor.u32 %v1036_v11, %v1035_v51 }
 0x2b6   : > { %v1457_v34 = vadd.f32 1.0, %v1456_v39  ;;  %v1464_v49 = vadd.f32 1.0, %v1463_v4  ;;  %v1040_v3 = vor.u32 %v1039_v8, %v1038_v54  ;;  %v1043_v42 = vor.u32 %v1042_v22, %v1041_v0 }
 0x2b7   : > { %v1046_v38 = vor.u32 %v1045_v61, %v1044_v40  ;;  %vm1047_vm11 = vcmp.lt.s32.totalorder %v7708_v48, 1  ;;  %vm1049_vm9 = vcmp.lt.s32.totalorder %v7708_v48, 3  ;;  %vm1050_vm13 = vcmp.lt.s32.totalorder %v7708_v48, 4 }
 0x2b8   : > { %v1465_v9 = vmul.f32 %v1464_v49, %v1449_v17  ;;  %v1473_v52 = vxor.u32 2147483648, %v1457_v34  ;;  %v1271_v17 = vsub.s32 %v1267_v59, %v1270_v16  ;;  %v1293_v35 = vsub.s32 4, %v1269_v14 }
 0x2b9   : > { %vm1048_vm14 = vcmp.lt.s32.totalorder %v7708_v48, 2  ;;  %v7737_v43 = vshll.u32 %v1023_v18, 8  ;;  %v1056_v50 = vsel %vm1050_vm13, %v1043_v42, 920167782  ;;  %v1059_v59 = vsel %vm1047_vm11, %v7719_v28, %v1040_v3 }
 0x2ba   : > { %v1470_v2 = vxor.u32 2147483648, %v1465_v9  ;;  %v1474_v58 = vsel %vm1472_vm3, %v1473_v52, %v1465_v9  ;;  %v3943_v31 = vsel %vm3941_vm7, %v1473_v52, %v1465_v9  ;;  %vm1272_vm8 = vcmp.lt.s32.totalorder %v1271_v17, 0 }
 0x2bb   : > { %v1273_v62 = vsub.s32 0, %v1271_v17  ;;  %v1060_v56 = vsel %vm1050_vm13, %v1046_v38, 1326507024  ;;  %v1055_v39 = vsel %vm1047_vm11, %v7710_v60, %v7719_v28  ;;  %v1057_v4 = vsel %vm1049_vm9, %v1040_v3, %v1056_v50 }
 0x2bc   : > { %v1471_v47 = vsel %vm1469_vm1, %v1457_v34, %v1470_v2  ;;  %v3940_v25 = vsel %vm3938_vm5, %v1457_v34, %v1470_v2  ;;  %v1061_v24 = vsel %vm1049_vm9, %v1043_v42, %v1060_v56  ;;  %vm1171_vm10 = vcmp.lt.s32.totalorder %v7554_v53, 0 }
 0x2bd   : > { %v1475_v23 = vsel %vm1468_vm4, %v1471_v47, %v1474_v58  ;;  %v3944_v55 = vsel %vm3937_vm6, %v3940_v25, %v3943_v31  ;;  %v1274_v46 = vsel %vm1272_vm8, %v1273_v62, %v1271_v17  ;;  %v1263_v33 = vadd.s32 %v7667_v41, %v7672_v29 }
 0x2be   : > { %v1476_v37 = vsel %vm1466_vm2, nan, %v1475_v23  ;;  %v3945_v45 = vsel %vm1466_vm2, nan, %v3944_v55  ;;  %v1275_v7 = vclz %v1274_v46  ;;  %v1062_v19 = vsel %vm1048_vm14, %v1059_v59, %v1061_v24 }
 0x2bf   : > { %5662 = vmatpush.msra.mxu0 %v1476_v37  ;;  %5682 = vmatpush.msra.mxu1 %v3945_v45  ;;  %v644_v51 = vfloor.f32 %v628_v13  ;;  %v1294_v54 = vsel %vm1171_vm10, %v1293_v35, %v1269_v14  ;;  %v1064_v34 = vand.u32 65535, %v7737_v43  ;;  %v1065_v49 = vshrl.u32 %v7737_v43, 16 }
 0x2c0   : > { %v5821_v63 = vadd.s32 4294967294, %v1275_v7  ;;  %v1058_v11 = vsel %vm1048_vm14, %v1055_v39, %v1057_v4  ;;  %v1066_v8 = vand.u32 65535, %v1062_v19  ;;  %v1067_v22 = vshrl.u32 %v1062_v19, 16 }
 0x2c1   : > { %v1088_v9 = vand.u32 65535, %v1058_v11  ;;  %vm7767_vm15 = vcmp.le.f32.partialorder %v1169_v5, 0.7853982  ;;  %v1031_v14 = vshrl.u32 %v6010_v10, %v7690_v32  ;;  %v660_v13 = vmul.f32 256.0, %v644_v51 }
 0x2c2   : > { %vm5822_vm12 = vcmp.lt.s32.totalorder %v5821_v63, 0  ;;  %v7775_v61 = vsel %vm7767_vm15, 0, %v1294_v54  ;;  %v1068_v2 = vmul.u32 %v1066_v8, %v1064_v34  ;;  %v1069_v58 = vmul.u32 %v1067_v22, %v1064_v34 }
 0x2c3   : > { %v1278_v0 = vsel %vm5822_vm12, 0, %v5821_v63  ;;  %v1070_v31 = vmul.u32 %v1066_v8, %v1065_v49  ;;  %v1052_v5 = vsel %vm1050_vm13, %v1040_v3, 2102212464  ;;  %v1092_v47 = vmul.u32 %v1088_v9, %v1065_v49 }
 0x2c4   : > { %v1279_v40 = vsub.s32 32, %v1278_v0  ;;  %v1280_v41 = vshll.u32 %v1271_v17, %v1278_v0  ;;  %v1283_v29 = vsub.s32 4294967266, %v1278_v0  ;;  %v1089_v17 = vshrl.u32 %v1058_v11, 16 }
 0x2c5   : > { %v1051_v32 = vsel %vm1047_vm11, %v1031_v14, %v7710_v60  ;;  %v1071_v25 = vmul.u32 %v1067_v22, %v1065_v49  ;;  %v1072_v62 = vshll.u32 %v1069_v58, 16  ;;  %v1074_v23 = vshll.u32 %v1070_v31, 16 }
 0x2c6   : > { %v1281_v16 = vshrl.u32 %v1263_v33, %v1279_v40  ;;  %v1284_v18 = vadd.s32 127, %v1283_v29  ;;  %v1090_v45 = vmul.u32 %v1088_v9, %v1064_v34  ;;  %v1091_v46 = vmul.u32 %v1089_v17, %v1064_v34 }
 0x2c7   : > { %v1053_v7 = vsel %vm1049_vm9, %v7719_v28, %v1052_v5  ;;  %vm1076_vm0 = vc.u32 %v1068_v2, %v1072_v62  ;;  %v1078_v35 = vadd.s32 %v1072_v62, %v1068_v2  ;;  %v1093_v50 = vmul.u32 %v1089_v17, %v1065_v49 }
 0x2c8   : > { %v1282_v42 = vor.u32 %v1281_v16, %v1280_v41  ;;  %v1285_v38 = vshll.u32 %v1284_v18, 23  ;;  %v1077_v59 = vsel %vm1076_vm0, 1, %v6008_v1  ;;  %v1094_v56 = vshll.u32 %v1091_v46, 16 }
 0x2c9   : > { %v1096_v63 = vshll.u32 %v1092_v47, 16  ;;  %v1073_v60 = vshrl.u32 %v1069_v58, 16  ;;  %v1079_v39 = vadd.s32 %v1077_v59, %v1071_v25  ;;  %vm1080_vm1 = vc.u32 %v1078_v35, %v1074_v23 }
 0x2ca   : > { %v1286_v55 = vor.u32 4788187, %v1285_v38  ;;  %v1289_v37 = vcvt.s32.f32 %v1282_v42  ;;  %v676_v4 = vsub.f32 %v7693_v36, %v660_v13  ;;  %v1081_v33 = vsel %vm1080_vm1, 1, %v6008_v1 }
 0x2cb   : > { %vm1098_vm3 = vc.u32 %v1090_v45, %v1094_v56  ;;  %v1100_v19 = vadd.s32 %v1094_v56, %v1090_v45  ;;  %v1075_v51 = vshrl.u32 %v1070_v31, 16  ;;  %v1083_v28 = vadd.s32 %v1081_v33, %v1079_v39 }
 0x2cc   : > { %v1287_v3 = vand.u32 2147483647, %v1286_v55  ;;  %v1099_v54 = vsel %vm1098_vm3, 1, %v6008_v1  ;;  %v7789_v34 = vmul.f32 0.024543693, %v676_v4  ;;  %v1095_v0 = vshrl.u32 %v1091_v46, 16 }
 0x2cd   : > { %v1101_v11 = vadd.s32 %v1099_v54, %v1093_v50  ;;  %vm1102_vm4 = vc.u32 %v1100_v19, %v1096_v63  ;;  %v1084_v8 = vadd.s32 %v1083_v28, %v1073_v60  ;;  %v569_v40 = vcvt.s32.f32 %v6140_v21 }
 0x2ce   : > { %v1290_v24 = vmul.f32 %v1289_v37, %v1287_v3  ;;  %v1103_v22 = vsel %vm1102_vm4, 1, %v6008_v1  ;;  %v864_v36 = vand.u32 2139095040, %v7789_v34  ;;  %v1097_v29 = vshrl.u32 %v1092_v47, 16 }
 0x2cf   : > { %v1105_v9 = vadd.s32 %v1103_v22, %v1101_v11  ;;  %v7799_v16 = vadd.s32 %v1084_v8, %v1075_v51  ;;  %v7801_v18 = vadd.s32 %v1100_v19, %v1096_v63  ;;  %v3780_v58 = vadd.s32 3, %v7775_v61 }
 0x2d0   : > { %v1291_v49 = vxor.u32 2147483648, %v1290_v24  ;;  %v865_v13 = vshrl.u32 %v864_v36, 23  ;;  %v1054_v21 = vsel %vm1048_vm14, %v1051_v32, %v1053_v7  ;;  %v861_v17 = vand.u32 2147483647, %v7789_v34 }
 0x2d1   : > { %v1106_v31 = vadd.s32 %v1105_v9, %v1095_v0  ;;  %v591_v38 = vadd.f32 %v6145_v27, %v569_v40  ;;  %v7809_v25 = vand.u32 3, %v7775_v61  ;;  %v1108_v62 = vmul.u32 %v7737_v43, %v1054_v21 }
 0x2d2   : > { %v1292_v41 = vsel %vm1171_vm10, %v1291_v49, %v1290_v24  ;;  %v5814_v42 = vadd.s32 4294967169, %v865_v13  ;;  %vm1110_vm5 = vc.u32 %v7799_v16, %v7801_v18  ;;  %v3781_v55 = vand.u32 3, %v3780_v58 }
 0x2d3   : > { %v1295_v14 = vsel %vm7767_vm15, %v7554_v53, %v1292_v41  ;;  %v1107_v47 = vadd.s32 %v1106_v31, %v1097_v29  ;;  %v868_v45 = vand.u32 8388607, %v861_v17  ;;  %v7817_v27 = vmul.f32 %v6148_v30, %v591_v38 }
 0x2d4   : > { %v1297_v2 = vmul.f32 %v1295_v14, %v1295_v14  ;;  %v871_v23 = vadd.s32 1, %v5814_v42  ;;  %vm1315_vm6 = vcmp.eq.s32.totalorder %v7809_v25, 0  ;;  %vm1314_vm7 = vcmp.lt.s32.totalorder %v7809_v25, 2 }
 0x2d5   : > { %v1111_v37 = vadd.s32 1, %v1107_v47  ;;  %vm1318_vm8 = vcmp.eq.s32.totalorder %v7809_v25, 2  ;;  %vm3783_vm11 = vcmp.eq.s32.totalorder %v3781_v55, 0  ;;  %vm1312_vm9 = vweird.f32 %v7554_v53 }
 0x2d6   : > { %v1298_v5 = vmul.f32 -0.001358992, %v1297_v2  ;;  %v1305_v52 = vmul.f32 -0.00019511016, %v1297_v2  ;;  %vm872_vm2 = vcmp.gt.s32.totalorder %v871_v23, 0  ;;  %vm3782_vm13 = vcmp.lt.s32.totalorder %v3781_v55, 2 }
 0x2d7   : > { %v1112_v7 = vsel %vm1110_vm5, %v1111_v37, %v1107_v47  ;;  %v873_v35 = vsel %vm872_vm2, %v871_v23, 0  ;;  %vm3786_vm14 = vcmp.eq.s32.totalorder %v3781_v55, 2  ;;  %v869_v39 = vor.u32 8388608, %v868_v45 }
 0x2d8   : > { %v1299_v48 = vadd.f32 0.041655596, %v1298_v5  ;;  %v1306_v32 = vadd.f32 0.008332121, %v1305_v52  ;;  %v1113_v43 = vadd.s32 %v1112_v7, %v1108_v62  ;;  %v875_v50 = vand.u32 31, %v873_v35 }
 0x2d9   : > { %v7826_v4 = vmul.f32 0.00390625, %v7817_v27  ;;  %v7843_v29 = vshrl.u32 %v873_v35, 5  ;;  %v7845_v9 = vshll.u32 %v869_v39, 8  ;;  %vm1017_vm4 = vcmp.lt.s32.totalorder %v7647_v57, 0 }
 0x2da   : > { %v1300_v46 = vmul.f32 %v1299_v48, %v1297_v2  ;;  %v1307_v61 = vmul.f32 %v1306_v32, %v1297_v2  ;;  %v1114_v30 = vadd.s32 536870912, %v1113_v43  ;;  %v7823_v56 = vsub.s32 32, %v875_v50 }
 0x2db   : > { %v878_v33 = vshll.u32 %v6010_v10, %v875_v50  ;;  %v881_v51 = vshll.u32 %v6011_v12, %v875_v50  ;;  %v884_v0 = vshll.u32 %v6012_v15, %v875_v50  ;;  %v887_v22 = vshll.u32 %v6009_v6, %v875_v50 }
 0x2dc   : > { %v1301_v3 = vadd.f32 -0.4999988, %v1300_v46  ;;  %v1308_v59 = vadd.f32 -0.16666654, %v1307_v61  ;;  %v7828_v24 = vshrl.u32 %v1114_v30, 30  ;;  %v879_v19 = vshrl.u32 %v6011_v12, %v7823_v56 }
 0x2dd   : > { %v882_v49 = vshrl.u32 %v6012_v15, %v7823_v56  ;;  %v885_v8 = vshrl.u32 %v6009_v6, %v7823_v56  ;;  %v888_v36 = vshrl.u32 %v6013_v20, %v7823_v56  ;;  %v890_v58 = vshll.u32 %v6013_v20, %v875_v50 }
 0x2de   : > { %v1302_v63 = vmul.f32 %v1301_v3, %v1297_v2  ;;  %v1309_v60 = vmul.f32 %v1308_v59, %v1297_v2  ;;  %v1116_v11 = vshll.u32 %v7828_v24, 30  ;;  %v7847_v2 = vor.u32 %v879_v19, %v878_v33 }
 0x2df   : > { %v891_v21 = vshrl.u32 %v6014_v26, %v7823_v56  ;;  %v886_v52 = vor.u32 %v885_v8, %v884_v0  ;;  %v889_v47 = vor.u32 %v888_v36, %v887_v22  ;;  %vm893_vm12 = vcmp.lt.s32.totalorder %v7843_v29, 1 }
 0x2e0   : > { %v1303_v28 = vadd.f32 1.0, %v1302_v63  ;;  %v1310_v54 = vadd.f32 1.0, %v1309_v60  ;;  %v1117_v13 = vsub.s32 %v1113_v43, %v1116_v11  ;;  %vm896_vm15 = vcmp.lt.s32.totalorder %v7843_v29, 4 }
 0x2e1   : > { %v892_v48 = vor.u32 %v891_v21, %v890_v58  ;;  %vm895_vm0 = vcmp.lt.s32.totalorder %v7843_v29, 3  ;;  %vm894_vm1 = vcmp.lt.s32.totalorder %v7843_v29, 2  ;;  %v902_v25 = vsel %vm896_vm15, %v889_v47, 920167782 }
 0x2e2   : > { %v1311_v40 = vmul.f32 %v1310_v54, %v1295_v14  ;;  %v1319_v41 = vxor.u32 2147483648, %v1303_v28  ;;  %v7855_v14 = vor.u32 %v882_v49, %v881_v51  ;;  %vm1118_vm10 = vcmp.lt.s32.totalorder %v1117_v13, 0 }
 0x2e3   : > { %v1119_v5 = vsub.s32 0, %v1117_v13  ;;  %v906_v43 = vsel %vm896_vm15, %v892_v48, 1326507024  ;;  %v643_v53 = vfloor.f32 %v7826_v4  ;;  %v1109_v50 = vadd.s32 %v7801_v18, %v7799_v16 }
 0x2e4   : > { %v1316_v31 = vxor.u32 2147483648, %v1311_v40  ;;  %v1320_v42 = vsel %vm1318_vm8, %v1319_v41, %v1311_v40  ;;  %v3788_v38 = vsel %vm3786_vm14, %v1319_v41, %v1311_v40  ;;  %v905_v55 = vsel %vm893_vm12, %v7855_v14, %v886_v52 }
 0x2e5   : > { %v1120_v45 = vsel %vm1118_vm10, %v1119_v5, %v1117_v13  ;;  %v907_v3 = vsel %vm895_vm0, %v889_v47, %v906_v43  ;;  %v910_v59 = vand.u32 65535, %v7845_v9  ;;  %v901_v30 = vsel %vm893_vm12, %v7847_v2, %v7855_v14 }
 0x2e6   : > { %v1317_v62 = vsel %vm1315_vm6, %v1303_v28, %v1316_v31  ;;  %v3785_v23 = vsel %vm3783_vm11, %v1303_v28, %v1316_v31  ;;  %v1121_v7 = vclz %v1120_v45  ;;  %v903_v63 = vsel %vm895_vm0, %v886_v52, %v902_v25 }
 0x2e7   : > { %v1321_v32 = vsel %vm1314_vm7, %v1317_v62, %v1320_v42  ;;  %v3789_v37 = vsel %vm3782_vm13, %v3785_v23, %v3788_v38  ;;  %v908_v60 = vsel %vm894_vm1, %v905_v55, %v907_v3  ;;  %v911_v16 = vshrl.u32 %v7845_v9, 16 }
 0x2e8   : > { %v1322_v46 = vsel %vm1312_vm9, nan, %v1321_v32  ;;  %v3790_v61 = vsel %vm1312_vm9, nan, %v3789_v37  ;;  %v5818_v35 = vadd.s32 4294967294, %v1121_v7  ;;  %v912_v18 = vand.u32 65535, %v908_v60 }
 0x2e9   : > { %5663 = vmatpush.msra.mxu0 %v1322_v46  ;;  %5683 = vmatpush.msra.mxu1 %v3790_v61  ;;  %v913_v4 = vshrl.u32 %v908_v60, 16  ;;  %v659_v28 = vmul.f32 256.0, %v643_v53  ;;  %v1139_v54 = vsub.s32 4, %v7828_v24  ;;  %v904_v49 = vsel %vm894_vm1, %v901_v30, %v903_v63  ;;  %v7916_v53 = vpop.f32.mrf.mxu2 }
 0x2ea   : > { %vm5819_vm3 = vcmp.lt.s32.totalorder %v5818_v35, 0  ;;  %v914_v8 = vmul.u32 %v912_v18, %v910_v59  ;;  %v916_v36 = vmul.u32 %v912_v18, %v911_v16  ;;  %v934_v40 = vand.u32 65535, %v904_v49 }
 0x2eb   : > { %v1124_v39 = vsel %vm5819_vm3, 0, %v5818_v35  ;;  %v915_v22 = vmul.u32 %v913_v4, %v910_v59  ;;  %vm7899_vm5 = vcmp.le.f32.partialorder %v1015_v44, 0.7853982  ;;  %v935_v21 = vshrl.u32 %v904_v49, 16 }
 0x2ec   : > { %v1125_v33 = vsub.s32 32, %v1124_v39  ;;  %v1126_v19 = vshll.u32 %v1117_v13, %v1124_v39  ;;  %v1129_v51 = vsub.s32 4294967266, %v1124_v39  ;;  %v675_v31 = vsub.f32 %v7817_v27, %v659_v28 }
 0x2ed   : > { %v1140_v42 = vsel %vm1017_vm4, %v1139_v54, %v7828_v24  ;;  %v877_v38 = vshrl.u32 %v6010_v10, %v7823_v56  ;;  %v917_v5 = vmul.u32 %v913_v4, %v911_v16  ;;  %v918_v47 = vshll.u32 %v915_v22, 16 }
 0x2ee   : > { %v1127_v0 = vshrl.u32 %v1109_v50, %v1125_v33  ;;  %v1130_v11 = vadd.s32 127, %v1129_v51  ;;  %v898_v44 = vsel %vm896_vm15, %v886_v52, 2102212464  ;;  %v920_v48 = vshll.u32 %v916_v36, 16  ;;  %v7918_v50 = vpop.f32.mrf.mxu3 }
 0x2ef   : > { %vm922_vm2 = vc.u32 %v914_v8, %v918_v47  ;;  %v924_v32 = vadd.s32 %v918_v47, %v914_v8  ;;  %v936_v37 = vmul.u32 %v934_v40, %v910_v59  ;;  %v937_v45 = vmul.u32 %v935_v21, %v910_v59 }
 0x2f0   : > { %v1128_v13 = vor.u32 %v1127_v0, %v1126_v19  ;;  %v1131_v58 = vshll.u32 %v1130_v11, 23  ;;  %v919_v46 = vshrl.u32 %v915_v22, 16  ;;  %v923_v61 = vsel %vm922_vm2, 1, %v6008_v1 }
 0x2f1   : > { %v938_v24 = vmul.u32 %v934_v40, %v911_v16  ;;  %v925_v7 = vadd.s32 %v923_v61, %v917_v5  ;;  %vm926_vm6 = vc.u32 %v924_v32, %v920_v48  ;;  %v939_v56 = vmul.u32 %v935_v21, %v911_v16 }
 0x2f2   : > { %v1132_v62 = vor.u32 4788187, %v1131_v58  ;;  %v1135_v23 = vcvt.s32.f32 %v1128_v13  ;;  %v940_v25 = vshll.u32 %v937_v45, 16  ;;  %v897_v35 = vsel %vm893_vm12, %v877_v38, %v7847_v2 }
 0x2f3   : > { %v927_v52 = vsel %vm926_vm6, 1, %v6008_v1  ;;  %v942_v43 = vshll.u32 %v938_v24, 16  ;;  %v7920_v30 = vmul.f32 0.024543693, %v675_v31  ;;  %v899_v60 = vsel %vm895_vm0, %v7855_v14, %v898_v44 }
 0x2f4   : > { %v1133_v27 = vand.u32 2147483647, %v1132_v62  ;;  %v929_v3 = vadd.s32 %v927_v52, %v925_v7  ;;  %vm944_vm7 = vc.u32 %v936_v37, %v940_v25  ;;  %v946_v59 = vadd.s32 %v940_v25, %v936_v37  ;;  %v7945_v62 = vpop.f32.mrf.mxu2 }
 0x2f5   : > { %v921_v39 = vshrl.u32 %v916_v36, 16  ;;  %v945_v2 = vsel %vm944_vm7, 1, %v6008_v1  ;;  %v941_v18 = vshrl.u32 %v937_v45, 16  ;;  %v1142_v19 = vsel %vm7899_vm5, 0, %v1140_v42 }
 0x2f6   : > { %v1136_v55 = vmul.f32 %v1135_v23, %v1133_v27  ;;  %v930_v16 = vadd.s32 %v929_v3, %v919_v46  ;;  %v947_v4 = vadd.s32 %v945_v2, %v939_v56  ;;  %vm948_vm8 = vc.u32 %v946_v59, %v942_v43  ;;  %v7947_v23 = vpop.f32.mrf.mxu3 }
 0x2f7   : > { %v949_v51 = vsel %vm948_vm8, 1, %v6008_v1  ;;  %v710_v28 = vand.u32 2139095040, %v7920_v30  ;;  %v900_v54 = vsel %vm894_vm1, %v897_v35, %v899_v60  ;;  %v943_v49 = vshrl.u32 %v938_v24, 16 }
 0x2f8   : > { %v1137_v63 = vxor.u32 2147483648, %v1136_v55  ;;  %v951_v0 = vadd.s32 %v949_v51, %v947_v4  ;;  %v7937_v8 = vadd.s32 %v930_v16, %v921_v39  ;;  %v7939_v22 = vadd.s32 %v946_v59, %v942_v43 }
 0x2f9   : > { %v711_v36 = vshrl.u32 %v710_v28, 23  ;;  %v3625_v21 = vadd.s32 3, %v1142_v19  ;;  %v954_v41 = vmul.u32 %v7845_v9, %v900_v54  ;;  %v707_v38 = vand.u32 2147483647, %v7920_v30 }
 0x2fa   : > { %v1138_v33 = vsel %vm1017_vm4, %v1137_v63, %v1136_v55  ;;  %v952_v40 = vadd.s32 %v951_v0, %v941_v18  ;;  %vm956_vm11 = vc.u32 %v7937_v8, %v7939_v22  ;;  %v1159_v44 = vand.u32 3, %v1142_v19 }
 0x2fb   : > { %v1141_v14 = vsel %vm7899_vm5, %v7647_v57, %v1138_v33  ;;  %v5811_v31 = vadd.s32 4294967169, %v711_v36  ;;  %v3626_v45 = vand.u32 3, %v3625_v21  ;;  %v714_v7 = vand.u32 8388607, %v707_v38 }
 0x2fc   : > { %v1143_v11 = vmul.f32 %v1141_v14, %v1141_v14  ;;  %v953_v42 = vadd.s32 %v952_v40, %v943_v49  ;;  %vm1158_vm13 = vweird.f32 %v7647_v57  ;;  %vm1160_vm14 = vcmp.lt.s32.totalorder %v1159_v44, 2  ;;  %v7966_v28 = vpop.f32.mrf.mxu2 }
 0x2fd   : > { %v717_v47 = vadd.s32 1, %v5811_v31  ;;  %vm1161_vm10 = vcmp.eq.s32.totalorder %v1159_v44, 0  ;;  %vm1164_vm12 = vcmp.eq.s32.totalorder %v1159_v44, 2  ;;  %vm3628_vm15 = vcmp.eq.s32.totalorder %v3626_v45, 0 }
 0x2fe   : > { %v1144_v13 = vmul.f32 -0.001358992, %v1143_v11  ;;  %v1151_v58 = vmul.f32 -0.00019511016, %v1143_v11  ;;  %v957_v48 = vadd.s32 1, %v953_v42  ;;  %vm3627_vm0 = vcmp.lt.s32.totalorder %v3626_v45, 2  ;;  %v7968_v54 = vpop.f32.mrf.mxu3 }
 0x2ff   : > { %vm718_vm9 = vcmp.gt.s32.totalorder %v717_v47, 0  ;;  %vm3631_vm1 = vcmp.eq.s32.totalorder %v3626_v45, 2  ;;  %v715_v60 = vor.u32 8388608, %v714_v7  ;;  %v8008_v45 = vsub.f32 %v7945_v62, %v7947_v23 }
 0x300   : > { %v1145_v29 = vadd.f32 0.041655596, %v1144_v13  ;;  %v1152_v5 = vadd.f32 0.008332121, %v1151_v58  ;;  %v958_v27 = vsel %vm956_vm11, %v957_v48, %v953_v42  ;;  %v719_v9 = vsel %vm718_vm9, %v717_v47, 0 }
 0x301   : > { %v959_v24 = vadd.s32 %v958_v27, %v954_v41  ;;  %v721_v56 = vand.u32 31, %v719_v9  ;;  %v7964_v51 = vshrl.u32 %v719_v9, 5  ;;  %vm863_vm8 = vcmp.lt.s32.totalorder %v7789_v34, 0 }
 0x302   : > { %v1146_v32 = vmul.f32 %v1145_v29, %v1143_v11  ;;  %v1153_v37 = vmul.f32 %v1152_v5, %v1143_v11 }
 0x303   : > { %v960_v35 = vadd.s32 536870912, %v959_v24  ;;  %v7952_v52 = vsub.s32 32, %v721_v56  ;;  %v727_v43 = vshll.u32 %v6011_v12, %v721_v56  ;;  %v730_v2 = vshll.u32 %v6012_v15, %v721_v56 }
 0x304   : > { %v1147_v46 = vadd.f32 -0.4999988, %v1146_v32  ;;  %v1154_v61 = vadd.f32 -0.16666654, %v1153_v37  ;;  %v733_v18 = vshll.u32 %v6009_v6, %v721_v56  ;;  %v724_v49 = vshll.u32 %v6010_v10, %v721_v56 }
 0x305   : > { %v7955_v63 = vshrl.u32 %v960_v35, 30  ;;  %v728_v39 = vshrl.u32 %v6012_v15, %v7952_v52  ;;  %v731_v16 = vshrl.u32 %v6009_v6, %v7952_v52  ;;  %v725_v15 = vshrl.u32 %v6011_v12, %v7952_v52 }
 0x306   : > { %v1148_v25 = vmul.f32 %v1147_v46, %v1143_v11  ;;  %v1155_v55 = vmul.f32 %v1154_v61, %v1143_v11  ;;  %v734_v6 = vshrl.u32 %v6013_v20, %v7952_v52  ;;  %v736_v21 = vshll.u32 %v6013_v20, %v721_v56  ;;  %v466_v56 = vpop.f32.mrf.mxu2 }
 0x307   : > { %v962_v19 = vshll.u32 %v7955_v63, 30  ;;  %v7973_v0 = vor.u32 %v728_v39, %v727_v43  ;;  %v7979_v13 = vor.u32 %v731_v16, %v730_v2  ;;  %v737_v31 = vshrl.u32 %v6014_v26, %v7952_v52 }
 0x308   : > { %v1149_v3 = vadd.f32 1.0, %v1148_v25  ;;  %v1156_v59 = vadd.f32 1.0, %v1155_v55  ;;  %v735_v58 = vor.u32 %v734_v6, %v733_v18  ;;  %vm739_vm4 = vcmp.lt.s32.totalorder %v7964_v51, 1  ;;  %v489_v25 = vpop.f32.mrf.mxu3 }
 0x309   : > { %v963_v40 = vsub.s32 %v959_v24, %v962_v19  ;;  %v738_v47 = vor.u32 %v737_v31, %v736_v21  ;;  %v7993_v32 = vshll.u32 %v715_v60, 8  ;;  %v7995_v27 = vor.u32 %v725_v15, %v724_v49 }
 0x30a   : > { %v1157_v4 = vmul.f32 %v1156_v59, %v1141_v14  ;;  %v1165_v33 = vxor.u32 2147483648, %v1149_v3  ;;  %vm741_vm5 = vcmp.lt.s32.totalorder %v7964_v51, 3  ;;  %vm742_vm2 = vcmp.lt.s32.totalorder %v7964_v51, 4 }
 0x30b   : > { %vm964_vm3 = vcmp.lt.s32.totalorder %v963_v40, 0  ;;  %v965_v41 = vsub.s32 0, %v963_v40  ;;  %vm740_vm6 = vcmp.lt.s32.totalorder %v7964_v51, 2  ;;  %v748_v44 = vsel %vm742_vm2, %v735_v58, 920167782 }
 0x30c   : > { %v1162_v14 = vxor.u32 2147483648, %v1157_v4  ;;  %v1166_v11 = vsel %vm1164_vm12, %v1165_v33, %v1157_v4  ;;  %v3633_v36 = vsel %vm3631_vm1, %v1165_v33, %v1157_v4  ;;  %v751_v57 = vsel %vm739_vm4, %v7973_v0, %v7979_v13 }
 0x30d   : > { %v966_v26 = vsel %vm964_vm3, %v965_v41, %v963_v40  ;;  %v752_v46 = vsel %vm742_vm2, %v738_v47, 1326507024  ;;  %v955_v61 = vadd.s32 %v7939_v22, %v7937_v8  ;;  %v756_v7 = vand.u32 65535, %v7993_v32 }
 0x30e   : > { %v1163_v12 = vsel %vm1161_vm10, %v1149_v3, %v1162_v14  ;;  %v3630_v42 = vsel %vm3628_vm15, %v1149_v3, %v1162_v14  ;;  %v967_v37 = vclz %v966_v26  ;;  %v753_v24 = vsel %vm741_vm5, %v735_v58, %v752_v46 }
 0x30f   : > { %v1167_v29 = vsel %vm1160_vm14, %v1163_v12, %v1166_v11  ;;  %v3634_v5 = vsel %vm3627_vm0, %v3630_v42, %v3633_v36  ;;  %v747_v62 = vsel %vm739_vm4, %v7995_v27, %v7973_v0  ;;  %v749_v23 = vsel %vm741_vm5, %v7979_v13, %v748_v44 }
 0x310   : > { %v1168_v48 = vsel %vm1158_vm13, nan, %v1167_v29  ;;  %v3635_v20 = vsel %vm1158_vm13, nan, %v3634_v5  ;;  %v5815_v9 = vadd.s32 4294967294, %v967_v37  ;;  %v754_v8 = vsel %vm740_vm6, %v751_v57, %v753_v24 }
 0x311   : > { %5664 = vmatpush.msra.mxu0 %v1168_v48  ;;  %5684 = vmatpush.msra.mxu1 %v3635_v20  ;;  %v757_v55 = vshrl.u32 %v7993_v32, 16  ;;  %v758_v35 = vand.u32 65535, %v754_v8  ;;  %v759_v43 = vshrl.u32 %v754_v8, 16  ;;  %v8028_v3 = vadd.f32 1.0, %v8008_v45 }
 0x312   : > { %vm5816_vm7 = vcmp.lt.s32.totalorder %v5815_v9, 0  ;;  %v8030_v2 = vadd.f32 %v489_v25, %v466_v56  ;;  %v750_v16 = vsel %vm740_vm6, %v747_v62, %v749_v23  ;;  %v723_v42 = vshrl.u32 %v6010_v10, %v7952_v52 }
 0x313   : > { %v970_v22 = vsel %vm5816_vm7, 0, %v5815_v9  ;;  %v760_v33 = vmul.u32 %v758_v35, %v756_v7  ;;  %v761_v19 = vmul.u32 %v759_v43, %v756_v7  ;;  %v762_v49 = vmul.u32 %v758_v35, %v757_v55 }
 0x314   : > { %v971_v59 = vsub.s32 32, %v970_v22  ;;  %v972_v60 = vshll.u32 %v963_v40, %v970_v22  ;;  %v975_v39 = vsub.s32 4294967266, %v970_v22  ;;  %v780_v15 = vand.u32 65535, %v750_v16 }
 0x315   : > { %v493_v6 = vmul.f32 %v8028_v3, %v8028_v3  ;;  %v781_v36 = vshrl.u32 %v750_v16, 16  ;;  %v494_v40 = vmul.f32 %v8030_v2, %v8030_v2  ;;  %v763_v58 = vmul.u32 %v759_v43, %v757_v55 }
 0x316   : > { %v973_v18 = vshrl.u32 %v955_v61, %v971_v59  ;;  %v976_v4 = vadd.s32 127, %v975_v39  ;;  %v764_v21 = vshll.u32 %v761_v19, 16  ;;  %v766_v41 = vshll.u32 %v762_v49, 16 }
 0x317   : > { %v782_v5 = vmul.u32 %v780_v15, %v756_v7  ;;  %v783_v47 = vmul.u32 %v781_v36, %v756_v7  ;;  %v765_v20 = vshrl.u32 %v761_v19, 16  ;;  %v784_v37 = vmul.u32 %v780_v15, %v757_v55 }
 0x318   : > { %v974_v14 = vor.u32 %v973_v18, %v972_v60  ;;  %v977_v11 = vshll.u32 %v976_v4, 23  ;;  %vm768_vm11 = vc.u32 %v760_v33, %v764_v21  ;;  %v770_v29 = vadd.s32 %v764_v21, %v760_v33 }
 0x319   : > { %v769_v26 = vsel %vm768_vm11, 1, %v6008_v1  ;;  %v785_v57 = vmul.u32 %v781_v36, %v757_v55  ;;  %v786_v9 = vshll.u32 %v783_v47, 16  ;;  %v985_v61 = vsub.s32 4, %v7955_v63 }
 0x31a   : > { %v978_v31 = vor.u32 4788187, %v977_v11  ;;  %v981_v12 = vcvt.s32.f32 %v974_v14  ;;  %v771_v44 = vadd.s32 %v769_v26, %v763_v58  ;;  %vm772_vm9 = vc.u32 %v770_v29, %v766_v41 }
 0x31b   : > { %v773_v24 = vsel %vm772_vm9, 1, %v6008_v1  ;;  %v788_v10 = vshll.u32 %v784_v37, 16  ;;  %v744_v52 = vsel %vm742_vm2, %v7979_v13, 2102212464  ;;  %vm790_vm13 = vc.u32 %v782_v5, %v786_v9 }
 0x31c   : > { %v979_v48 = vand.u32 2147483647, %v978_v31  ;;  %v775_v7 = vadd.s32 %v773_v24, %v771_v44  ;;  %v792_v56 = vadd.s32 %v786_v9, %v782_v5  ;;  %vm8049_vm14 = vcmp.le.f32.partialorder %v861_v17, 0.7853982 }
 0x31d   : > { %v767_v23 = vshrl.u32 %v762_v49, 16  ;;  %v791_v8 = vsel %vm790_vm13, 1, %v6008_v1  ;;  %v787_v55 = vshrl.u32 %v783_v47, 16  ;;  %v743_v43 = vsel %vm739_vm4, %v723_v42, %v7995_v27 }
 0x31e   : > { %v982_v46 = vmul.f32 %v981_v12, %v979_v48  ;;  %v776_v22 = vadd.s32 %v775_v7, %v765_v20  ;;  %v793_v35 = vadd.s32 %v791_v8, %v785_v57  ;;  %vm794_vm10 = vc.u32 %v792_v56, %v788_v10 }
 0x31f   : > { %v745_v17 = vsel %vm741_vm5, %v7973_v0, %v744_v52  ;;  %v795_v59 = vsel %vm794_vm10, 1, %v6008_v1  ;;  %v986_v60 = vsel %vm863_vm8, %v985_v61, %v7955_v63  ;;  %v789_v16 = vshrl.u32 %v784_v37, 16 }
 0x320   : > { %v983_v62 = vxor.u32 2147483648, %v982_v46  ;;  %v797_v18 = vadd.s32 %v795_v59, %v793_v35  ;;  %v8069_v33 = vadd.s32 %v776_v22, %v767_v23  ;;  %v8071_v27 = vadd.s32 %v792_v56, %v788_v10 }
 0x321   : > { %v495_v19 = vadd.f32 %v494_v40, %v493_v6  ;;  %v746_v0 = vsel %vm740_vm6, %v743_v43, %v745_v17  ;;  %v988_v49 = vsel %vm8049_vm14, 0, %v986_v60  ;;  %vm1004_vm2 = vweird.f32 %v7789_v34  ;;  %v528_v17 = vld [vmem:[%s344_s13] sm:$0x1] }
 0x322   : > { %v984_v13 = vsel %vm863_vm8, %v983_v62, %v982_v46  ;;  %v798_v1 = vadd.s32 %v797_v18, %v787_v55  ;;  %v800_v58 = vmul.u32 %v7993_v32, %v746_v0  ;;  %vm802_vm12 = vc.u32 %v8069_v33, %v8071_v27  ;;  %v530_v18 = vld [vmem:[%s347_s17] sm:$0x1] }
 0x323   : > { %v987_v39 = vsel %vm8049_vm14, %v7789_v34, %v984_v13  ;;  %5964 = vrcp.f32 %v495_v19  ;;  %v3470_v21 = vadd.s32 3, %v988_v49  ;;  %v1005_v29 = vand.u32 3, %v988_v49 }
 0x324   : > { %v989_v4 = vmul.f32 %v987_v39, %v987_v39  ;;  %v799_v14 = vadd.s32 %v798_v1, %v789_v16  ;;  %v801_v16 = vadd.s32 %v8071_v27, %v8069_v33  ;;  %vm709_vm8 = vcmp.lt.s32.totalorder %v7920_v30, 0 }
 0x325   : > { %v3471_v5 = vand.u32 3, %v3470_v21  ;;  %vm1010_vm15 = vcmp.eq.s32.totalorder %v1005_v29, 2  ;;  %vm1006_vm1 = vcmp.lt.s32.totalorder %v1005_v29, 2  ;;  %vm1007_vm3 = vcmp.eq.s32.totalorder %v1005_v29, 0 }
 0x326   : > { %v990_v63 = vmul.f32 -0.001358992, %v989_v4  ;;  %v997_v15 = vmul.f32 -0.00019511016, %v989_v4  ;;  %v803_v6 = vadd.s32 1, %v799_v14 }
 0x327   : > { %vm3476_vm0 = vcmp.eq.s32.totalorder %v3471_v5, 2  ;;  %vm3472_vm4 = vcmp.lt.s32.totalorder %v3471_v5, 2  ;;  %vm3473_vm5 = vcmp.eq.s32.totalorder %v3471_v5, 0  ;;  %vm708_vm11 = vcmp.le.f32.partialorder %v707_v38, 0.7853982 }
 0x328   : > { %v991_v11 = vadd.f32 0.041655596, %v990_v63  ;;  %v998_v36 = vadd.f32 0.008332121, %v997_v15  ;;  %v804_v31 = vsel %vm802_vm12, %v803_v6, %v799_v14  ;;  %v532_v14 = vmul.f32 %v530_v18, %v530_v18 }
 0x329   : > { %v805_v41 = vadd.s32 %v804_v31, %v800_v58  ;;  %v5965_v26 = vpop.eup %5964 }
 0x32a   : > { %v992_v40 = vmul.f32 %v991_v11, %v989_v4  ;;  %v999_v51 = vmul.f32 %v998_v36, %v989_v4  ;;  %v498_v57 = vmul.f32 %v5965_v26, %v8030_v2  ;;  %v497_v34 = vmul.f32 %v5965_v26, %v8028_v3 }
 0x32b   : > { %v806_v20 = vadd.s32 536870912, %v805_v41 }
 0x32c   : > { %v993_v12 = vadd.f32 -0.4999988, %v992_v40  ;;  %v1000_v42 = vadd.f32 -0.16666654, %v999_v51  ;;  %v499_v22 = vsub.f32 0.0, %v498_v57 }
 0x32d   : > { %v8080_v44 = vshrl.u32 %v806_v20, 30 }
 0x32e   : > { %v994_v47 = vmul.f32 %v993_v12, %v989_v4  ;;  %v1001_v48 = vmul.f32 %v1000_v42, %v989_v4  ;;  %v505_v60 = vrot.slane %v499_v22, 1  ;;  %v501_v4 = vrot.slane %v497_v34, 1 }
 0x32f   : > { %v808_v61 = vshll.u32 %v8080_v44, 30 }
 0x330   : > { %v995_v37 = vadd.f32 1.0, %v994_v47  ;;  %v1002_v32 = vadd.f32 1.0, %v1001_v48  ;;  %v507_v63 = vmul.f32 %v505_v60, %v8030_v2  ;;  %v509_v3 = vmul.f32 %v505_v60, %v8008_v45 }
 0x331   : > { %v809_v7 = vsub.s32 %v805_v41, %v808_v61  ;;  %v503_v58 = vmul.f32 %v501_v4, %v8008_v45  ;;  %v510_v21 = vmul.f32 %v501_v4, %v8030_v2  ;;  %v444_v47 = vsub.f32 %v7916_v53, %v7918_v50 }
 0x332   : > { %v1003_v9 = vmul.f32 %v1002_v32, %v987_v39  ;;  %v1011_v46 = vxor.u32 2147483648, %v995_v37  ;;  %v529_v39 = vadd.f32 1.0, %v528_v17  ;;  %v487_v45 = vadd.f32 %v7968_v54, %v7966_v28 }
 0x333   : > { %vm810_vm6 = vcmp.lt.s32.totalorder %v809_v7, 0  ;;  %v811_v62 = vsub.s32 0, %v809_v7  ;;  %v508_v6 = vsub.f32 %v503_v58, %v507_v63  ;;  %v511_v40 = vadd.f32 %v510_v21, %v509_v3 }
 0x334   : > { %v1008_v24 = vxor.u32 2147483648, %v1003_v9  ;;  %v1012_v10 = vsel %vm1010_vm15, %v1011_v46, %v1003_v9  ;;  %v3478_v52 = vsel %vm3476_vm0, %v1011_v46, %v1003_v9  ;;  %v531_v15 = vmul.f32 %v529_v39, %v529_v39 }
 0x335   : > { %v812_v13 = vsel %vm810_vm6, %v811_v62, %v809_v7  ;;  %v512_v41 = vperm.slane %v508_v6, 0  ;;  %v514_v29 = vperm.slane %v511_v40, 0  ;;  %v831_v2 = vsub.s32 4, %v8080_v44 }
 0x336   : > { %v1009_v56 = vsel %vm1007_vm3, %v995_v37, %v1008_v24  ;;  %v3475_v25 = vsel %vm3473_vm5, %v995_v37, %v1008_v24  ;;  %v813_v43 = vclz %v812_v13  ;;  %v533_v51 = vadd.f32 %v532_v14, %v531_v15 }
 0x337   : > { %v1013_v23 = vsel %vm1006_vm1, %v1009_v56, %v1012_v10  ;;  %v3479_v8 = vsel %vm3472_vm4, %v3475_v25, %v3478_v52  ;;  %v513_v20 = vmul.f32 %v512_v41, %v444_v47  ;;  %v515_v26 = vmul.f32 %v514_v29, %v487_v45 }
 0x338   : > { %v1014_v55 = vsel %vm1004_vm2, nan, %v1013_v23  ;;  %v3480_v35 = vsel %vm1004_vm2, nan, %v3479_v8  ;;  %v5812_v59 = vadd.s32 4294967294, %v813_v43  ;;  %5966 = vrcp.f32 %v533_v51 }
 0x339   : > { %5665 = vmatpush.msra.mxu0 %v1014_v55  ;;  %5685 = vmatpush.msra.mxu1 %v3480_v35  ;;  %v517_v37 = vmul.f32 %v512_v41, %v487_v45  ;;  %v518_v32 = vmul.f32 %v514_v29, %v444_v47  ;;  %v537_v9 = vmul.f32 2.0, %v530_v18  ;;  %v832_v53 = vsel %vm709_vm8, %v831_v2, %v8080_v44 }
 0x33a   : > { %vm5813_vm7 = vcmp.lt.s32.totalorder %v5812_v59, 0  ;;  %v516_v54 = vsub.f32 %v513_v20, %v515_v26  ;;  %v535_v24 = vmul.f32 2.0, %v529_v39  ;;  %v834_v10 = vsel %vm708_vm11, 0, %v832_v53 }
 0x33b   : > { %v816_v19 = vsel %vm5813_vm7, 0, %v5812_v59  ;;  %v519_v61 = vadd.f32 %v518_v32, %v517_v37  ;;  %v3315_v62 = vadd.s32 3, %v834_v10  ;;  %v851_v17 = vand.u32 3, %v834_v10 }
 0x33c   : > { %v817_v0 = vsub.s32 32, %v816_v19  ;;  %v818_v1 = vshll.u32 %v809_v7, %v816_v19  ;;  %v821_v49 = vsub.s32 4294967266, %v816_v19  ;;  %v521_v23 = vrot.slane %v516_v54, 4 }
 0x33d   : > { %v525_v8 = vrot.slane %v519_v61, 4  ;;  %v3316_v34 = vand.u32 3, %v3315_v62  ;;  %vm856_vm9 = vcmp.eq.s32.totalorder %v851_v17, 2  ;;  %vm852_vm14 = vcmp.lt.s32.totalorder %v851_v17, 2 }
 0x33e   : > { %v819_v11 = vshrl.u32 %v801_v16, %v817_v0  ;;  %v822_v36 = vadd.s32 127, %v821_v49  ;;  %v5967_v46 = vpop.eup %5966  ;;  %v523_v59 = vsub.f32 %v444_v47, %v521_v23  ;;  %vm853_vm10 = vcmp.eq.s32.totalorder %v851_v17, 0 }
 0x33f   : > { %v538_v38 = vmul.f32 %v5967_v46, %v537_v9  ;;  %v536_v22 = vmul.f32 %v5967_v46, %v535_v24  ;;  %v527_v60 = vsub.f32 %v487_v45, %v525_v8  ;;  %vm3321_vm13 = vcmp.eq.s32.totalorder %v3316_v34, 2 }
 0x340   : > { %v820_v33 = vor.u32 %v819_v11, %v818_v1  ;;  %v823_v27 = vshll.u32 %v822_v36, 23  ;;  %vm3318_vm12 = vcmp.eq.s32.totalorder %v3316_v34, 0  ;;  %vm3317_vm15 = vcmp.lt.s32.totalorder %v3316_v34, 2 }
 0x341   : > { %v539_v13 = vsub.f32 0.0, %v538_v38  ;;  %v541_v39 = vperm.slane %v536_v22, 0  ;;  %vm850_vm0 = vweird.f32 %v7920_v30 }
 0x342   : > { %v824_v31 = vor.u32 4788187, %v823_v27  ;;  %v827_v12 = vcvt.s32.f32 %v820_v33 }
 0x343   : > { %v545_v4 = vperm.slane %v539_v13, 0  ;;  %v543_v1 = vmul.f32 %v541_v39, %v523_v59  ;;  %v550_v49 = vmul.f32 %v541_v39, %v527_v60 }
 0x344   : > { %v825_v42 = vand.u32 2147483647, %v824_v31 }
 0x345   : > { %v547_v15 = vmul.f32 %v545_v4, %v527_v60  ;;  %v549_v14 = vmul.f32 %v545_v4, %v523_v59 }
 0x346   : > { %v828_v5 = vmul.f32 %v827_v12, %v825_v42 }
 0x347   : > { %v548_v27 = vsub.f32 %v543_v1, %v547_v15  ;;  %v551_v6 = vadd.f32 %v550_v49, %v549_v14 }
 0x348   : > { %v829_v48 = vxor.u32 2147483648, %v828_v5 }
 0x34a   : > { %v830_v57 = vsel %vm709_vm8, %v829_v48, %v828_v5 }
 0x34b   : > { %v833_v50 = vsel %vm708_vm11, %v7920_v30, %v830_v57 }
 0x34c   : > { %v835_v28 = vmul.f32 %v833_v50, %v833_v50 }
 0x34e   : > { %v836_v52 = vmul.f32 -0.001358992, %v835_v28  ;;  %v843_v7 = vmul.f32 -0.00019511016, %v835_v28 }
 0x350   : > { %v837_v56 = vadd.f32 0.041655596, %v836_v52  ;;  %v844_v25 = vadd.f32 0.008332121, %v843_v7 }
 0x352   : > { %v838_v55 = vmul.f32 %v837_v56, %v835_v28  ;;  %v845_v35 = vmul.f32 %v844_v25, %v835_v28 }
 0x354   : > { %v839_v44 = vadd.f32 -0.4999988, %v838_v55  ;;  %v846_v43 = vadd.f32 -0.16666654, %v845_v35 }
 0x356   : > { %v840_v16 = vmul.f32 %v839_v44, %v835_v28  ;;  %v847_v18 = vmul.f32 %v846_v43, %v835_v28 }
 0x358   : > { %v841_v19 = vadd.f32 1.0, %v840_v16  ;;  %v848_v0 = vadd.f32 1.0, %v847_v18 }
 0x35a   : > { %v849_v63 = vmul.f32 %v848_v0, %v833_v50  ;;  %v857_v3 = vxor.u32 2147483648, %v841_v19 }
 0x35c   : > { %v854_v11 = vxor.u32 2147483648, %v849_v63  ;;  %v858_v36 = vsel %vm856_vm9, %v857_v3, %v849_v63  ;;  %v3323_v58 = vsel %vm3321_vm13, %v857_v3, %v849_v63 }
 0x35e   : > { %v855_v21 = vsel %vm853_vm10, %v841_v19, %v854_v11  ;;  %v3320_v33 = vsel %vm3318_vm12, %v841_v19, %v854_v11 }
 0x35f   : > { %v859_v40 = vsel %vm852_vm14, %v855_v21, %v858_v36  ;;  %v3324_v51 = vsel %vm3317_vm15, %v3320_v33, %v3323_v58 }
 0x360   : > { %v860_v31 = vsel %vm850_vm0, nan, %v859_v40  ;;  %v3325_v12 = vsel %vm850_vm0, nan, %v3324_v51 }
 0x361   : > { %5666 = vmatpush.msra.mxu0 %v860_v31  ;;  %5686 = vmatpush.msra.mxu1 %v3325_v12 }
 0x362   : > { %5667 = vmatmul.f32.vlgmr.msra.gmra.mxu0 %v548_v27  ;;  %5687 = vmatmul.f32.vlgmr.msra.gmra.mxu1 %v551_v6 }
 0x3dc   : > { %5695 = sbr.rel (%p5907_p7) target bundleno = 995 (0x3e3), region = 56 }
 0x3df   : > { %v5668_v42 = vpop.f32.mrf.mxu0  ;;  %v5688_v41 = vpop.f32.mrf.mxu1 }
 0x3e0   : > { %v5691_v29 = vsub.f32 %v5668_v42, %v5688_v41 }
 0x3e1   : > { %v6015_v5 = vmov 0.0  }
 0x3e2   : > { %5696 = vst [vmem:[%s6119_s12] sm:$0xf] %v6015_v5 }
 0x3e3 PF: > { %p5908_p8 = scmp.ne.s32.totalorder %s5990_s27, 1 }
 0x3e8   : > { %5703 = sbr.rel (%p5908_p8) target bundleno = 1015 (0x3f7), region = 60 }
 0x3e9   : > { %v5697_v30 = vld [vmem:[%s6119_s12] sm:$0xf] }
 0x3ea   : > { %v5698_v47 = vadd.f32 %v5697_v30, %v5691_v29 }
 0x3ec   : > { %5699 = vst [vmem:[%s6119_s12] sm:$0xf] %v5698_v47 }
 0x3f3   : > { %v5704_v45 = vld [vmem:[%s6119_s12] sm:$0xf] }
 0x3f4   : > { %v5705_v2 = vmul.f32 0.00390625, %v5704_v45 }
 0x3f6   : > { %5706 = vst [vmem:[%s6119_s12] sm:$0xf] %v5705_v2 }
 0x3f7 PF: > { %s18_s9 = sadd.s32 1, %s6006_s9   ;;  %s8170_s27 = smov %s5998_s29 }
 0x3f8   : > { %p15_p9 = scmp.ge.s32.totalorder %s18_s9, 6   ;;  %s8171_s28 = smov %s6002_s30 }
 0x3f9   : > { %s8172_s29 = smov %s8175_s10  ;;  %s8173_s30 = smov %s8179_s11 }
 0x3fa   :  { %17 = sbr.rel (!%p15_p9) target bundleno = 3 (0x3), region = 99 }

</bundles_post_ra>
